<compile_context>
chip_gen: v6e
topology: v6e:2x2x1
jax: 0.10.0
libtpu: 0.0.40
codegen_flags: <defaults>
</compile_context>

<pallas_src>
import jax
import jax.numpy as jnp
from jax.experimental import pallas as pl
from jax.experimental.pallas import tpu as pltpu


# ----------------------------------------------------------------------------
# Bilinear interpolation matrix matching torch.nn.Upsample(align_corners=False)
# ----------------------------------------------------------------------------
def pt_bilinear_matrix(out_size, in_size):
    o = jnp.arange(out_size, dtype=jnp.float32)
    scale = in_size / out_size
    src = (o + 0.5) * scale - 0.5
    src = jnp.maximum(src, 0.0)
    i0f = jnp.floor(src)
    w1 = src - i0f
    w0 = 1.0 - w1
    i0 = jnp.clip(i0f.astype(jnp.int32), 0, in_size - 1)
    i1 = jnp.clip(i0 + 1, 0, in_size - 1)
    m0 = jax.nn.one_hot(i0, in_size, dtype=jnp.float32) * w0[:, None]
    m1 = jax.nn.one_hot(i1, in_size, dtype=jnp.float32) * w1[:, None]
    return m0 + m1  # (out_size, in_size), rows sum to 1


# ----------------------------------------------------------------------------
# One-time weight prep (hoisted out of the per-call hot path).
# ----------------------------------------------------------------------------
def prepare_params(params, x1_hw=(56, 56), x4_hw=(7, 7)):
    W2, b2, W1, b1, Wa, ba, Wh, bh = params
    Cmid = W2.shape[0]
    nc = Wa.shape[0]
    H, W = x1_hw
    h4, w4 = x4_hw
    # colmean of the separable bilinear upsample matrix (shape-static).
    uh = jnp.mean(pt_bilinear_matrix(H, h4), axis=0)               # (h4,)
    uw = jnp.mean(pt_bilinear_matrix(W, w4), axis=0)               # (w4,)
    u = (uh[:, None] * uw[None, :]).reshape(1, h4 * w4).astype(jnp.float32)
    return (W2.astype(jnp.bfloat16),                               # bf16 MXU op
            b2.astype(jnp.float32).reshape(Cmid, 1),
            W1.astype(jnp.float32),                                # f32 (accuracy)
            b1.astype(jnp.float32).reshape(Cmid, 1),
            u,
            jnp.transpose(Wa).astype(jnp.float32),                 # (Cmid, nc)
            ba.astype(jnp.float32).reshape(1, nc),
            jnp.transpose(Wh).astype(jnp.float32),                 # (Cmid, nc)
            bh.astype(jnp.float32).reshape(1, nc))


# ----------------------------------------------------------------------------
# Fused kernel: conv2+ReLU+pool, conv1_up+ReLU+(collapsed upsample) pool,
# attention conv and per-class heads.  Bt batch elements per grid step.
# ----------------------------------------------------------------------------
def fused_forward_kernel(x1_ref, x4_ref, w2_ref, b2_ref, w1_ref, b1_ref,
                         u_ref, wat_ref, ba_ref, wht_ref, bh_ref, o_ref):
    bt = x1_ref.shape[0]
    rows = []
    for i in range(bt):  # Bt <= 4 -> static unroll; intermediates die per iter
        # conv2 (1x1, 256->64) + ReLU.  Channels on sublanes, HW on lanes, so
        # NCHW data is read directly.  x1 arrives in f32 (no wrapper cast
        # round-trip); cast to bf16 on the VPU here, accumulate in f32 on MXU.
        a = jnp.dot(w2_ref[...], x1_ref[i].astype(jnp.bfloat16),
                    preferred_element_type=jnp.float32)
        a = jnp.maximum(a + b2_ref[...], 0.0)                      # (Cmid, HW)
        pooled = jnp.mean(a, axis=1, keepdims=True)                # (Cmid, 1)

        # conv1_up (1x1, 2048->64) + ReLU kept fully in f32 (only ~13 MFLOP,
        # free at the HBM roofline; K=2048 is where bf16 error would pile up).
        # Bilinear Upsample(56) + pool collapsed into a colmean(U)-weighted
        # sum over the hw4 source positions.
        y = jnp.dot(w1_ref[...], x4_ref[i],
                    preferred_element_type=jnp.float32)
        y = jnp.maximum(y + b1_ref[...], 0.0)                      # (Cmid, hw4)
        pooled = pooled + jnp.sum(y * u_ref[...], axis=1, keepdims=True)

        # Attention 1x1 conv + per-class heads on the pooled vector:
        #   out_i = (pooled . Wa_i + ba_i) * (pooled . Wh_i) + bh_i
        att = jnp.sum(wat_ref[...] * pooled, axis=0, keepdims=True) + ba_ref[...]
        head = jnp.sum(wht_ref[...] * pooled, axis=0, keepdims=True)
        rows.append(att * head + bh_ref[...])                      # (1, nc)

    o_ref[...] = jnp.concatenate(rows, axis=0)[None]               # (1, Bt, nc)


def _choose_block_batch(B, max_bt=4):
    """Largest Bt <= max_bt dividing B, preferring >= 2 grid steps (so both
    TensorCores on dual-TC chips get work)."""
    for bt in range(max_bt, 0, -1):
        if B % bt == 0 and B // bt >= 2:
            return bt
    for bt in range(max_bt, 0, -1):
        if B % bt == 0:
            return bt
    return 1


# ----------------------------------------------------------------------------
# Full forward (BaseCNNModel.forward).  Takes prepare_params() output.
# ----------------------------------------------------------------------------
@jax.jit
def base_cnn_forward(x1, x4, prepped):
    (W2b, b2c, W1f, b1c, u, WaT, ba_r, WhT, bh_r) = prepped
    B, C1, H, W = x1.shape          # (B, 256, 56, 56)
    _, C4, h4, w4 = x4.shape        # (B, 2048, 7, 7)
    Cmid, nc = WaT.shape            # (64, num_classes)
    HW, hw4 = H * W, h4 * w4

    Bt = _choose_block_batch(B)
    G = B // Bt

    # Layout prep is free reshapes only (trailing spatial-dim merge); no
    # transpose, no dtype cast -> no extra HBM round-trip before the kernel.
    x1f = x1.reshape(B, C1, HW)
    x4f = x4.reshape(B, C4, hw4)

    flops = 2 * Cmid * (C1 * HW + C4 * hw4) * B + 4 * Cmid * nc * B
    bytes_accessed = (x1f.size * 4 + x4f.size * 4 + W2b.size * 2
                      + W1f.size * 4 + (WaT.size + WhT.size) * 4
                      + B * nc * 4)

    out = pl.pallas_call(
        fused_forward_kernel,
        out_shape=jax.ShapeDtypeStruct((G, Bt, nc), jnp.float32),
        grid_spec=pltpu.PrefetchScalarGridSpec(
            num_scalar_prefetch=0,
            grid=(G,),
            in_specs=[
                pl.BlockSpec((Bt, C1, HW), lambda g: (g, 0, 0)),    # x1 (f32)
                pl.BlockSpec((Bt, C4, hw4), lambda g: (g, 0, 0)),   # x4 (f32)
                pl.BlockSpec((Cmid, C1), lambda g: (0, 0)),         # W2 (bf16)
                pl.BlockSpec((Cmid, 1), lambda g: (0, 0)),          # b2
                pl.BlockSpec((Cmid, C4), lambda g: (0, 0)),         # W1 (f32)
                pl.BlockSpec((Cmid, 1), lambda g: (0, 0)),          # b1
                pl.BlockSpec((1, hw4), lambda g: (0, 0)),           # colmean(U)
                pl.BlockSpec((Cmid, nc), lambda g: (0, 0)),         # Wa^T
                pl.BlockSpec((1, nc), lambda g: (0, 0)),            # ba
                pl.BlockSpec((Cmid, nc), lambda g: (0, 0)),         # Wh^T
                pl.BlockSpec((1, nc), lambda g: (0, 0)),            # bh
            ],
            out_specs=pl.BlockSpec((1, Bt, nc), lambda g: (g, 0, 0)),
        ),
        compiler_params=pltpu.CompilerParams(
            # Batch-block axis is independent -> shards across TensorCores on
            # multi-TC chips (v7x); harmless on single-TC v5e/v6e.  (If a
            # future toolchain needs it, pltpu.CORE_PARALLEL is the fallback.)
            dimension_semantics=("parallel",),
            # Bt=4 f32 input blocks (double-buffered) exceed the v5e (16 MiB)
            # and v7x (32 MiB) scoped-VMEM defaults; 48 MiB fits the worst
            # case (~37 MiB) with headroom on v7x's 64 MiB physical VMEM.
            vmem_limit_bytes=48 * 1024 * 1024,
        ),
        cost_estimate=pl.CostEstimate(
            flops=flops, transcendentals=0, bytes_accessed=bytes_accessed),
    )(x1f, x4f, W2b, b2c, W1f, b1c, u, WaT, ba_r, WhT, bh_r)
    return out.reshape(B, nc)


# ----------------------------------------------------------------------------
# Pure-JAX reference mirroring the PyTorch control flow (f32, highest precision)
# ----------------------------------------------------------------------------
def reference_forward(x1, x4, params):
    W2, b2, W1, b1, Wa, ba, Wh, bh = params
    B, _, H, W = x1.shape
    _, _, h4, w4 = x4.shape
    nc = Wa.shape[0]
    hi = jax.lax.Precision.HIGHEST

    a = jax.nn.relu(jnp.einsum("bchw,oc->bohw", x1, W2, precision=hi)
                    + b2[None, :, None, None])
    y = jax.nn.relu(jnp.einsum("bchw,oc->bohw", x4, W1, precision=hi)
                    + b1[None, :, None, None])
    U_h = pt_bilinear_matrix(H, h4)
    U_w = pt_bilinear_matrix(W, w4)
    up = jnp.einsum("ip,jq,bcpq->bcij", U_h, U_w, y, precision=hi)
    z = a + up                                              # (B, 64, 56, 56)
    pooled = jnp.mean(z, axis=(2, 3))                       # AdaptiveAvgPool2d
    att = jnp.einsum("bc,oc->bo", pooled, Wa, precision=hi) + ba
    outs = []
    for i in range(nc):
        zi = z * att[:, i, None, None, None]                # x1_out[:, i]
        pi = jnp.mean(zi, axis=(2, 3))
        outs.append(jnp.einsum("bc,c->b", pi, Wh[i], precision=hi) + bh[i])
    return jnp.stack(outs, axis=-1)                         # (B, nc)


if __name__ == "__main__":
    num_classes = 4
    key = jax.random.PRNGKey(0)
    ks = jax.random.split(key, 10)

    # Deterministic synthetic parameters (shapes from the module __init__).
    W2 = jax.random.normal(ks[0], (64, 256), jnp.float32) / jnp.sqrt(256.0)
    b2 = jax.random.normal(ks[1], (64,), jnp.float32) * 0.01
    W1 = jax.random.normal(ks[2], (64, 2048), jnp.float32) / jnp.sqrt(2048.0)
    b1 = jax.random.normal(ks[3], (64,), jnp.float32) * 0.01
    Wa = jax.random.normal(ks[4], (num_classes, 64), jnp.float32) / 8.0
    ba = jax.random.normal(ks[5], (num_classes,), jnp.float32) * 0.01
    Wh = jax.random.normal(ks[6], (num_classes, 64), jnp.float32) / 8.0
    bh = jax.random.normal(ks[7], (num_classes,), jnp.float32) * 0.01
    params = (W2, b2, W1, b1, Wa, ba, Wh, bh)
    prepped = prepare_params(params)            # hoisted, once

    # Check 1: B=2 -> Bt=1, grid=(2,) (two steps so dual-TC chips both work).
    x1 = jax.random.normal(ks[8], (2, 256, 56, 56), jnp.float32)
    x4 = jax.random.normal(ks[9], (2, 2048, 7, 7), jnp.float32)
    out = jax.block_until_ready(base_cnn_forward(x1, x4, prepped))
    assert out.shape == (2, num_classes), out.shape
    ref = reference_forward(x1, x4, params)
    # Only the x1 operand is bf16 (f32 accumulation, x4 path fully f32), so the
    # tolerance is tighter than v1's 5e-2.
    assert jnp.allclose(out, ref, atol=2e-2, rtol=2e-2), (out, ref)

    # Check 2: B=4 -> Bt=2, grid=(2,): exercises the multi-batch-per-step path.
    kx = jax.random.split(ks[8], 2)
    x1b = jax.random.normal(kx[0], (4, 256, 56, 56), jnp.float32)
    x4b = jax.random.normal(kx[1], (4, 2048, 7, 7), jnp.float32)
    outb = jax.block_until_ready(base_cnn_forward(x1b, x4b, prepped))
    assert outb.shape == (4, num_classes), outb.shape
    refb = reference_forward(x1b, x4b, params)
    assert jnp.allclose(outb, refb, atol=2e-2, rtol=2e-2), (outb, refb)

    print("KERNEL_OK")
</pallas_src>

<mosaic_0001>
module attributes {stable_mosaic.version = 11 : i64} {
  func.func @fused_forward_kernel(%arg0: i32, %arg1: memref<1x256x3136xf32, #tpu.memory_space<vmem>>, %arg2: memref<1x2048x49xf32, #tpu.memory_space<vmem>>, %arg3: memref<64x256xbf16, #tpu.memory_space<vmem>>, %arg4: memref<64x1xf32, #tpu.memory_space<vmem>>, %arg5: memref<64x2048xf32, #tpu.memory_space<vmem>>, %arg6: memref<64x1xf32, #tpu.memory_space<vmem>>, %arg7: memref<1x49xf32, #tpu.memory_space<vmem>>, %arg8: memref<64x4xf32, #tpu.memory_space<vmem>>, %arg9: memref<1x4xf32, #tpu.memory_space<vmem>>, %arg10: memref<64x4xf32, #tpu.memory_space<vmem>>, %arg11: memref<1x4xf32, #tpu.memory_space<vmem>>, %arg12: memref<1x1x4xf32, #tpu.memory_space<vmem>>) attributes {dimension_semantics = [#tpu.dimension_semantics<parallel>], iteration_bounds = array<i64: 2>, scalar_prefetch = 0 : i64, scratch_operands = 0 : i64, tpu.core_type = #tpu.core_type<tc>, window_params = [{transform_indices = @transform_0, window_bounds = array<i64: 1, 256, 3136>}, {transform_indices = @transform_1, window_bounds = array<i64: 1, 2048, 49>}, {pipeline_mode = #tpu.pipeline_mode<synchronous>, transform_indices = @transform_2, window_bounds = array<i64: 64, 256>}, {pipeline_mode = #tpu.pipeline_mode<synchronous>, transform_indices = @transform_3, window_bounds = array<i64: 64, 1>}, {pipeline_mode = #tpu.pipeline_mode<synchronous>, transform_indices = @transform_4, window_bounds = array<i64: 64, 2048>}, {pipeline_mode = #tpu.pipeline_mode<synchronous>, transform_indices = @transform_5, window_bounds = array<i64: 64, 1>}, {pipeline_mode = #tpu.pipeline_mode<synchronous>, transform_indices = @transform_6, window_bounds = array<i64: 1, 49>}, {pipeline_mode = #tpu.pipeline_mode<synchronous>, transform_indices = @transform_7, window_bounds = array<i64: 64, 4>}, {pipeline_mode = #tpu.pipeline_mode<synchronous>, transform_indices = @transform_8, window_bounds = array<i64: 1, 4>}, {pipeline_mode = #tpu.pipeline_mode<synchronous>, transform_indices = @transform_9, window_bounds = array<i64: 64, 4>}, {pipeline_mode = #tpu.pipeline_mode<synchronous>, transform_indices = @transform_10, window_bounds = array<i64: 1, 4>}, {transform_indices = @transform_11, window_bounds = array<i64: 1, 1, 4>}]} {
    %c0 = arith.constant 0 : index
    %c0_0 = arith.constant 0 : index
    %0 = vector.load %arg3[%c0, %c0_0] : memref<64x256xbf16, #tpu.memory_space<vmem>>, vector<64x256xbf16>
    %c0_1 = arith.constant 0 : index
    %c0_2 = arith.constant 0 : index
    %c0_3 = arith.constant 0 : index
    %1 = vector.load %arg1[%c0_1, %c0_2, %c0_3] : memref<1x256x3136xf32, #tpu.memory_space<vmem>>, vector<1x256x3136xf32>
    %2 = vector.shape_cast %1 : vector<1x256x3136xf32> to vector<256x3136xf32>
    %3 = arith.truncf %2 : vector<256x3136xf32> to vector<256x3136xbf16>
    %cst = arith.constant dense<0.000000e+00> : vector<64x3136xf32>
    %4 = tpu.matmul %0, %3, %cst {dimension_numbers = #tpu.dot_dimension_numbers<[1], [0], [0], [1], [0, 0, 1, 1], [], []>} : vector<64x256xbf16>, vector<256x3136xbf16>, vector<64x3136xf32> -> vector<64x3136xf32>
    %c0_4 = arith.constant 0 : index
    %c0_5 = arith.constant 0 : index
    %5 = vector.load %arg4[%c0_4, %c0_5] : memref<64x1xf32, #tpu.memory_space<vmem>>, vector<64x1xf32>
    %6 = vector.broadcast %5 : vector<64x1xf32> to vector<64x3136xf32>
    %7 = arith.addf %4, %6 : vector<64x3136xf32>
    %cst_6 = arith.constant 0.000000e+00 : f32
    %8 = vector.broadcast %cst_6 : f32 to vector<64x3136xf32>
    %9 = arith.maximumf %7, %8 : vector<64x3136xf32>
    %cst_7 = arith.constant dense<0.000000e+00> : vector<64xf32>
    %10 = vector.multi_reduction <add>, %9, %cst_7 [1] : vector<64x3136xf32> to vector<64xf32>
    %11 = vector.shape_cast %10 : vector<64xf32> to vector<64x1xf32>
    %cst_8 = arith.constant 3.136000e+03 : f32
    %12 = vector.broadcast %cst_8 : f32 to vector<64x1xf32>
    %13 = arith.divf %11, %12 : vector<64x1xf32>
    %c0_9 = arith.constant 0 : index
    %c0_10 = arith.constant 0 : index
    %14 = vector.load %arg5[%c0_9, %c0_10] : memref<64x2048xf32, #tpu.memory_space<vmem>>, vector<64x2048xf32>
    %c0_11 = arith.constant 0 : index
    %c0_12 = arith.constant 0 : index
    %c0_13 = arith.constant 0 : index
    %15 = vector.load %arg2[%c0_11, %c0_12, %c0_13] : memref<1x2048x49xf32, #tpu.memory_space<vmem>>, vector<1x2048x49xf32>
    %16 = vector.shape_cast %15 : vector<1x2048x49xf32> to vector<2048x49xf32>
    %cst_14 = arith.constant dense<0.000000e+00> : vector<64x49xf32>
    %17 = tpu.matmul %14, %16, %cst_14 {dimension_numbers = #tpu.dot_dimension_numbers<[1], [0], [0], [1], [0, 0, 1, 1], [], []>} : vector<64x2048xf32>, vector<2048x49xf32>, vector<64x49xf32> -> vector<64x49xf32>
    %c0_15 = arith.constant 0 : index
    %c0_16 = arith.constant 0 : index
    %18 = vector.load %arg6[%c0_15, %c0_16] : memref<64x1xf32, #tpu.memory_space<vmem>>, vector<64x1xf32>
    %19 = vector.broadcast %18 : vector<64x1xf32> to vector<64x49xf32>
    %20 = arith.addf %17, %19 : vector<64x49xf32>
    %cst_17 = arith.constant 0.000000e+00 : f32
    %21 = vector.broadcast %cst_17 : f32 to vector<64x49xf32>
    %22 = arith.maximumf %20, %21 : vector<64x49xf32>
    %c0_18 = arith.constant 0 : index
    %c0_19 = arith.constant 0 : index
    %23 = vector.load %arg7[%c0_18, %c0_19] : memref<1x49xf32, #tpu.memory_space<vmem>>, vector<1x49xf32>
    %24 = vector.broadcast %23 : vector<1x49xf32> to vector<64x49xf32>
    %25 = arith.mulf %22, %24 : vector<64x49xf32>
    %cst_20 = arith.constant dense<0.000000e+00> : vector<64xf32>
    %26 = vector.multi_reduction <add>, %25, %cst_20 [1] : vector<64x49xf32> to vector<64xf32>
    %27 = vector.shape_cast %26 : vector<64xf32> to vector<64x1xf32>
    %28 = arith.addf %13, %27 : vector<64x1xf32>
    %c0_21 = arith.constant 0 : index
    %c0_22 = arith.constant 0 : index
    %29 = vector.load %arg8[%c0_21, %c0_22] : memref<64x4xf32, #tpu.memory_space<vmem>>, vector<64x4xf32>
    %30 = vector.broadcast %28 : vector<64x1xf32> to vector<64x4xf32>
    %31 = arith.mulf %29, %30 : vector<64x4xf32>
    %cst_23 = arith.constant dense<0.000000e+00> : vector<4xf32>
    %32 = vector.multi_reduction <add>, %31, %cst_23 [0] : vector<64x4xf32> to vector<4xf32>
    %33 = vector.shape_cast %32 : vector<4xf32> to vector<1x4xf32>
    %c0_24 = arith.constant 0 : index
    %c0_25 = arith.constant 0 : index
    %34 = vector.load %arg9[%c0_24, %c0_25] : memref<1x4xf32, #tpu.memory_space<vmem>>, vector<1x4xf32>
    %35 = arith.addf %33, %34 : vector<1x4xf32>
    %c0_26 = arith.constant 0 : index
    %c0_27 = arith.constant 0 : index
    %36 = vector.load %arg10[%c0_26, %c0_27] : memref<64x4xf32, #tpu.memory_space<vmem>>, vector<64x4xf32>
    %37 = vector.broadcast %28 : vector<64x1xf32> to vector<64x4xf32>
    %38 = arith.mulf %36, %37 : vector<64x4xf32>
    %cst_28 = arith.constant dense<0.000000e+00> : vector<4xf32>
    %39 = vector.multi_reduction <add>, %38, %cst_28 [0] : vector<64x4xf32> to vector<4xf32>
    %40 = vector.shape_cast %39 : vector<4xf32> to vector<1x4xf32>
    %41 = arith.mulf %35, %40 : vector<1x4xf32>
    %c0_29 = arith.constant 0 : index
    %c0_30 = arith.constant 0 : index
    %42 = vector.load %arg11[%c0_29, %c0_30] : memref<1x4xf32, #tpu.memory_space<vmem>>, vector<1x4xf32>
    %43 = arith.addf %41, %42 : vector<1x4xf32>
    %44 = vector.shape_cast %43 : vector<1x4xf32> to vector<1x1x4xf32>
    %c0_31 = arith.constant 0 : index
    %c0_32 = arith.constant 0 : index
    %c0_33 = arith.constant 0 : index
    %45 = vector.load %arg12[%c0_31, %c0_32, %c0_33] : memref<1x1x4xf32, #tpu.memory_space<vmem>>, vector<1x1x4xf32>
    tpu.vector_store %arg12[%c0_31, %c0_32, %c0_33], %44 {strides = array<i32>} : memref<1x1x4xf32, #tpu.memory_space<vmem>>, vector<1x1x4xf32>,
    return
  }
  func.func @transform_0(%arg0: i32) -> (i32, i32, i32) {
    %c0_i32 = arith.constant 0 : i32
    %c0_i32_0 = arith.constant 0 : i32
    %c0_i32_1 = arith.constant 0 : i32
    return %arg0, %c0_i32, %c0_i32_0 : i32, i32, i32
  }
  func.func @transform_1(%arg0: i32) -> (i32, i32, i32) {
    %c0_i32 = arith.constant 0 : i32
    %c0_i32_0 = arith.constant 0 : i32
    %c0_i32_1 = arith.constant 0 : i32
    return %arg0, %c0_i32, %c0_i32_0 : i32, i32, i32
  }
  func.func @transform_2(%arg0: i32) -> (i32, i32) {
    %c0_i32 = arith.constant 0 : i32
    %c0_i32_0 = arith.constant 0 : i32
    %c0_i32_1 = arith.constant 0 : i32
    return %c0_i32, %c0_i32_0 : i32, i32
  }
  func.func @transform_3(%arg0: i32) -> (i32, i32) {
    %c0_i32 = arith.constant 0 : i32
    %c0_i32_0 = arith.constant 0 : i32
    %c0_i32_1 = arith.constant 0 : i32
    return %c0_i32, %c0_i32_0 : i32, i32
  }
  func.func @transform_4(%arg0: i32) -> (i32, i32) {
    %c0_i32 = arith.constant 0 : i32
    %c0_i32_0 = arith.constant 0 : i32
    %c0_i32_1 = arith.constant 0 : i32
    return %c0_i32, %c0_i32_0 : i32, i32
  }
  func.func @transform_5(%arg0: i32) -> (i32, i32) {
    %c0_i32 = arith.constant 0 : i32
    %c0_i32_0 = arith.constant 0 : i32
    %c0_i32_1 = arith.constant 0 : i32
    return %c0_i32, %c0_i32_0 : i32, i32
  }
  func.func @transform_6(%arg0: i32) -> (i32, i32) {
    %c0_i32 = arith.constant 0 : i32
    %c0_i32_0 = arith.constant 0 : i32
    %c0_i32_1 = arith.constant 0 : i32
    return %c0_i32, %c0_i32_0 : i32, i32
  }
  func.func @transform_7(%arg0: i32) -> (i32, i32) {
    %c0_i32 = arith.constant 0 : i32
    %c0_i32_0 = arith.constant 0 : i32
    %c0_i32_1 = arith.constant 0 : i32
    return %c0_i32, %c0_i32_0 : i32, i32
  }
  func.func @transform_8(%arg0: i32) -> (i32, i32) {
    %c0_i32 = arith.constant 0 : i32
    %c0_i32_0 = arith.constant 0 : i32
    %c0_i32_1 = arith.constant 0 : i32
    return %c0_i32, %c0_i32_0 : i32, i32
  }
  func.func @transform_9(%arg0: i32) -> (i32, i32) {
    %c0_i32 = arith.constant 0 : i32
    %c0_i32_0 = arith.constant 0 : i32
    %c0_i32_1 = arith.constant 0 : i32
    return %c0_i32, %c0_i32_0 : i32, i32
  }
  func.func @transform_10(%arg0: i32) -> (i32, i32) {
    %c0_i32 = arith.constant 0 : i32
    %c0_i32_0 = arith.constant 0 : i32
    %c0_i32_1 = arith.constant 0 : i32
    return %c0_i32, %c0_i32_0 : i32, i32
  }
  func.func @transform_11(%arg0: i32) -> (i32, i32, i32) {
    %c0_i32 = arith.constant 0 : i32
    %c0_i32_0 = arith.constant 0 : i32
    %c0_i32_1 = arith.constant 0 : i32
    return %arg0, %c0_i32, %c0_i32_0 : i32, i32, i32
  }
}

</mosaic_0001>

<bundles_post_ra>
// kernel: base_cnn_forward.1
= control target key start
LH: loop header
LB: loop body
LE: loop exit
PB: predicated region body
PF: predicated region fallthrough
CT: control target
= control target key end

     0   :  { %s8353_s0 = inlined_call_operand.vmem [shape: f32[2,256,3136], index: 0, kind: input, shape index: {}]   ;;  %s8354_s1 = inlined_call_operand.vmem [shape: f32[2,2048,49], index: 1, kind: input, shape index: {}]   ;;  %s8355_s2 = inlined_call_operand.vmem [shape: bf16[64,256], index: 2, kind: input, shape index: {}]   ;;  %s8356_s3 = inlined_call_operand.vmem [shape: f32[64,1], index: 3, kind: input, shape index: {}]   ;;  %s8357_s4 = inlined_call_operand.vmem [shape: f32[64,2048], index: 4, kind: input, shape index: {}]   ;;  %s8358_s5 = inlined_call_operand.vmem [shape: f32[64,1], index: 5, kind: input, shape index: {}]   ;;  %s8359_s6 = inlined_call_operand.vmem [shape: f32[1,49], index: 6, kind: input, shape index: {}]   ;;  %s8360_s7 = inlined_call_operand.vmem [shape: f32[64,4], index: 7, kind: input, shape index: {}]   ;;  %s8361_s8 = inlined_call_operand.vmem [shape: f32[1,4], index: 8, kind: input, shape index: {}]   ;;  %s8362_s9 = inlined_call_operand.vmem [shape: f32[64,4], index: 9, kind: input, shape index: {}]   ;;  %s8363_s10 = inlined_call_operand.vmem [shape: f32[1,4], index: 10, kind: input, shape index: {}]   ;;  %s8364_s11 = inlined_call_operand.hbm [shape: f32[2,1,4], index: 11, kind: output, shape index: {}]  }
   0x1   :  { %8370 = sst [smem:[#allocation22_spill]] %s8353_s0 }
   0x2   :  { %8371 = sst [smem:[#allocation23_spill]] %s8354_s1 }
   0x3   :  { %16 = vsyncpa [#allocation3], 0 }
   0x4   :  { %18 = vsyncpa [#allocation3 + $0x1], 0  ;;  %s5301_s17 = smov 0   ;;  %s5303_s18 = smov 0  }
   0x5   :  { %s5305_s19 = smov 0   ;;  %s5307_s20 = smov 0  }
   0x6 LB: > { %s5322_s21 = sadd.s32 4294967295, %s5237_s20   ;;  %s4558_s22 = sadd.s32 4294967294, %s5237_s20   ;;  %s5237_s20 = sphi %s5307_s20, %s8444_s20   ;;  %s5233_s19 = sphi %s5305_s19, %s8443_s19   ;;  %s5229_s18 = sphi %s5303_s18, %s8442_s18   ;;  %s5225_s17 = sphi %s5301_s17, %s8441_s17  }
   0x7   : > { %s5326_s23 = sadd.s32 1, %s5237_s20   ;;  %s272_s24 = sadd.s32 1, %s5233_s19 }
   0x8   : > { %s269_s25 = ssub.s32 %s5237_s20, %s5326_s23  ;;  %p282_p0 = scmp.ne.s32.totalorder %s5233_s19, %s5229_s18 }
   0x9   : > { %p270_p1 = scmp.eq.s32.totalorder %s269_s25, 0  ;;  %p283_p2 = scmp.eq.s32.totalorder %s5322_s21, 1 }
   0xa   : > { %p288_p3 = scmp.ne.s32.totalorder %s5229_s18, %s5225_s17  ;;  %p289_p4 = scmp.eq.s32.totalorder %s4558_s22, 1 }
   0xb   : > { %s5337_s26 = scalar_select %p270_p1, %s5233_s19, %s272_s24  }
   0xc   : > { %p5339_p5 = por %p283_p2, %p282_p0  ;;  %p5343_p6 = por %p289_p4, %p288_p3 }
   0xd   : > { %p4561_p7 = scmp.ge.s32.totalorder %s5237_s20, 1  ;;  %p350_p8 = scmp.lt.s32.totalorder %s5237_s20, 3 }
   0xf   : > { %p351_p9 = pnand %p4561_p7, %p350_p8 }
  0x11   : > { %354 = sbr.rel (%p351_p9) target bundleno = 1043 (0x413), region = 64 }
  0x16   : > { %p394_p10 = scmp.lt.s32.totalorder %s5322_s21, 1  ;;  %v5353_v0 = vld [vmem:[%s8355_s2 + $0x4] ss:$8 sps:$4 sm:$0xff]   ;;  %s8374_s0 = sld [smem:[#allocation22_spill]]  ;;  %v5239_v35 = vmov 0   ;;  %vm2865_vm0 = vcmask 523264  }
  0x17   : > { %1733 = vmatprep.mubr.bf16.mxu0 %v5353_v0  ;;  %1806 = vmatprep.mubr.bf16.mxu1 %v5353_v0  ;;  %s8377_s1 = sld [smem:[#allocation23_spill]]  ;;  %vm4363_vm1 = vcmask 400384   ;;  %vm4412_vm2 = vcmask 31744   ;;  %vm4476_vm3 = vcmask 24576   ;;  %s5240_s29 = smov [#allocation2]  }
  0x18   : > { %s5356_s12 = scalar_select %p394_p10, %s5322_s21, 1  ;;  %5139 = vset.pattern.permute.xlu0 %v5239_v35  ;;  %5140 = vset.pattern.permute.xlu1 %v5239_v35 }
  0x19   : > { %s5181_s30 = sshll.u32 %s5240_s29, 4  ;;  %s5182_s30 = int_to_ptr.vmem [resolvable:$false] %s5181_s30 }
  0x1a   : > { %s5098_s13 = smul.u32 6400, %s5356_s12  ;;  %s4577_s14 = sshll.u32 %s5356_s12, 11 }
  0x1b   : > { %s392_s12 = sand.u32 1, %s5229_s18  }
  0x1c   : > { %s5364_s16 = scalar_lea.vmem %s8374_s0, %s5098_s13  ;;  %s4574_s13 = sshll.u32 %s5322_s21, 4 }
  0x1d   : > { %v764_v1 = vld [vmem:[%s5364_s16 + $0xaf8] sm:$0xff]  ;;  %v789_v2 = vld [vmem:[%s5364_s16 + $0xbc0] sm:$0xff]  ;;  %v766_v3 = vld [vmem:[%s5364_s16 + $0xb08] sm:$0xff]  ;;  %s6683_s24 = scalar_lea.vmem %s8377_s1, %s4577_s14  ;;  %s393_s14 = scalar_lea.vmem [#allocation2], %s392_s12 }
  0x1e   : > { %v1389_v4 = vpack.c.bf16 %v789_v2, %v764_v1  ;;  %v791_v5 = vld [vmem:[%s5364_s16 + $0xbd0] sm:$0xff]  ;;  %v788_v7 = vld [vmem:[%s5364_s16 + $0xbb8] sm:$0xff]  ;;  %v765_v10 = vld [vmem:[%s5364_s16 + $0xb00] sm:$0xff]  ;;  %s4491_s15 = sshll.u32 %s393_s14, 4  ;;  %s4489_s0 = scalar_lea.hbm %s8364_s11, %s4574_s13  ;;  %s4492_s15 = int_to_ptr.vmem [resolvable:$true] %s4491_s15 }
  0x1f   : > { %v763_v6 = vld [vmem:[%s5364_s16 + $0xaf0] sm:$0xff]  ;;  %v1391_v8 = vpack.c.bf16 %v791_v5, %v766_v3  ;;  %v790_v11 = vld [vmem:[%s5364_s16 + $0xbc8] sm:$0xff]  ;;  %v716_v15 = vld [vmem:[%s5364_s16 + $0x978] sm:$0xff]  ;;  %s5177_s25 = scalar_lea.vmem %s4492_s15, 16  ;;  %s5183_s21 = scalar_lea.vmem %s5182_s30, 32 }
  0x20   : > { %v1388_v9 = vpack.c.bf16 %v788_v7, %v763_v6  ;;  %v714_v12 = vld [vmem:[%s5364_s16 + $0x968] sm:$0xff]  ;;  %1701 = vmatprep.subr.bf16.mxu0 %v1389_v4  ;;  %v1390_v13 = vpack.c.bf16 %v790_v11, %v765_v10  ;;  %v739_v14 = vld [vmem:[%s5364_s16 + $0xa30] sm:$0xff]  ;;  %v741_v16 = vld [vmem:[%s5364_s16 + $0xa40] sm:$0xff]  ;;  %p5178_p11 = scmp.ne.s32.totalorder %s4492_s15, %s5177_s25  ;;  %p5184_p0 = scmp.lt.s32.totalorder %s4492_s15, %s5182_s30 }
  0x21   : > { %1774 = vmatprep.subr.bf16.mxu1 %v1391_v8  ;;  %v1364_v17 = vpack.c.bf16 %v739_v14, %v714_v12  ;;  %v1366_v18 = vpack.c.bf16 %v741_v16, %v716_v15  ;;  %v713_v19 = vld [vmem:[%s5364_s16 + $0x960] sm:$0xff]  ;;  %v738_v20 = vld [vmem:[%s5364_s16 + $0xa28] sm:$0xff]  ;;  %v715_v21 = vld [vmem:[%s5364_s16 + $0x970] sm:$0xff]  ;;  %p5185_p1 = scmp.lt.s32.totalorder %s5183_s21, %s5177_s25 }
  0x22   : > { %1702 = vmatpush1.bf16.msra.mxu0 %v1388_v9  ;;  %1775 = vmatpush1.bf16.msra.mxu1 %v1390_v13  ;;  %v1363_v22 = vpack.c.bf16 %v738_v20, %v713_v19  ;;  %v740_v23 = vld [vmem:[%s5364_s16 + $0xa38] sm:$0xff]  ;;  %v689_v25 = vld [vmem:[%s5364_s16 + $0x8a0] sm:$0xff]  ;;  %v666_v28 = vld [vmem:[%s5364_s16 + $0x7e8] sm:$0xff]  ;;  %p5179_p12 = pnand %p5178_p11, %p5339_p5 }
  0x23   : > { %v664_v24 = vld [vmem:[%s5364_s16 + $0x7d8] sm:$0xff]  ;;  %1703 = vmatprep.subr.bf16.mxu0 %v1364_v17  ;;  %1776 = vmatprep.subr.bf16.mxu1 %v1366_v18  ;;  %v1365_v26 = vpack.c.bf16 %v740_v23, %v715_v21  ;;  %v691_v29 = vld [vmem:[%s5364_s16 + $0x8b0] sm:$0xff]  ;;  %v665_v33 = vld [vmem:[%s5364_s16 + $0x7e0] sm:$0xff]  ;;  %p5186_p2 = por %p5185_p1, %p5184_p0 }
  0x24   : > { %v1339_v27 = vpack.c.bf16 %v689_v25, %v664_v24  ;;  %v663_v30 = vld [vmem:[%s5364_s16 + $0x7d0] sm:$0xff]  ;;  %v1341_v31 = vpack.c.bf16 %v691_v29, %v666_v28  ;;  %v688_v32 = vld [vmem:[%s5364_s16 + $0x898] sm:$0xff]  ;;  %v690_v34 = vld [vmem:[%s5364_s16 + $0x8a8] sm:$0xff]  ;;  %p5180_p13 = pneg %p5179_p12 }
  0x25   : > { %v1338_v36 = vpack.c.bf16 %v688_v32, %v663_v30  ;;  %v614_v37 = vld [vmem:[%s5364_s16 + $0x648] sm:$0xff]  ;;  %v639_v38 = vld [vmem:[%s5364_s16 + $0x710] sm:$0xff]  ;;  %v616_v39 = vld [vmem:[%s5364_s16 + $0x658] sm:$0xff]  ;;  %v1340_v40 = vpack.c.bf16 %v690_v34, %v665_v33 }
  0x26   : > { %1704 = vmatpush1.bf16.msra.mxu0 %v1363_v22  ;;  %1777 = vmatpush1.bf16.msra.mxu1 %v1365_v26  ;;  %v1314_v41 = vpack.c.bf16 %v639_v38, %v614_v37  ;;  %v641_v42 = vld [vmem:[%s5364_s16 + $0x720] sm:$0xff]  ;;  %v638_v44 = vld [vmem:[%s5364_s16 + $0x708] sm:$0xff]  ;;  %v615_v46 = vld [vmem:[%s5364_s16 + $0x650] sm:$0xff]  ;;  %p5187_p3 = pnand %p5186_p2, %p5180_p13 }
  0x27   : > { %1705 = vmatprep.subr.bf16.mxu0 %v1339_v27  ;;  %v613_v43 = vld [vmem:[%s5364_s16 + $0x640] sm:$0xff]  ;;  %1778 = vmatprep.subr.bf16.mxu1 %v1341_v31  ;;  %v1316_v45 = vpack.c.bf16 %v641_v42, %v616_v39  ;;  %v640_v47 = vld [vmem:[%s5364_s16 + $0x718] sm:$0xff]  ;;  %v566_v50 = vld [vmem:[%s5364_s16 + $0x4c8] sm:$0xff] }
  0x28   : > { %v564_v48 = vld [vmem:[%s5364_s16 + $0x4b8] sm:$0xff]  ;;  %v589_v49 = vld [vmem:[%s5364_s16 + $0x580] sm:$0xff]  ;;  %v591_v51 = vld [vmem:[%s5364_s16 + $0x590] sm:$0xff]  ;;  %v1313_v52 = vpack.c.bf16 %v638_v44, %v613_v43  ;;  %v1315_v53 = vpack.c.bf16 %v640_v47, %v615_v46 }
  0x29   : > { %v1289_v54 = vpack.c.bf16 %v589_v49, %v564_v48  ;;  %v563_v55 = vld [vmem:[%s5364_s16 + $0x4b0] sm:$0xff]  ;;  %v588_v56 = vld [vmem:[%s5364_s16 + $0x578] sm:$0xff]  ;;  %v565_v57 = vld [vmem:[%s5364_s16 + $0x4c0] sm:$0xff]  ;;  %v1291_v58 = vpack.c.bf16 %v591_v51, %v566_v50 }
  0x2a   : > { %1706 = vmatpush1.bf16.msra.mxu0 %v1338_v36  ;;  %1779 = vmatpush1.bf16.msra.mxu1 %v1340_v40  ;;  %v590_v59 = vld [vmem:[%s5364_s16 + $0x588] sm:$0xff]  ;;  %v539_v61 = vld [vmem:[%s5364_s16 + $0x3f0] sm:$0xff]  ;;  %v516_v62 = vld [vmem:[%s5364_s16 + $0x338] sm:$0xff]  ;;  %v1288_v1 = vpack.c.bf16 %v588_v56, %v563_v55 }
  0x2b   : > { %1707 = vmatprep.subr.bf16.mxu0 %v1314_v41  ;;  %1780 = vmatprep.subr.bf16.mxu1 %v1316_v45  ;;  %v514_v60 = vld [vmem:[%s5364_s16 + $0x328] sm:$0xff]  ;;  %v541_v63 = vld [vmem:[%s5364_s16 + $0x400] sm:$0xff]  ;;  %v1290_v2 = vpack.c.bf16 %v590_v59, %v565_v57  ;;  %v515_v6 = vld [vmem:[%s5364_s16 + $0x330] sm:$0xff] }
  0x2c   : > { %v1264_v3 = vpack.c.bf16 %v539_v61, %v514_v60  ;;  %v513_v4 = vld [vmem:[%s5364_s16 + $0x320] sm:$0xff]  ;;  %v538_v5 = vld [vmem:[%s5364_s16 + $0x3e8] sm:$0xff]  ;;  %v1266_v7 = vpack.c.bf16 %v541_v63, %v516_v62  ;;  %v540_v8 = vld [vmem:[%s5364_s16 + $0x3f8] sm:$0xff] }
  0x2d   : > { %v464_v9 = vld [vmem:[%s5364_s16 + $0x198] sm:$0xff]  ;;  %v489_v10 = vld [vmem:[%s5364_s16 + $0x260] sm:$0xff]  ;;  %v466_v11 = vld [vmem:[%s5364_s16 + $0x1a8] sm:$0xff]  ;;  %v1263_v13 = vpack.c.bf16 %v538_v5, %v513_v4  ;;  %v1265_v14 = vpack.c.bf16 %v540_v8, %v515_v6 }
  0x2e   : > { %1708 = vmatpush1.bf16.msra.mxu0 %v1313_v52  ;;  %1781 = vmatpush1.bf16.msra.mxu1 %v1315_v53  ;;  %v491_v12 = vld [vmem:[%s5364_s16 + $0x270] sm:$0xff]  ;;  %v1239_v15 = vpack.c.bf16 %v489_v10, %v464_v9  ;;  %v488_v17 = vld [vmem:[%s5364_s16 + $0x258] sm:$0xff]  ;;  %v465_v18 = vld [vmem:[%s5364_s16 + $0x1a0] sm:$0xff] }
  0x2f   : > { %1709 = vmatprep.subr.bf16.mxu0 %v1289_v54  ;;  %1782 = vmatprep.subr.bf16.mxu1 %v1291_v58  ;;  %v463_v16 = vld [vmem:[%s5364_s16 + $0x190] sm:$0xff]  ;;  %v1241_v19 = vpack.c.bf16 %v491_v12, %v466_v11  ;;  %v490_v20 = vld [vmem:[%s5364_s16 + $0x268] sm:$0xff]  ;;  %v416_v23 = vld [vmem:[%s5364_s16 + $0x18] sm:$0xff] }
  0x30   : > { %v414_v21 = vld [vmem:[%s5364_s16 + $0x8] sm:$0xff]  ;;  %v439_v22 = vld [vmem:[%s5364_s16 + $0xd0] sm:$0xff]  ;;  %v441_v24 = vld [vmem:[%s5364_s16 + $0xe0] sm:$0xff]  ;;  %v1238_v25 = vpack.c.bf16 %v488_v17, %v463_v16  ;;  %v1240_v26 = vpack.c.bf16 %v490_v20, %v465_v18 }
  0x31   : > { %v1214_v27 = vpack.c.bf16 %v439_v22, %v414_v21  ;;  %v413_v28 = vld [vmem:[%s5364_s16] sm:$0xff]  ;;  %v438_v29 = vld [vmem:[%s5364_s16 + $0xc8] sm:$0xff]  ;;  %v415_v30 = vld [vmem:[%s5364_s16 + $0x10] sm:$0xff]  ;;  %v1216_v31 = vpack.c.bf16 %v441_v24, %v416_v23 }
  0x32   : > { %1710 = vmatpush1.bf16.msra.mxu0 %v1288_v1  ;;  %1783 = vmatpush1.bf16.msra.mxu1 %v1290_v2  ;;  %v440_v32 = vld [vmem:[%s5364_s16 + $0xd8] sm:$0xff]  ;;  %v1189_v34 = vld [vmem:[%s5364_s16 + $0x1840] sm:$0xff]  ;;  %v1166_v35 = vld [vmem:[%s5364_s16 + $0x1788] sm:$0xff]  ;;  %v1213_v37 = vpack.c.bf16 %v438_v29, %v413_v28 }
  0x33   : > { %1711 = vmatprep.subr.bf16.mxu0 %v1264_v3  ;;  %1784 = vmatprep.subr.bf16.mxu1 %v1266_v7  ;;  %v1164_v33 = vld [vmem:[%s5364_s16 + $0x1778] sm:$0xff]  ;;  %v1191_v36 = vld [vmem:[%s5364_s16 + $0x1850] sm:$0xff]  ;;  %v1215_v38 = vpack.c.bf16 %v440_v32, %v415_v30  ;;  %v1165_v42 = vld [vmem:[%s5364_s16 + $0x1780] sm:$0xff] }
  0x34   : > { %v1589_v39 = vpack.c.bf16 %v1189_v34, %v1164_v33  ;;  %v1163_v40 = vld [vmem:[%s5364_s16 + $0x1770] sm:$0xff]  ;;  %v1188_v41 = vld [vmem:[%s5364_s16 + $0x1838] sm:$0xff]  ;;  %v1591_v43 = vpack.c.bf16 %v1191_v36, %v1166_v35  ;;  %v1190_v44 = vld [vmem:[%s5364_s16 + $0x1848] sm:$0xff] }
  0x35   : > { %v1114_v45 = vld [vmem:[%s5364_s16 + $0x15e8] sm:$0xff]  ;;  %v1139_v46 = vld [vmem:[%s5364_s16 + $0x16b0] sm:$0xff]  ;;  %v1116_v47 = vld [vmem:[%s5364_s16 + $0x15f8] sm:$0xff]  ;;  %v1588_v49 = vpack.c.bf16 %v1188_v41, %v1163_v40  ;;  %v1590_v50 = vpack.c.bf16 %v1190_v44, %v1165_v42 }
  0x36   : > { %1712 = vmatpush1.bf16.msra.mxu0 %v1263_v13  ;;  %1785 = vmatpush1.bf16.msra.mxu1 %v1265_v14  ;;  %v1141_v48 = vld [vmem:[%s5364_s16 + $0x16c0] sm:$0xff]  ;;  %v1564_v51 = vpack.c.bf16 %v1139_v46, %v1114_v45  ;;  %v1138_v53 = vld [vmem:[%s5364_s16 + $0x16a8] sm:$0xff]  ;;  %v1115_v54 = vld [vmem:[%s5364_s16 + $0x15f0] sm:$0xff] }
  0x37   : > { %1713 = vmatprep.subr.bf16.mxu0 %v1239_v15  ;;  %1786 = vmatprep.subr.bf16.mxu1 %v1241_v19  ;;  %v1113_v52 = vld [vmem:[%s5364_s16 + $0x15e0] sm:$0xff]  ;;  %v1566_v55 = vpack.c.bf16 %v1141_v48, %v1116_v47  ;;  %v1140_v56 = vld [vmem:[%s5364_s16 + $0x16b8] sm:$0xff]  ;;  %v1066_v59 = vld [vmem:[%s5364_s16 + $0x1468] sm:$0xff] }
  0x38   : > { %v1064_v57 = vld [vmem:[%s5364_s16 + $0x1458] sm:$0xff]  ;;  %v1089_v58 = vld [vmem:[%s5364_s16 + $0x1520] sm:$0xff]  ;;  %v1091_v60 = vld [vmem:[%s5364_s16 + $0x1530] sm:$0xff]  ;;  %v1563_v61 = vpack.c.bf16 %v1138_v53, %v1113_v52  ;;  %v1565_v62 = vpack.c.bf16 %v1140_v56, %v1115_v54 }
  0x39   : > { %v1539_v63 = vpack.c.bf16 %v1089_v58, %v1064_v57  ;;  %v1063_v1 = vld [vmem:[%s5364_s16 + $0x1450] sm:$0xff]  ;;  %v1088_v2 = vld [vmem:[%s5364_s16 + $0x1518] sm:$0xff]  ;;  %v1065_v3 = vld [vmem:[%s5364_s16 + $0x1460] sm:$0xff]  ;;  %v1541_v4 = vpack.c.bf16 %v1091_v60, %v1066_v59 }
  0x3a   : > { %1714 = vmatpush1.bf16.msra.mxu0 %v1238_v25  ;;  %1787 = vmatpush1.bf16.msra.mxu1 %v1240_v26  ;;  %v1090_v5 = vld [vmem:[%s5364_s16 + $0x1528] sm:$0xff]  ;;  %v1039_v7 = vld [vmem:[%s5364_s16 + $0x1390] sm:$0xff]  ;;  %v1016_v8 = vld [vmem:[%s5364_s16 + $0x12d8] sm:$0xff]  ;;  %v1538_v10 = vpack.c.bf16 %v1088_v2, %v1063_v1 }
  0x3b   : > { %1715 = vmatprep.subr.bf16.mxu0 %v1214_v27  ;;  %1788 = vmatprep.subr.bf16.mxu1 %v1216_v31  ;;  %v1014_v6 = vld [vmem:[%s5364_s16 + $0x12c8] sm:$0xff]  ;;  %v1041_v9 = vld [vmem:[%s5364_s16 + $0x13a0] sm:$0xff]  ;;  %v1540_v11 = vpack.c.bf16 %v1090_v5, %v1065_v3  ;;  %v1015_v15 = vld [vmem:[%s5364_s16 + $0x12d0] sm:$0xff] }
  0x3c   : > { %v1514_v12 = vpack.c.bf16 %v1039_v7, %v1014_v6  ;;  %v1013_v13 = vld [vmem:[%s5364_s16 + $0x12c0] sm:$0xff]  ;;  %v1038_v14 = vld [vmem:[%s5364_s16 + $0x1388] sm:$0xff]  ;;  %v1516_v16 = vpack.c.bf16 %v1041_v9, %v1016_v8  ;;  %v1040_v17 = vld [vmem:[%s5364_s16 + $0x1398] sm:$0xff] }
  0x3d   : > { %v964_v18 = vld [vmem:[%s5364_s16 + $0x1138] sm:$0xff]  ;;  %v989_v19 = vld [vmem:[%s5364_s16 + $0x1200] sm:$0xff]  ;;  %v966_v20 = vld [vmem:[%s5364_s16 + $0x1148] sm:$0xff]  ;;  %v1513_v22 = vpack.c.bf16 %v1038_v14, %v1013_v13  ;;  %v1515_v23 = vpack.c.bf16 %v1040_v17, %v1015_v15 }
  0x3e   : > { %1716 = vmatpush1.bf16.msra.mxu0 %v1213_v37  ;;  %1789 = vmatpush1.bf16.msra.mxu1 %v1215_v38  ;;  %v991_v21 = vld [vmem:[%s5364_s16 + $0x1210] sm:$0xff]  ;;  %v1489_v24 = vpack.c.bf16 %v989_v19, %v964_v18  ;;  %v988_v26 = vld [vmem:[%s5364_s16 + $0x11f8] sm:$0xff]  ;;  %v965_v27 = vld [vmem:[%s5364_s16 + $0x1140] sm:$0xff] }
  0x3f   : > { %1717 = vmatprep.subr.bf16.mxu0 %v1589_v39  ;;  %1790 = vmatprep.subr.bf16.mxu1 %v1591_v43  ;;  %v963_v25 = vld [vmem:[%s5364_s16 + $0x1130] sm:$0xff]  ;;  %v1491_v28 = vpack.c.bf16 %v991_v21, %v966_v20  ;;  %v990_v29 = vld [vmem:[%s5364_s16 + $0x1208] sm:$0xff]  ;;  %v916_v32 = vld [vmem:[%s5364_s16 + $0xfb8] sm:$0xff] }
  0x40   : > { %v914_v30 = vld [vmem:[%s5364_s16 + $0xfa8] sm:$0xff]  ;;  %v939_v31 = vld [vmem:[%s5364_s16 + $0x1070] sm:$0xff]  ;;  %v941_v33 = vld [vmem:[%s5364_s16 + $0x1080] sm:$0xff]  ;;  %v1488_v34 = vpack.c.bf16 %v988_v26, %v963_v25  ;;  %v1490_v35 = vpack.c.bf16 %v990_v29, %v965_v27 }
  0x41   : > { %v1464_v36 = vpack.c.bf16 %v939_v31, %v914_v30  ;;  %v913_v37 = vld [vmem:[%s5364_s16 + $0xfa0] sm:$0xff]  ;;  %v938_v38 = vld [vmem:[%s5364_s16 + $0x1068] sm:$0xff]  ;;  %v915_v39 = vld [vmem:[%s5364_s16 + $0xfb0] sm:$0xff]  ;;  %v1466_v40 = vpack.c.bf16 %v941_v33, %v916_v32 }
  0x42   : > { %1718 = vmatpush2.bf16.msra.mxu0 %v1588_v49  ;;  %1791 = vmatpush2.bf16.msra.mxu1 %v1590_v50  ;;  %v940_v41 = vld [vmem:[%s5364_s16 + $0x1078] sm:$0xff]  ;;  %v889_v43 = vld [vmem:[%s5364_s16 + $0xee0] sm:$0xff]  ;;  %v866_v44 = vld [vmem:[%s5364_s16 + $0xe28] sm:$0xff]  ;;  %v1463_v46 = vpack.c.bf16 %v938_v38, %v913_v37 }
  0x43   : > { %1719 = vmatprep.subr.bf16.mxu0 %v1564_v51  ;;  %1792 = vmatprep.subr.bf16.mxu1 %v1566_v55  ;;  %v864_v42 = vld [vmem:[%s5364_s16 + $0xe18] sm:$0xff]  ;;  %v891_v45 = vld [vmem:[%s5364_s16 + $0xef0] sm:$0xff]  ;;  %v1465_v47 = vpack.c.bf16 %v940_v41, %v915_v39  ;;  %v865_v51 = vld [vmem:[%s5364_s16 + $0xe20] sm:$0xff] }
  0x44   : > { %v1439_v48 = vpack.c.bf16 %v889_v43, %v864_v42  ;;  %v863_v49 = vld [vmem:[%s5364_s16 + $0xe10] sm:$0xff]  ;;  %v888_v50 = vld [vmem:[%s5364_s16 + $0xed8] sm:$0xff]  ;;  %v1441_v52 = vpack.c.bf16 %v891_v45, %v866_v44  ;;  %v890_v53 = vld [vmem:[%s5364_s16 + $0xee8] sm:$0xff] }
  0x45   : > { %v814_v54 = vld [vmem:[%s5364_s16 + $0xc88] sm:$0xff]  ;;  %v839_v55 = vld [vmem:[%s5364_s16 + $0xd50] sm:$0xff]  ;;  %v816_v56 = vld [vmem:[%s5364_s16 + $0xc98] sm:$0xff]  ;;  %v1438_v58 = vpack.c.bf16 %v888_v50, %v863_v49  ;;  %v1440_v59 = vpack.c.bf16 %v890_v53, %v865_v51 }
  0x46   : > { %1720 = vmatpush2.bf16.msra.mxu0 %v1563_v61  ;;  %1793 = vmatpush2.bf16.msra.mxu1 %v1565_v62  ;;  %v841_v57 = vld [vmem:[%s5364_s16 + $0xd60] sm:$0xff]  ;;  %v1414_v60 = vpack.c.bf16 %v839_v55, %v814_v54  ;;  %v838_v62 = vld [vmem:[%s5364_s16 + $0xd48] sm:$0xff]  ;;  %v840_v2 = vld [vmem:[%s5364_s16 + $0xd58] sm:$0xff] }
  0x47   : > { %1721 = vmatprep.subr.bf16.mxu0 %v1539_v63  ;;  %1794 = vmatprep.subr.bf16.mxu1 %v1541_v4  ;;  %v813_v61 = vld [vmem:[%s5364_s16 + $0xc80] sm:$0xff]  ;;  %v815_v63 = vld [vmem:[%s5364_s16 + $0xc90] sm:$0xff]  ;;  %v1416_v1 = vpack.c.bf16 %v841_v57, %v816_v56  ;;  %v768_v3 = vld [vmem:[%s5364_s16 + $0xb18] sm:$0xff] }
  0x48   : > { %v793_v4 = vld [vmem:[%s5364_s16 + $0xbe0] sm:$0xff]  ;;  %v770_v5 = vld [vmem:[%s5364_s16 + $0xb28] sm:$0xff]  ;;  %v795_v6 = vld [vmem:[%s5364_s16 + $0xbf0] sm:$0xff]  ;;  %v1413_v7 = vpack.c.bf16 %v838_v62, %v813_v61  ;;  %v1415_v8 = vpack.c.bf16 %v840_v2, %v815_v63 }
  0x49   : > { %v1393_v9 = vpack.c.bf16 %v793_v4, %v768_v3  ;;  %v1395_v13 = vpack.c.bf16 %v795_v6, %v770_v5  ;;  %v794_v14 = vld [vmem:[%s5364_s16 + $0xbe8] sm:$0xff]  ;;  %v720_v18 = vld [vmem:[%s5364_s16 + $0x998] sm:$0xff]  ;;  %v745_v19 = vld [vmem:[%s5364_s16 + $0xa60] sm:$0xff] }
  0x4a   : > { %1722 = vmatpush2.bf16.msra.mxu0 %v1538_v10  ;;  %1795 = vmatpush2.bf16.msra.mxu1 %v1540_v11  ;;  %v767_v10 = vld [vmem:[%s5364_s16 + $0xb10] sm:$0xff]  ;;  %v792_v11 = vld [vmem:[%s5364_s16 + $0xbd8] sm:$0xff]  ;;  %v718_v15 = vld [vmem:[%s5364_s16 + $0x988] sm:$0xff]  ;;  %v1370_v27 = vpack.c.bf16 %v745_v19, %v720_v18 }
  0x4b   : > { %1723 = vmatprep.subr.bf16.mxu0 %v1514_v12  ;;  %1796 = vmatprep.subr.bf16.mxu1 %v1516_v16  ;;  %v769_v12 = vld [vmem:[%s5364_s16 + $0xb20] sm:$0xff]  ;;  %v743_v16 = vld [vmem:[%s5364_s16 + $0xa50] sm:$0xff]  ;;  %v1392_v20 = vpack.c.bf16 %v792_v11, %v767_v10  ;;  %v742_v25 = vld [vmem:[%s5364_s16 + $0xa48] sm:$0xff] }
  0x4c   : > { %v5507_v17 = vld [vmem:[%s8355_s2] ss:$8 sps:$4 sm:$0xff]   ;;  %v5514_v21 = vld [vmem:[%s8355_s2 + $0x14] ss:$8 sps:$4 sm:$0xff]   ;;  %v5538_v45 = vld [vmem:[%s8355_s2 + $0x10] ss:$8 sps:$4 sm:$0xff]  }
  0x4d   : > { %v719_v26 = vld [vmem:[%s5364_s16 + $0x990] sm:$0xff]  ;;  %v668_v29 = vld [vmem:[%s5364_s16 + $0x7f8] sm:$0xff]  ;;  %v693_v30 = vld [vmem:[%s5364_s16 + $0x8c0] sm:$0xff] }
  0x4e   : > { %1724 = vmatpush2.bf16.msra.mxu0 %v1513_v22  ;;  %1797 = vmatpush2.bf16.msra.mxu1 %v1515_v23  ;;  %v1394_v22 = vpack.c.bf16 %v794_v14, %v769_v12  ;;  %v1368_v23 = vpack.c.bf16 %v743_v16, %v718_v15  ;;  %v670_v31 = vld [vmem:[%s5364_s16 + $0x808] sm:$0xff]  ;;  %v695_v32 = vld [vmem:[%s5364_s16 + $0x8d0] sm:$0xff]  ;;  %v692_v37 = vld [vmem:[%s5364_s16 + $0x8b8] sm:$0xff] }
  0x4f   : > { %1725 = vmatprep.subr.bf16.mxu0 %v1489_v24  ;;  %1798 = vmatprep.subr.bf16.mxu1 %v1491_v28  ;;  %v717_v24 = vld [vmem:[%s5364_s16 + $0x980] sm:$0xff]  ;;  %v744_v28 = vld [vmem:[%s5364_s16 + $0xa58] sm:$0xff]  ;;  %v1345_v39 = vpack.c.bf16 %v695_v32, %v670_v31  ;;  %v618_v41 = vld [vmem:[%s5364_s16 + $0x668] sm:$0xff] }
  0x50   : > { %v1367_v33 = vpack.c.bf16 %v742_v25, %v717_v24  ;;  %v669_v38 = vld [vmem:[%s5364_s16 + $0x800] sm:$0xff]  ;;  %v643_v42 = vld [vmem:[%s5364_s16 + $0x730] sm:$0xff]  ;;  %v620_v43 = vld [vmem:[%s5364_s16 + $0x678] sm:$0xff] }
  0x51   : > { %v645_v44 = vld [vmem:[%s5364_s16 + $0x740] sm:$0xff]  ;;  %v1318_v49 = vpack.c.bf16 %v643_v42, %v618_v41  ;;  %v642_v51 = vld [vmem:[%s5364_s16 + $0x728] sm:$0xff]  ;;  %v644_v54 = vld [vmem:[%s5364_s16 + $0x738] sm:$0xff] }
  0x52   : > { %1726 = vmatpush2.bf16.msra.mxu0 %v1488_v34  ;;  %1799 = vmatpush2.bf16.msra.mxu1 %v1490_v35  ;;  %v1369_v34 = vpack.c.bf16 %v744_v28, %v719_v26  ;;  %v1343_v35 = vpack.c.bf16 %v693_v30, %v668_v29  ;;  %v617_v50 = vld [vmem:[%s5364_s16 + $0x660] sm:$0xff]  ;;  %v1320_v53 = vpack.c.bf16 %v645_v44, %v620_v43  ;;  %v568_v55 = vld [vmem:[%s5364_s16 + $0x4d8] sm:$0xff]  ;;  %v570_v57 = vld [vmem:[%s5364_s16 + $0x4e8] sm:$0xff] }
  0x53   : > { %1727 = vmatprep.subr.bf16.mxu0 %v1464_v36  ;;  %1800 = vmatprep.subr.bf16.mxu1 %v1466_v40  ;;  %v667_v36 = vld [vmem:[%s5364_s16 + $0x7f0] sm:$0xff]  ;;  %v694_v40 = vld [vmem:[%s5364_s16 + $0x8c8] sm:$0xff]  ;;  %v593_v56 = vld [vmem:[%s5364_s16 + $0x5a0] sm:$0xff] }
  0x54   : > { %v1293_v61 = vpack.c.bf16 %v593_v56, %v568_v55  ;;  %v567_v62 = vld [vmem:[%s5364_s16 + $0x4d0] sm:$0xff]  ;;  %v592_v63 = vld [vmem:[%s5364_s16 + $0x598] sm:$0xff]  ;;  %v594_v3 = vld [vmem:[%s5364_s16 + $0x5a8] sm:$0xff] }
  0x55   : > { %v518_v4 = vld [vmem:[%s5364_s16 + $0x348] sm:$0xff]  ;;  %v543_v5 = vld [vmem:[%s5364_s16 + $0x410] sm:$0xff]  ;;  %v520_v6 = vld [vmem:[%s5364_s16 + $0x358] sm:$0xff] }
  0x56   : > { %1728 = vmatpush2.bf16.msra.mxu0 %v1463_v46  ;;  %1801 = vmatpush2.bf16.msra.mxu1 %v1465_v47  ;;  %v1342_v46 = vpack.c.bf16 %v692_v37, %v667_v36  ;;  %v5544_v47 = vld [vmem:[%s8355_s2 + $0x24] ss:$8 sps:$4 sm:$0xff]   ;;  %v5574_v10 = vld [vmem:[%s8355_s2 + $0x34] ss:$8 sps:$4 sm:$0xff]   ;;  %v1268_v12 = vpack.c.bf16 %v543_v5, %v518_v4  ;;  %v5598_v36 = vld [vmem:[%s8355_s2 + $0x30] ss:$8 sps:$4 sm:$0xff]  }
  0x57   : > { %1729 = vmatprep.subr.bf16.mxu0 %v1439_v48  ;;  %1802 = vmatprep.subr.bf16.mxu1 %v1441_v52  ;;  %v1344_v48 = vpack.c.bf16 %v694_v40, %v669_v38  ;;  %v619_v52 = vld [vmem:[%s5364_s16 + $0x670] sm:$0xff]  ;;  %v542_v14 = vld [vmem:[%s5364_s16 + $0x408] sm:$0xff]  ;;  %v544_v18 = vld [vmem:[%s5364_s16 + $0x418] sm:$0xff] }
  0x58   : > { %v519_v15 = vld [vmem:[%s5364_s16 + $0x350] sm:$0xff]  ;;  %v468_v19 = vld [vmem:[%s5364_s16 + $0x1b8] sm:$0xff]  ;;  %v469_v29 = vld [vmem:[%s5364_s16 + $0x1c0] sm:$0xff] }
  0x59   : > { %v1269_v25 = vpack.c.bf16 %v544_v18, %v519_v15  ;;  %v492_v28 = vld [vmem:[%s5364_s16 + $0x278] sm:$0xff]  ;;  %v494_v31 = vld [vmem:[%s5364_s16 + $0x288] sm:$0xff]  ;;  %v417_v38 = vld [vmem:[%s5364_s16 + $0x20] sm:$0xff] }
  0x5a   : > { %1730 = vmatpush2.bf16.msra.mxu0 %v1438_v58  ;;  %1803 = vmatpush2.bf16.msra.mxu1 %v1440_v59  ;;  %v595_v58 = vld [vmem:[%s5364_s16 + $0x5b0] sm:$0xff]  ;;  %v1317_v59 = vpack.c.bf16 %v642_v51, %v617_v50  ;;  %v418_v32 = vld [vmem:[%s5364_s16 + $0x28] sm:$0xff]  ;;  %v1613_v43 = vld [vmem:[%s8356_s3] sm:$0xff] }
  0x5b   : > { %1731 = vmatprep.subr.bf16.mxu0 %v1414_v60  ;;  %1804 = vmatprep.subr.bf16.mxu1 %v1416_v1  ;;  %v1319_v60 = vpack.c.bf16 %v644_v54, %v619_v52  ;;  %v569_v1 = vld [vmem:[%s5364_s16 + $0x4e0] sm:$0xff]  ;;  %v1295_v2 = vpack.c.bf16 %v595_v58, %v570_v57  ;;  %v442_v41 = vld [vmem:[%s5364_s16 + $0xe8] sm:$0xff]  ;;  %v419_v42 = vld [vmem:[%s5364_s16 + $0x30] sm:$0xff] }
  0x5c   : > { %v1294_v11 = vpack.c.bf16 %v594_v3, %v569_v1  ;;  %1623 = vperm.xlu0 %5139, %v1613_v43   ;;  %v1170_v50 = vld [vmem:[%s5364_s16 + $0x17a8] sm:$0xff]  ;;  %v1195_v51 = vld [vmem:[%s5364_s16 + $0x1870] sm:$0xff]  ;;  %v1217_v52 = vpack.c.bf16 %v442_v41, %v417_v38  ;;  %v1192_v57 = vld [vmem:[%s5364_s16 + $0x1858] sm:$0xff] }
  0x5d   : > { %v1167_v56 = vld [vmem:[%s5364_s16 + $0x1790] sm:$0xff]  ;;  %v1169_v58 = vld [vmem:[%s5364_s16 + $0x17a0] sm:$0xff]  ;;  %v968_v38 = vld [vmem:[%s5364_s16 + $0x1158] sm:$0xff] }
  0x5e   : > { %1732 = vmatpush2.bf16.msra.mxu0 %v1413_v7  ;;  %1805 = vmatpush2.bf16.msra.mxu1 %v1415_v8  ;;  %v545_v7 = vld [vmem:[%s5364_s16 + $0x420] sm:$0xff]  ;;  %v995_v41 = vld [vmem:[%s5364_s16 + $0x1230] sm:$0xff] }
  0x5f   : > { %1847 = vmatprep.subr.bf16.mxu0 %v1393_v9  ;;  %1920 = vmatprep.subr.bf16.mxu1 %v1395_v13  ;;  %v5568_v8 = vld [vmem:[%s8355_s2 + $0x20] ss:$8 sps:$4 sm:$0xff]   ;;  %v1292_v9 = vpack.c.bf16 %v592_v63, %v567_v62  ;;  %v1270_v16 = vpack.c.bf16 %v545_v7, %v520_v6  ;;  %v1143_v62 = vld [vmem:[%s5364_s16 + $0x16d0] sm:$0xff]  ;;  %v1120_v63 = vld [vmem:[%s5364_s16 + $0x1618] sm:$0xff] }
  0x60   : > { %v517_v13 = vld [vmem:[%s5364_s16 + $0x340] sm:$0xff]  ;;  %v1142_v6 = vld [vmem:[%s5364_s16 + $0x16c8] sm:$0xff]  ;;  %v1119_v7 = vld [vmem:[%s5364_s16 + $0x1610] sm:$0xff] }
  0x61   : > { %1734 = vmatmul.mubr.bf16.vlgmr.msra.gmra.mxu0 %v5507_v17  ;;  %1807 = vmatmul.mubr.bf16.vlgmr.msra.gmra.mxu1 %v5507_v17  ;;  %v1267_v24 = vpack.c.bf16 %v542_v14, %v517_v13  ;;  %v1145_v1 = vld [vmem:[%s5364_s16 + $0x16e0] sm:$0xff]  ;;  %v1070_v13 = vld [vmem:[%s5364_s16 + $0x1488] sm:$0xff]  ;;  %v1095_v14 = vld [vmem:[%s5364_s16 + $0x1550] sm:$0xff] }
  0x62   : > { %1848 = vmatpush1.bf16.msra.mxu0 %v1392_v20  ;;  %1921 = vmatpush1.bf16.msra.mxu1 %v1394_v22  ;;  %v493_v20 = vld [vmem:[%s5364_s16 + $0x280] sm:$0xff]  ;;  %v470_v22 = vld [vmem:[%s5364_s16 + $0x1c8] sm:$0xff] }
  0x63   : > { %1849 = vmatprep.subr.bf16.mxu0 %v1368_v23  ;;  %1922 = vmatprep.subr.bf16.mxu1 %v1370_v27  ;;  %v495_v23 = vld [vmem:[%s5364_s16 + $0x290] sm:$0xff]  ;;  %v1243_v26 = vpack.c.bf16 %v493_v20, %v468_v19  ;;  %v1117_v5 = vld [vmem:[%s5364_s16 + $0x1600] sm:$0xff]  ;;  %v1092_v20 = vld [vmem:[%s5364_s16 + $0x1538] sm:$0xff] }
  0x64   : > { %1743 = vmatprep.mubr.bf16.mxu0 %v5514_v21  ;;  %1816 = vmatprep.mubr.bf16.mxu1 %v5514_v21  ;;  %v467_v27 = vld [vmem:[%s5364_s16 + $0x1b0] sm:$0xff]  ;;  %v1245_v30 = vpack.c.bf16 %v495_v23, %v470_v22  ;;  %v1567_v15 = vpack.c.bf16 %v1142_v6, %v1117_v5  ;;  %v1069_v22 = vld [vmem:[%s5364_s16 + $0x1480] sm:$0xff]  ;;  %v1545_v23 = vpack.c.bf16 %v1095_v14, %v1070_v13  ;;  %v1616_v6 = vld [vmem:[%s8356_s3 + $0x18] sm:$0xff] }
  0x65   : > { %v1242_v37 = vpack.c.bf16 %v492_v28, %v467_v27  ;;  %v1067_v19 = vld [vmem:[%s5364_s16 + $0x1470] sm:$0xff]  ;;  %v1020_v27 = vld [vmem:[%s5364_s16 + $0x12f8] sm:$0xff]  ;;  %v1045_v28 = vld [vmem:[%s5364_s16 + $0x13c0] sm:$0xff] }
  0x66   : > { %1850 = vmatpush1.bf16.msra.mxu0 %v1367_v33  ;;  %1923 = vmatpush1.bf16.msra.mxu1 %v1369_v34  ;;  %v443_v33 = vld [vmem:[%s5364_s16 + $0xf0] sm:$0xff]  ;;  %v420_v34 = vld [vmem:[%s5364_s16 + $0x38] sm:$0xff]  ;;  %v869_v13 = vld [vmem:[%s5364_s16 + $0xe40] sm:$0xff] }
  0x67   : > { %1851 = vmatprep.subr.bf16.mxu0 %v1343_v35  ;;  %1924 = vmatprep.subr.bf16.mxu1 %v1345_v39  ;;  %v445_v35 = vld [vmem:[%s5364_s16 + $0x100] sm:$0xff]  ;;  %v1244_v39 = vpack.c.bf16 %v494_v31, %v469_v29  ;;  %v1218_v40 = vpack.c.bf16 %v443_v33, %v418_v32  ;;  %v1542_v29 = vpack.c.bf16 %v1092_v20, %v1067_v19  ;;  %v1042_v33 = vld [vmem:[%s5364_s16 + $0x13a8] sm:$0xff]  ;;  %v895_v5 = vld [vmem:[%s5364_s16 + $0xf10] sm:$0xff] }
  0x68   : > { %v1220_v44 = vpack.c.bf16 %v445_v35, %v420_v34  ;;  %v1017_v32 = vld [vmem:[%s5364_s16 + $0x12e0] sm:$0xff]  ;;  %v1019_v34 = vld [vmem:[%s5364_s16 + $0x12f0] sm:$0xff]  ;;  %v1520_v35 = vpack.c.bf16 %v1045_v28, %v1020_v27  ;;  %v820_v19 = vld [vmem:[%s5364_s16 + $0xcb8] sm:$0xff] }
  0x69   : > { %1744 = vmatmul.mubr.bf16.gmra.mxu0 %v5538_v45  ;;  %1817 = vmatmul.mubr.bf16.gmra.mxu1 %v5538_v45  ;;  %v845_v20 = vld [vmem:[%s5364_s16 + $0xd80] sm:$0xff]  ;;  %v819_v27 = vld [vmem:[%s5364_s16 + $0xcb0] sm:$0xff]  ;;  %v1618_v28 = vld [vmem:[%s8356_s3 + $0x28] sm:$0xff] }
  0x6a   : > { %1852 = vmatpush1.bf16.msra.mxu0 %v1342_v46  ;;  %1925 = vmatpush1.bf16.msra.mxu1 %v1344_v48  ;;  %v444_v46 = vld [vmem:[%s5364_s16 + $0xf8] sm:$0xff] }
  0x6b   : > { %1853 = vmatprep.subr.bf16.mxu0 %v1318_v49  ;;  %1926 = vmatprep.subr.bf16.mxu1 %v1320_v53  ;;  %v1168_v48 = vld [vmem:[%s5364_s16 + $0x1798] sm:$0xff]  ;;  %v1193_v49 = vld [vmem:[%s5364_s16 + $0x1860] sm:$0xff]  ;;  %v1614_v53 = vld [vmem:[%s8356_s3 + $0x8] sm:$0xff]  ;;  %v1219_v54 = vpack.c.bf16 %v444_v46, %v419_v42  ;;  %v1517_v42 = vpack.c.bf16 %v1042_v33, %v1017_v32 }
  0x6c   : > { %1753 = vmatprep.mubr.bf16.mxu0 %v5544_v47  ;;  %1826 = vmatprep.mubr.bf16.mxu1 %v5544_v47  ;;  %v1593_v55 = vpack.c.bf16 %v1193_v49, %v1168_v48  ;;  %v967_v46 = vld [vmem:[%s5364_s16 + $0x1150] sm:$0xff]  ;;  %v992_v48 = vld [vmem:[%s5364_s16 + $0x1218] sm:$0xff]  ;;  %v969_v49 = vld [vmem:[%s5364_s16 + $0x1160] sm:$0xff] }
  0x6d   : > { %1628 = vperm.xlu0 %5139, %v1614_v53   ;;  %v943_v53 = vld [vmem:[%s5364_s16 + $0x1090] sm:$0xff]  ;;  %v772_v32 = vld [vmem:[%s5364_s16 + $0xb38] sm:$0xff]  ;;  %v797_v33 = vld [vmem:[%s5364_s16 + $0xc00] sm:$0xff] }
  0x6e   : > { %1854 = vmatpush1.bf16.msra.mxu0 %v1317_v59  ;;  %1927 = vmatpush1.bf16.msra.mxu1 %v1319_v60  ;;  %v1595_v59 = vpack.c.bf16 %v1195_v51, %v1170_v50  ;;  %v1194_v60 = vld [vmem:[%s5364_s16 + $0x1868] sm:$0xff] }
  0x6f   : > { %1855 = vmatprep.subr.bf16.mxu0 %v1293_v61  ;;  %1928 = vmatprep.subr.bf16.mxu1 %v1295_v2  ;;  %v1118_v61 = vld [vmem:[%s5364_s16 + $0x1608] sm:$0xff]  ;;  %v1592_v2 = vpack.c.bf16 %v1192_v57, %v1167_v56  ;;  %v1594_v3 = vpack.c.bf16 %v1194_v60, %v1169_v58  ;;  %v1492_v56 = vpack.c.bf16 %v992_v48, %v967_v46  ;;  %v1615_v57 = vld [vmem:[%s8356_s3 + $0x10] sm:$0xff]  ;;  %v917_v60 = vld [vmem:[%s5364_s16 + $0xfc0] sm:$0xff] }
  0x70   : > { %v1568_v4 = vpack.c.bf16 %v1143_v62, %v1118_v61  ;;  %v994_v51 = vld [vmem:[%s5364_s16 + $0x1228] sm:$0xff]  ;;  %v919_v62 = vld [vmem:[%s5364_s16 + $0xfd0] sm:$0xff]  ;;  %1633 = vperm.xlu1 %5140, %v1615_v57  }
  0x71   : > { %1754 = vmatmul.mubr.bf16.gmra.mxu0 %v5568_v8  ;;  %1827 = vmatmul.mubr.bf16.gmra.mxu1 %v5568_v8  ;;  %v1494_v58 = vpack.c.bf16 %v994_v51, %v969_v49  ;;  %v942_v61 = vld [vmem:[%s5364_s16 + $0x1088] sm:$0xff]  ;;  %v747_v48 = vld [vmem:[%s5364_s16 + $0xa70] sm:$0xff]  ;;  %v724_v49 = vld [vmem:[%s5364_s16 + $0x9b8] sm:$0xff] }
  0x72   : > { %1856 = vmatpush1.bf16.msra.mxu0 %v1292_v9  ;;  %1929 = vmatpush1.bf16.msra.mxu1 %v1294_v11  ;;  %v1570_v9 = vpack.c.bf16 %v1145_v1, %v1120_v63  ;;  %v1144_v11 = vld [vmem:[%s5364_s16 + $0x16d8] sm:$0xff]  ;;  %v722_v46 = vld [vmem:[%s5364_s16 + $0x9a8] sm:$0xff] }
  0x73   : > { %1857 = vmatprep.subr.bf16.mxu0 %v1268_v12  ;;  %1930 = vmatprep.subr.bf16.mxu1 %v1270_v16  ;;  %v1093_v12 = vld [vmem:[%s5364_s16 + $0x1540] sm:$0xff]  ;;  %v1569_v16 = vpack.c.bf16 %v1144_v11, %v1119_v7  ;;  %v944_v1 = vld [vmem:[%s5364_s16 + $0x1098] sm:$0xff]  ;;  %v1467_v7 = vpack.c.bf16 %v942_v61, %v917_v60  ;;  %v746_v57 = vld [vmem:[%s5364_s16 + $0xa68] sm:$0xff] }
  0x74   : > { %1763 = vmatprep.mubr.bf16.mxu0 %v5574_v10  ;;  %1836 = vmatprep.mubr.bf16.mxu1 %v5574_v10  ;;  %v1620_v51 = vld [vmem:[%s8356_s3 + $0x38] sm:$0xff] }
  0x75   : > { %1638 = vperm.xlu1 %5140, %v1616_v6   ;;  %v748_v60 = vld [vmem:[%s5364_s16 + $0xa78] sm:$0xff] }
  0x76   : > { %1858 = vmatpush1.bf16.msra.mxu0 %v1267_v24  ;;  %1931 = vmatpush1.bf16.msra.mxu1 %v1269_v25  ;;  %v1094_v24 = vld [vmem:[%s5364_s16 + $0x1548] sm:$0xff]  ;;  %v672_v61 = vld [vmem:[%s5364_s16 + $0x818] sm:$0xff] }
  0x77   : > { %1859 = vmatprep.subr.bf16.mxu0 %v1243_v26  ;;  %1932 = vmatprep.subr.bf16.mxu1 %v1245_v30  ;;  %v1018_v25 = vld [vmem:[%s5364_s16 + $0x12e8] sm:$0xff]  ;;  %v1043_v26 = vld [vmem:[%s5364_s16 + $0x13b0] sm:$0xff]  ;;  %v1544_v30 = vpack.c.bf16 %v1094_v24, %v1069_v22  ;;  %v696_v6 = vld [vmem:[%s5364_s16 + $0x8d8] sm:$0xff] }
  0x78   : > { %v1518_v31 = vpack.c.bf16 %v1043_v26, %v1018_v25  ;;  %v842_v24 = vld [vmem:[%s5364_s16 + $0xd68] sm:$0xff] }
  0x79   : > { %1764 = vmatmul.mubr.bf16.gmra.mxu0 %v5598_v36  ;;  %1837 = vmatmul.mubr.bf16.gmra.mxu1 %v5598_v36 }
  0x7a   : > { %1860 = vmatpush1.bf16.msra.mxu0 %v1242_v37  ;;  %1933 = vmatpush1.bf16.msra.mxu1 %v1244_v39  ;;  %v1044_v37 = vld [vmem:[%s5364_s16 + $0x13b8] sm:$0xff]  ;;  %v993_v39 = vld [vmem:[%s5364_s16 + $0x1220] sm:$0xff] }
  0x7b   : > { %1861 = vmatprep.subr.bf16.mxu0 %v1218_v40  ;;  %1934 = vmatprep.subr.bf16.mxu1 %v1220_v44  ;;  %v970_v40 = vld [vmem:[%s5364_s16 + $0x1168] sm:$0xff]  ;;  %v1519_v43 = vpack.c.bf16 %v1044_v37, %v1019_v34  ;;  %v1493_v44 = vpack.c.bf16 %v993_v39, %v968_v38  ;;  %v771_v38 = vld [vmem:[%s5364_s16 + $0xb30] sm:$0xff] }
  0x7c   : > { %1879 = vmatprep.mubr.bf16.mxu0 %v5353_v0  ;;  %1952 = vmatprep.mubr.bf16.mxu1 %v5353_v0  ;;  %v1068_v0 = vld [vmem:[%s5364_s16 + $0x1478] sm:$0xff]  ;;  %v1495_v50 = vpack.c.bf16 %v995_v41, %v970_v40  ;;  %v774_v34 = vld [vmem:[%s5364_s16 + $0xb48] sm:$0xff]  ;;  %v1397_v40 = vpack.c.bf16 %v797_v33, %v772_v32  ;;  %v573_v32 = vld [vmem:[%s5364_s16 + $0x500] sm:$0xff] }
  0x7d   : > { %v1543_v18 = vpack.c.bf16 %v1093_v12, %v1068_v0  ;;  %v867_v0 = vld [vmem:[%s5364_s16 + $0xe30] sm:$0xff]  ;;  %v892_v12 = vld [vmem:[%s5364_s16 + $0xef8] sm:$0xff]  ;;  %1648 = vperm.xlu1 %5140, %v1618_v28  }
  0x7e   : > { %1862 = vmatpush1.bf16.msra.mxu0 %v1217_v52  ;;  %1935 = vmatpush1.bf16.msra.mxu1 %v1219_v54  ;;  %v918_v52 = vld [vmem:[%s5364_s16 + $0xfc8] sm:$0xff]  ;;  %v920_v54 = vld [vmem:[%s5364_s16 + $0xfd8] sm:$0xff]  ;;  %v1442_v22 = vpack.c.bf16 %v892_v12, %v867_v0  ;;  %v647_v0 = vld [vmem:[%s5364_s16 + $0x750] sm:$0xff] }
  0x7f   : > { %1863 = vmatprep.subr.bf16.mxu0 %v1593_v55  ;;  %1936 = vmatprep.subr.bf16.mxu1 %v1595_v59  ;;  %v945_v55 = vld [vmem:[%s5364_s16 + $0x10a0] sm:$0xff]  ;;  %v1468_v59 = vpack.c.bf16 %v943_v53, %v918_v52  ;;  %v796_v41 = vld [vmem:[%s5364_s16 + $0xbf8] sm:$0xff]  ;;  %v1619_v52 = vld [vmem:[%s8356_s3 + $0x30] sm:$0xff] }
  0x80   : > { %v1470_v63 = vpack.c.bf16 %v945_v55, %v920_v54  ;;  %v1396_v53 = vpack.c.bf16 %v796_v41, %v771_v38  ;;  %v1372_v55 = vpack.c.bf16 %v747_v48, %v722_v46  ;;  %v624_v12 = vld [vmem:[%s5364_s16 + $0x698] sm:$0xff]  ;;  %v549_v38 = vld [vmem:[%s5364_s16 + $0x440] sm:$0xff] }
  0x81   : > { %1658 = vperm.xlu1 %5140, %v1620_v51   ;;  %v472_v48 = vld [vmem:[%s5364_s16 + $0x1d8] sm:$0xff]  ;;  %v499_v51 = vld [vmem:[%s5364_s16 + $0x2b0] sm:$0xff] }
  0x82   : > { %1864 = vmatpush2.bf16.msra.mxu0 %v1592_v2  ;;  %1937 = vmatpush2.bf16.msra.mxu1 %v1594_v3  ;;  %v868_v2 = vld [vmem:[%s5364_s16 + $0xe38] sm:$0xff]  ;;  %v893_v3 = vld [vmem:[%s5364_s16 + $0xf00] sm:$0xff] }
  0x83   : > { %1865 = vmatprep.subr.bf16.mxu0 %v1568_v4  ;;  %1938 = vmatprep.subr.bf16.mxu1 %v1570_v9  ;;  %v870_v4 = vld [vmem:[%s5364_s16 + $0xe48] sm:$0xff]  ;;  %v1469_v9 = vpack.c.bf16 %v944_v1, %v919_v62  ;;  %v1443_v11 = vpack.c.bf16 %v893_v3, %v868_v2  ;;  %v697_v62 = vld [vmem:[%s5364_s16 + $0x8e0] sm:$0xff]  ;;  %v699_v1 = vld [vmem:[%s5364_s16 + $0x8f0] sm:$0xff] }
  0x84   : > { %v1445_v14 = vpack.c.bf16 %v895_v5, %v870_v4  ;;  %v1347_v4 = vpack.c.bf16 %v697_v62, %v672_v61  ;;  %v671_v5 = vld [vmem:[%s5364_s16 + $0x810] sm:$0xff]  ;;  %v424_v61 = vld [vmem:[%s5364_s16 + $0x58] sm:$0xff]  ;;  %v449_v62 = vld [vmem:[%s5364_s16 + $0x120] sm:$0xff] }
  0x86   : > { %1866 = vmatpush2.bf16.msra.mxu0 %v1567_v15  ;;  %1939 = vmatpush2.bf16.msra.mxu1 %v1569_v16  ;;  %v894_v15 = vld [vmem:[%s5364_s16 + $0xf08] sm:$0xff] }
  0x87   : > { %1867 = vmatprep.subr.bf16.mxu0 %v1543_v18  ;;  %1940 = vmatprep.subr.bf16.mxu1 %v1545_v23  ;;  %v818_v16 = vld [vmem:[%s5364_s16 + $0xca8] sm:$0xff]  ;;  %v843_v18 = vld [vmem:[%s5364_s16 + $0xd70] sm:$0xff]  ;;  %v817_v23 = vld [vmem:[%s5364_s16 + $0xca0] sm:$0xff]  ;;  %v1444_v25 = vpack.c.bf16 %v894_v15, %v869_v13 }
  0x88   : > { %v1418_v26 = vpack.c.bf16 %v843_v18, %v818_v16  ;;  %v1417_v37 = vpack.c.bf16 %v842_v24, %v817_v23  ;;  %v649_v13 = vld [vmem:[%s5364_s16 + $0x760] sm:$0xff]  ;;  %v572_v23 = vld [vmem:[%s5364_s16 + $0x4f8] sm:$0xff] }
  0x89   : > { %v621_v18 = vld [vmem:[%s5364_s16 + $0x680] sm:$0xff] }
  0x8a   : > { %1868 = vmatpush2.bf16.msra.mxu0 %v1542_v29  ;;  %1941 = vmatpush2.bf16.msra.mxu1 %v1544_v30  ;;  %v1617_v29 = vld [vmem:[%s8356_s3 + $0x20] sm:$0xff]  ;;  %v1420_v30 = vpack.c.bf16 %v845_v20, %v820_v19  ;;  %v646_v19 = vld [vmem:[%s5364_s16 + $0x748] sm:$0xff]  ;;  %v623_v20 = vld [vmem:[%s5364_s16 + $0x690] sm:$0xff] }
  0x8b   : > { %1869 = vmatprep.subr.bf16.mxu0 %v1518_v31  ;;  %1942 = vmatprep.subr.bf16.mxu1 %v1520_v35  ;;  %v844_v31 = vld [vmem:[%s5364_s16 + $0xd78] sm:$0xff]  ;;  %v799_v35 = vld [vmem:[%s5364_s16 + $0xc10] sm:$0xff]  ;;  %v597_v24 = vld [vmem:[%s5364_s16 + $0x5c0] sm:$0xff] }
  0x8c   : > { %1643 = vperm.xlu0 %5139, %v1617_v29   ;;  %v1419_v39 = vpack.c.bf16 %v844_v31, %v819_v27  ;;  %v1321_v27 = vpack.c.bf16 %v646_v19, %v621_v18  ;;  %v1297_v29 = vpack.c.bf16 %v597_v24, %v572_v23  ;;  %v596_v31 = vld [vmem:[%s5364_s16 + $0x5b8] sm:$0xff]  ;;  %v1198_v19 = vld [vmem:[%s5364_s16 + $0x1888] sm:$0xff]  ;;  %v1149_v23 = vld [vmem:[%s5364_s16 + $0x1700] sm:$0xff] }
  0x8e   : > { %1870 = vmatpush2.bf16.msra.mxu0 %v1517_v42  ;;  %1943 = vmatpush2.bf16.msra.mxu1 %v1519_v43  ;;  %v773_v42 = vld [vmem:[%s5364_s16 + $0xb40] sm:$0xff]  ;;  %v798_v43 = vld [vmem:[%s5364_s16 + $0xc08] sm:$0xff] }
  0x8f   : > { %1871 = vmatprep.subr.bf16.mxu0 %v1493_v44  ;;  %1944 = vmatprep.subr.bf16.mxu1 %v1495_v50  ;;  %v1399_v44 = vpack.c.bf16 %v799_v35, %v774_v34  ;;  %v749_v50 = vld [vmem:[%s5364_s16 + $0xa80] sm:$0xff]  ;;  %v1398_v54 = vpack.c.bf16 %v798_v43, %v773_v42  ;;  %v598_v34 = vld [vmem:[%s5364_s16 + $0x5c8] sm:$0xff] }
  0x90   : > { %1653 = vperm.xlu0 %5139, %v1619_v52   ;;  %v522_v35 = vld [vmem:[%s5364_s16 + $0x368] sm:$0xff]  ;;  %v521_v42 = vld [vmem:[%s5364_s16 + $0x360] sm:$0xff] }
  0x91   : > { %v546_v43 = vld [vmem:[%s5364_s16 + $0x428] sm:$0xff] }
  0x92   : > { %1872 = vmatpush2.bf16.msra.mxu0 %v1492_v56  ;;  %1945 = vmatpush2.bf16.msra.mxu1 %v1494_v58  ;;  %v721_v56 = vld [vmem:[%s5364_s16 + $0x9a0] sm:$0xff]  ;;  %v723_v58 = vld [vmem:[%s5364_s16 + $0x9b0] sm:$0xff]  ;;  %v1271_v52 = vpack.c.bf16 %v546_v43, %v521_v42  ;;  %v1098_v43 = vld [vmem:[%s5364_s16 + $0x1568] sm:$0xff] }
  0x93   : > { %1873 = vmatprep.subr.bf16.mxu0 %v1468_v59  ;;  %1946 = vmatprep.subr.bf16.mxu1 %v1470_v63  ;;  %v1374_v59 = vpack.c.bf16 %v749_v50, %v724_v49  ;;  %v674_v63 = vld [vmem:[%s5364_s16 + $0x828] sm:$0xff]  ;;  %v1371_v2 = vpack.c.bf16 %v746_v57, %v721_v56  ;;  %v1373_v3 = vpack.c.bf16 %v748_v60, %v723_v58  ;;  %v497_v49 = vld [vmem:[%s5364_s16 + $0x2a0] sm:$0xff]  ;;  %v496_v56 = vld [vmem:[%s5364_s16 + $0x298] sm:$0xff] }
  0x94   : > { %v474_v50 = vld [vmem:[%s5364_s16 + $0x1e8] sm:$0xff]  ;;  %v473_v57 = vld [vmem:[%s5364_s16 + $0x1e0] sm:$0xff] }
  0x95   : > { %v1249_v58 = vpack.c.bf16 %v499_v51, %v474_v50  ;;  %v422_v60 = vld [vmem:[%s5364_s16 + $0x48] sm:$0xff] }
  0x96   : > { %1874 = vmatpush2.bf16.msra.mxu0 %v1467_v7  ;;  %1947 = vmatpush2.bf16.msra.mxu1 %v1469_v9  ;;  %v673_v7 = vld [vmem:[%s5364_s16 + $0x820] sm:$0xff]  ;;  %v1349_v9 = vpack.c.bf16 %v699_v1, %v674_v63 }
  0x97   : > { %1875 = vmatprep.subr.bf16.mxu0 %v1443_v11  ;;  %1948 = vmatprep.subr.bf16.mxu1 %v1445_v14  ;;  %v698_v11 = vld [vmem:[%s5364_s16 + $0x8e8] sm:$0xff]  ;;  %v1346_v14 = vpack.c.bf16 %v696_v6, %v671_v5  ;;  %v423_v5 = vld [vmem:[%s5364_s16 + $0x50] sm:$0xff]  ;;  %v1224_v6 = vpack.c.bf16 %v449_v62, %v424_v61 }
  0x98   : > { %v1348_v15 = vpack.c.bf16 %v698_v11, %v673_v7  ;;  %v1172_v7 = vld [vmem:[%s5364_s16 + $0x17b8] sm:$0xff]  ;;  %v1174_v11 = vld [vmem:[%s5364_s16 + $0x17c8] sm:$0xff] }
  0x9a   : > { %1876 = vmatpush2.bf16.msra.mxu0 %v1442_v22  ;;  %1949 = vmatpush2.bf16.msra.mxu1 %v1444_v25  ;;  %v1324_v22 = vpack.c.bf16 %v649_v13, %v624_v12  ;;  %v574_v25 = vld [vmem:[%s5364_s16 + $0x508] sm:$0xff] }
  0x9b   : > { %1877 = vmatprep.subr.bf16.mxu0 %v1418_v26  ;;  %1950 = vmatprep.subr.bf16.mxu1 %v1420_v30  ;;  %v599_v26 = vld [vmem:[%s5364_s16 + $0x5d0] sm:$0xff] }
  0x9c   : > { %v571_v30 = vld [vmem:[%s5364_s16 + $0x4f0] sm:$0xff]  ;;  %v1299_v33 = vpack.c.bf16 %v599_v26, %v574_v25 }
  0x9e   : > { %1878 = vmatpush2.bf16.msra.mxu0 %v1417_v37  ;;  %1951 = vmatpush2.bf16.msra.mxu1 %v1419_v39  ;;  %v524_v37 = vld [vmem:[%s5364_s16 + $0x378] sm:$0xff]  ;;  %v1296_v39 = vpack.c.bf16 %v596_v31, %v571_v30 }
  0x9f   : > { %1993 = vmatprep.subr.bf16.mxu0 %v1397_v40  ;;  %2066 = vmatprep.subr.bf16.mxu1 %v1399_v44  ;;  %v1298_v40 = vpack.c.bf16 %v598_v34, %v573_v32  ;;  %v523_v44 = vld [vmem:[%s5364_s16 + $0x370] sm:$0xff]  ;;  %v1274_v46 = vpack.c.bf16 %v549_v38, %v524_v37  ;;  %v1148_v31 = vld [vmem:[%s5364_s16 + $0x16f8] sm:$0xff]  ;;  %v1074_v34 = vld [vmem:[%s5364_s16 + $0x14a8] sm:$0xff] }
  0xa0   : > { %v1072_v32 = vld [vmem:[%s5364_s16 + $0x1498] sm:$0xff] }
  0xa1   : > { %1880 = vmatmul.mubr.bf16.vlgmr.msra.gmra.mxu0 %v5507_v17  ;;  %1953 = vmatmul.mubr.bf16.vlgmr.msra.gmra.mxu1 %v5507_v17  ;;  %v622_v17 = vld [vmem:[%s5364_s16 + $0x688] sm:$0xff] }
  0xa2   : > { %1994 = vmatpush1.bf16.msra.mxu0 %v1396_v53  ;;  %2067 = vmatpush1.bf16.msra.mxu1 %v1398_v54  ;;  %v1322_v16 = vpack.c.bf16 %v647_v0, %v622_v17  ;;  %v1247_v54 = vpack.c.bf16 %v497_v49, %v472_v48  ;;  %v1199_v17 = vld [vmem:[%s5364_s16 + $0x1890] sm:$0xff]  ;;  %v1049_v48 = vld [vmem:[%s5364_s16 + $0x13e0] sm:$0xff] }
  0xa3   : > { %1995 = vmatprep.subr.bf16.mxu0 %v1372_v55  ;;  %2068 = vmatprep.subr.bf16.mxu1 %v1374_v59  ;;  %v471_v55 = vld [vmem:[%s5364_s16 + $0x1d0] sm:$0xff]  ;;  %v498_v59 = vld [vmem:[%s5364_s16 + $0x2a8] sm:$0xff]  ;;  %v1599_v18 = vpack.c.bf16 %v1199_v17, %v1174_v11 }
  0xa4   : > { %1889 = vmatprep.mubr.bf16.mxu0 %v5514_v21  ;;  %1962 = vmatprep.mubr.bf16.mxu1 %v5514_v21  ;;  %v648_v21 = vld [vmem:[%s5364_s16 + $0x758] sm:$0xff]  ;;  %v1246_v63 = vpack.c.bf16 %v496_v56, %v471_v55  ;;  %v1248_v1 = vpack.c.bf16 %v498_v59, %v473_v57  ;;  %v974_v59 = vld [vmem:[%s5364_s16 + $0x1188] sm:$0xff] }
  0xa5   : > { %v1323_v28 = vpack.c.bf16 %v648_v21, %v623_v20  ;;  %v1122_v20 = vld [vmem:[%s5364_s16 + $0x1628] sm:$0xff]  ;;  %v1124_v21 = vld [vmem:[%s5364_s16 + $0x1638] sm:$0xff] }
  0xa6   : > { %1996 = vmatpush1.bf16.msra.mxu0 %v1371_v2  ;;  %2069 = vmatpush1.bf16.msra.mxu1 %v1373_v3  ;;  %v421_v3 = vld [vmem:[%s5364_s16 + $0x40] sm:$0xff]  ;;  %v1574_v30 = vpack.c.bf16 %v1149_v23, %v1124_v21  ;;  %v1048_v56 = vld [vmem:[%s5364_s16 + $0x13d8] sm:$0xff] }
  0xa7   : > { %1997 = vmatprep.subr.bf16.mxu0 %v1347_v4  ;;  %2070 = vmatprep.subr.bf16.mxu1 %v1349_v9  ;;  %v446_v4 = vld [vmem:[%s5364_s16 + $0x108] sm:$0xff]  ;;  %v1197_v9 = vld [vmem:[%s5364_s16 + $0x1880] sm:$0xff]  ;;  %v972_v57 = vld [vmem:[%s5364_s16 + $0x1178] sm:$0xff] }
  0xa8   : > { %v1221_v0 = vpack.c.bf16 %v446_v4, %v421_v3  ;;  %v1597_v13 = vpack.c.bf16 %v1197_v9, %v1172_v7  ;;  %v998_v4 = vld [vmem:[%s5364_s16 + $0x1248] sm:$0xff]  ;;  %v949_v7 = vld [vmem:[%s5364_s16 + $0x10c0] sm:$0xff] }
  0xa9   : > { %1890 = vmatmul.mubr.bf16.gmra.mxu0 %v5538_v45  ;;  %1963 = vmatmul.mubr.bf16.gmra.mxu1 %v5538_v45  ;;  %v547_v45 = vld [vmem:[%s5364_s16 + $0x430] sm:$0xff] }
  0xaa   : > { %1998 = vmatpush1.bf16.msra.mxu0 %v1346_v14  ;;  %2071 = vmatpush1.bf16.msra.mxu1 %v1348_v15  ;;  %v1272_v41 = vpack.c.bf16 %v547_v45, %v522_v35  ;;  %v1171_v14 = vld [vmem:[%s5364_s16 + $0x17b0] sm:$0xff]  ;;  %v1196_v15 = vld [vmem:[%s5364_s16 + $0x1878] sm:$0xff] }
  0xab   : > { %1999 = vmatprep.subr.bf16.mxu0 %v1322_v16  ;;  %2072 = vmatprep.subr.bf16.mxu1 %v1324_v22  ;;  %v1173_v16 = vld [vmem:[%s5364_s16 + $0x17c0] sm:$0xff]  ;;  %v1147_v22 = vld [vmem:[%s5364_s16 + $0x16f0] sm:$0xff]  ;;  %v1596_v24 = vpack.c.bf16 %v1196_v15, %v1171_v14  ;;  %v948_v15 = vld [vmem:[%s5364_s16 + $0x10b8] sm:$0xff] }
  0xac   : > { %1899 = vmatprep.mubr.bf16.mxu0 %v5544_v47  ;;  %1972 = vmatprep.mubr.bf16.mxu1 %v5544_v47  ;;  %v548_v47 = vld [vmem:[%s5364_s16 + $0x438] sm:$0xff]  ;;  %v1598_v25 = vpack.c.bf16 %v1198_v19, %v1173_v16  ;;  %v1572_v26 = vpack.c.bf16 %v1147_v22, %v1122_v20  ;;  %v1099_v35 = vld [vmem:[%s5364_s16 + $0x1570] sm:$0xff]  ;;  %v874_v19 = vld [vmem:[%s5364_s16 + $0xe68] sm:$0xff] }
  0xad   : > { %v1273_v53 = vpack.c.bf16 %v548_v47, %v523_v44  ;;  %v1549_v42 = vpack.c.bf16 %v1099_v35, %v1074_v34  ;;  %v1022_v44 = vld [vmem:[%s5364_s16 + $0x1308] sm:$0xff]  ;;  %v1024_v47 = vld [vmem:[%s5364_s16 + $0x1318] sm:$0xff]  ;;  %v899_v20 = vld [vmem:[%s5364_s16 + $0xf30] sm:$0xff] }
  0xae   : > { %2000 = vmatpush1.bf16.msra.mxu0 %v1321_v27  ;;  %2073 = vmatpush1.bf16.msra.mxu1 %v1323_v28  ;;  %v1121_v27 = vld [vmem:[%s5364_s16 + $0x1620] sm:$0xff]  ;;  %v1146_v28 = vld [vmem:[%s5364_s16 + $0x16e8] sm:$0xff]  ;;  %v1524_v55 = vpack.c.bf16 %v1049_v48, %v1024_v47  ;;  %v872_v16 = vld [vmem:[%s5364_s16 + $0xe58] sm:$0xff] }
  0xaf   : > { %2001 = vmatprep.subr.bf16.mxu0 %v1297_v29  ;;  %2074 = vmatprep.subr.bf16.mxu1 %v1299_v33  ;;  %v1123_v29 = vld [vmem:[%s5364_s16 + $0x1630] sm:$0xff]  ;;  %v1097_v33 = vld [vmem:[%s5364_s16 + $0x1560] sm:$0xff]  ;;  %v1571_v45 = vpack.c.bf16 %v1146_v28, %v1121_v27  ;;  %v1449_v27 = vpack.c.bf16 %v899_v20, %v874_v19  ;;  %v898_v28 = vld [vmem:[%s5364_s16 + $0xf28] sm:$0xff] }
  0xb0   : > { %v1573_v37 = vpack.c.bf16 %v1148_v31, %v1123_v29  ;;  %v1547_v38 = vpack.c.bf16 %v1097_v33, %v1072_v32  ;;  %v822_v29 = vld [vmem:[%s5364_s16 + $0xcc8] sm:$0xff]  ;;  %v824_v31 = vld [vmem:[%s5364_s16 + $0xcd8] sm:$0xff]  ;;  %v849_v32 = vld [vmem:[%s5364_s16 + $0xda0] sm:$0xff] }
  0xb1   : > { %1900 = vmatmul.mubr.bf16.gmra.mxu0 %v5568_v8  ;;  %1973 = vmatmul.mubr.bf16.gmra.mxu1 %v5568_v8  ;;  %v447_v8 = vld [vmem:[%s5364_s16 + $0x110] sm:$0xff]  ;;  %v653_v19 = vld [vmem:[%s5364_s16 + $0x780] sm:$0xff] }
  0xb2   : > { %2002 = vmatpush1.bf16.msra.mxu0 %v1296_v39  ;;  %2075 = vmatpush1.bf16.msra.mxu1 %v1298_v40  ;;  %v1222_v2 = vpack.c.bf16 %v447_v8, %v422_v60  ;;  %v1071_v39 = vld [vmem:[%s5364_s16 + $0x1490] sm:$0xff]  ;;  %v1096_v40 = vld [vmem:[%s5364_s16 + $0x1558] sm:$0xff] }
  0xb3   : > { %2003 = vmatprep.subr.bf16.mxu0 %v1272_v41  ;;  %2076 = vmatprep.subr.bf16.mxu1 %v1274_v46  ;;  %v1073_v41 = vld [vmem:[%s5364_s16 + $0x14a0] sm:$0xff]  ;;  %v1047_v46 = vld [vmem:[%s5364_s16 + $0x13d0] sm:$0xff]  ;;  %v1546_v49 = vpack.c.bf16 %v1096_v40, %v1071_v39  ;;  %v1424_v39 = vpack.c.bf16 %v849_v32, %v824_v31  ;;  %v848_v40 = vld [vmem:[%s5364_s16 + $0xd98] sm:$0xff] }
  0xb4   : > { %1909 = vmatprep.mubr.bf16.mxu0 %v5574_v10  ;;  %1982 = vmatprep.mubr.bf16.mxu1 %v5574_v10  ;;  %v448_v10 = vld [vmem:[%s5364_s16 + $0x118] sm:$0xff]  ;;  %v1548_v50 = vpack.c.bf16 %v1098_v43, %v1073_v41  ;;  %v1522_v51 = vpack.c.bf16 %v1047_v46, %v1022_v44  ;;  %v999_v60 = vld [vmem:[%s5364_s16 + $0x1250] sm:$0xff]  ;;  %v778_v43 = vld [vmem:[%s5364_s16 + $0xb68] sm:$0xff] }
  0xb5   : > { %v1223_v12 = vpack.c.bf16 %v448_v10, %v423_v5  ;;  %v1499_v3 = vpack.c.bf16 %v999_v60, %v974_v59  ;;  %v922_v5 = vld [vmem:[%s5364_s16 + $0xfe8] sm:$0xff]  ;;  %v924_v10 = vld [vmem:[%s5364_s16 + $0xff8] sm:$0xff]  ;;  %v803_v44 = vld [vmem:[%s5364_s16 + $0xc30] sm:$0xff] }
  0xb6   : > { %2004 = vmatpush1.bf16.msra.mxu0 %v1271_v52  ;;  %2077 = vmatpush1.bf16.msra.mxu1 %v1273_v53  ;;  %v1021_v52 = vld [vmem:[%s5364_s16 + $0x1300] sm:$0xff]  ;;  %v1046_v53 = vld [vmem:[%s5364_s16 + $0x13c8] sm:$0xff]  ;;  %v1474_v14 = vpack.c.bf16 %v949_v7, %v924_v10  ;;  %v776_v41 = vld [vmem:[%s5364_s16 + $0xb58] sm:$0xff] }
  0xb7   : > { %2005 = vmatprep.subr.bf16.mxu0 %v1247_v54  ;;  %2078 = vmatprep.subr.bf16.mxu1 %v1249_v58  ;;  %v1023_v54 = vld [vmem:[%s5364_s16 + $0x1310] sm:$0xff]  ;;  %v997_v58 = vld [vmem:[%s5364_s16 + $0x1240] sm:$0xff]  ;;  %v1521_v8 = vpack.c.bf16 %v1046_v53, %v1021_v52  ;;  %v1403_v52 = vpack.c.bf16 %v803_v44, %v778_v43  ;;  %v802_v53 = vld [vmem:[%s5364_s16 + $0xc28] sm:$0xff] }
  0xb8   : > { %v1523_v61 = vpack.c.bf16 %v1048_v56, %v1023_v54  ;;  %v1497_v62 = vpack.c.bf16 %v997_v58, %v972_v57  ;;  %v726_v54 = vld [vmem:[%s5364_s16 + $0x9c8] sm:$0xff]  ;;  %v728_v56 = vld [vmem:[%s5364_s16 + $0x9d8] sm:$0xff]  ;;  %v753_v57 = vld [vmem:[%s5364_s16 + $0xaa0] sm:$0xff] }
  0xb9   : > { %1910 = vmatmul.mubr.bf16.gmra.mxu0 %v5598_v36  ;;  %1983 = vmatmul.mubr.bf16.gmra.mxu1 %v5598_v36  ;;  %v5788_v36 = vld [vmem:[%s8355_s2 + $0x4] ss:$8 sps:$4 sm:$0xff]   ;;  %v603_v32 = vld [vmem:[%s5364_s16 + $0x5f0] sm:$0xff]  ;;  %v528_v44 = vld [vmem:[%s5364_s16 + $0x398] sm:$0xff] }
  0xba   : > { %2006 = vmatpush1.bf16.msra.mxu0 %v1246_v63  ;;  %2079 = vmatpush1.bf16.msra.mxu1 %v1248_v1  ;;  %v971_v63 = vld [vmem:[%s5364_s16 + $0x1170] sm:$0xff]  ;;  %v996_v1 = vld [vmem:[%s5364_s16 + $0x1238] sm:$0xff]  ;;  %v578_v31 = vld [vmem:[%s5364_s16 + $0x528] sm:$0xff] }
  0xbb   : > { %2007 = vmatprep.subr.bf16.mxu0 %v1222_v2  ;;  %2080 = vmatprep.subr.bf16.mxu1 %v1224_v6  ;;  %v973_v2 = vld [vmem:[%s5364_s16 + $0x1180] sm:$0xff]  ;;  %v947_v6 = vld [vmem:[%s5364_s16 + $0x10b0] sm:$0xff]  ;;  %v1496_v9 = vpack.c.bf16 %v996_v1, %v971_v63  ;;  %v1378_v63 = vpack.c.bf16 %v753_v57, %v728_v56  ;;  %v752_v1 = vld [vmem:[%s5364_s16 + $0xa98] sm:$0xff] }
  0xbc   : > { %2025 = vmatprep.mubr.bf16.mxu0 %v5788_v36  ;;  %2098 = vmatprep.mubr.bf16.mxu1 %v5788_v36  ;;  %v1498_v11 = vpack.c.bf16 %v998_v4, %v973_v2  ;;  %v1472_v17 = vpack.c.bf16 %v947_v6, %v922_v5  ;;  %v676_v2 = vld [vmem:[%s5364_s16 + $0x838] sm:$0xff]  ;;  %v5867_v4 = vld [vmem:[%s8355_s2] ss:$8 sps:$4 sm:$0xff]   ;;  %v703_v6 = vld [vmem:[%s5364_s16 + $0x910] sm:$0xff] }
  0xbd   : > { %v678_v5 = vld [vmem:[%s5364_s16 + $0x848] sm:$0xff]  ;;  %v551_v43 = vld [vmem:[%s5364_s16 + $0x450] sm:$0xff]  ;;  %v501_v56 = vld [vmem:[%s5364_s16 + $0x2c0] sm:$0xff] }
  0xbe   : > { %2008 = vmatpush1.bf16.msra.mxu0 %v1221_v0  ;;  %2081 = vmatpush1.bf16.msra.mxu1 %v1223_v12  ;;  %v921_v0 = vld [vmem:[%s5364_s16 + $0xfe0] sm:$0xff]  ;;  %v946_v12 = vld [vmem:[%s5364_s16 + $0x10a8] sm:$0xff] }
  0xbf   : > { %2009 = vmatprep.subr.bf16.mxu0 %v1597_v13  ;;  %2082 = vmatprep.subr.bf16.mxu1 %v1599_v18  ;;  %v923_v13 = vld [vmem:[%s5364_s16 + $0xff0] sm:$0xff]  ;;  %v897_v18 = vld [vmem:[%s5364_s16 + $0xf20] sm:$0xff]  ;;  %v1471_v22 = vpack.c.bf16 %v946_v12, %v921_v0 }
  0xc0   : > { %v1473_v21 = vpack.c.bf16 %v948_v15, %v923_v13  ;;  %v1447_v23 = vpack.c.bf16 %v897_v18, %v872_v16  ;;  %v677_v0 = vld [vmem:[%s5364_s16 + $0x840] sm:$0xff]  ;;  %v5879_v12 = vld [vmem:[%s8355_s2 + $0x14] ss:$8 sps:$4 sm:$0xff]   ;;  %v1353_v13 = vpack.c.bf16 %v703_v6, %v678_v5  ;;  %v626_v15 = vld [vmem:[%s5364_s16 + $0x6a8] sm:$0xff] }
  0xc1   : > { %v651_v16 = vld [vmem:[%s5364_s16 + $0x770] sm:$0xff]  ;;  %v628_v18 = vld [vmem:[%s5364_s16 + $0x6b8] sm:$0xff]  ;;  %v5927_v57 = vld [vmem:[%s8355_s2 + $0x20] ss:$8 sps:$4 sm:$0xff]  }
  0xc2   : > { %2010 = vmatpush2.bf16.msra.mxu0 %v1596_v24  ;;  %2083 = vmatpush2.bf16.msra.mxu1 %v1598_v25  ;;  %v871_v24 = vld [vmem:[%s5364_s16 + $0xe50] sm:$0xff]  ;;  %v896_v25 = vld [vmem:[%s5364_s16 + $0xf18] sm:$0xff]  ;;  %v502_v5 = vld [vmem:[%s5364_s16 + $0x2c8] sm:$0xff] }
  0xc3   : > { %2011 = vmatprep.subr.bf16.mxu0 %v1572_v26  ;;  %2084 = vmatprep.subr.bf16.mxu1 %v1574_v30  ;;  %v873_v26 = vld [vmem:[%s5364_s16 + $0xe60] sm:$0xff]  ;;  %v847_v30 = vld [vmem:[%s5364_s16 + $0xd90] sm:$0xff]  ;;  %v1446_v33 = vpack.c.bf16 %v896_v25, %v871_v24  ;;  %v650_v24 = vld [vmem:[%s5364_s16 + $0x768] sm:$0xff] }
  0xc4   : > { %v1448_v34 = vpack.c.bf16 %v898_v28, %v873_v26  ;;  %v1422_v35 = vpack.c.bf16 %v847_v30, %v822_v29  ;;  %v627_v25 = vld [vmem:[%s5364_s16 + $0x6b0] sm:$0xff]  ;;  %v1328_v26 = vpack.c.bf16 %v653_v19, %v628_v18  ;;  %v576_v28 = vld [vmem:[%s5364_s16 + $0x518] sm:$0xff]  ;;  %v601_v29 = vld [vmem:[%s5364_s16 + $0x5e0] sm:$0xff] }
  0xc5   : > { %v5897_v30 = vld [vmem:[%s8355_s2 + $0x10] ss:$8 sps:$4 sm:$0xff]   ;;  %v426_v6 = vld [vmem:[%s5364_s16 + $0x68] sm:$0xff] }
  0xc6   : > { %2012 = vmatpush2.bf16.msra.mxu0 %v1571_v45  ;;  %2085 = vmatpush2.bf16.msra.mxu1 %v1573_v37  ;;  %v821_v45 = vld [vmem:[%s5364_s16 + $0xcc0] sm:$0xff]  ;;  %v846_v37 = vld [vmem:[%s5364_s16 + $0xd88] sm:$0xff]  ;;  %v452_v18 = vld [vmem:[%s5364_s16 + $0x138] sm:$0xff] }
  0xc7   : > { %2013 = vmatprep.subr.bf16.mxu0 %v1547_v38  ;;  %2086 = vmatprep.subr.bf16.mxu1 %v1549_v42  ;;  %v823_v38 = vld [vmem:[%s5364_s16 + $0xcd0] sm:$0xff]  ;;  %v801_v42 = vld [vmem:[%s5364_s16 + $0xc20] sm:$0xff]  ;;  %v1421_v46 = vpack.c.bf16 %v846_v37, %v821_v45  ;;  %v600_v37 = vld [vmem:[%s5364_s16 + $0x5d8] sm:$0xff] }
  0xc8   : > { %v1423_v47 = vpack.c.bf16 %v848_v40, %v823_v38  ;;  %v1401_v48 = vpack.c.bf16 %v801_v42, %v776_v41  ;;  %v575_v45 = vld [vmem:[%s5364_s16 + $0x510] sm:$0xff]  ;;  %v577_v38 = vld [vmem:[%s5364_s16 + $0x520] sm:$0xff]  ;;  %v1303_v40 = vpack.c.bf16 %v603_v32, %v578_v31  ;;  %v602_v41 = vld [vmem:[%s5364_s16 + $0x5e8] sm:$0xff] }
  0xc9   : > { %v526_v42 = vld [vmem:[%s5364_s16 + $0x388] sm:$0xff]  ;;  %v1176_v19 = vld [vmem:[%s5364_s16 + $0x17d8] sm:$0xff] }
  0xca   : > { %2014 = vmatpush2.bf16.msra.mxu0 %v1546_v49  ;;  %2087 = vmatpush2.bf16.msra.mxu1 %v1548_v50  ;;  %v775_v49 = vld [vmem:[%s5364_s16 + $0xb50] sm:$0xff]  ;;  %v800_v50 = vld [vmem:[%s5364_s16 + $0xc18] sm:$0xff]  ;;  %v1202_v32 = vld [vmem:[%s5364_s16 + $0x18a8] sm:$0xff] }
  0xcb   : > { %2015 = vmatprep.subr.bf16.mxu0 %v1522_v51  ;;  %2088 = vmatprep.subr.bf16.mxu1 %v1524_v55  ;;  %v777_v51 = vld [vmem:[%s5364_s16 + $0xb60] sm:$0xff]  ;;  %v751_v55 = vld [vmem:[%s5364_s16 + $0xa90] sm:$0xff]  ;;  %v1400_v58 = vpack.c.bf16 %v800_v50, %v775_v49  ;;  %v1276_v49 = vpack.c.bf16 %v551_v43, %v526_v42  ;;  %v1150_v42 = vld [vmem:[%s5364_s16 + $0x1708] sm:$0xff] }
  0xcc   : > { %v1402_v59 = vpack.c.bf16 %v802_v53, %v777_v51  ;;  %v1376_v60 = vpack.c.bf16 %v751_v55, %v726_v54  ;;  %v525_v50 = vld [vmem:[%s5364_s16 + $0x380] sm:$0xff]  ;;  %v550_v51 = vld [vmem:[%s5364_s16 + $0x448] sm:$0xff]  ;;  %v552_v54 = vld [vmem:[%s5364_s16 + $0x458] sm:$0xff] }
  0xcd   : > { %v476_v55 = vld [vmem:[%s5364_s16 + $0x1f8] sm:$0xff]  ;;  %v1127_v43 = vld [vmem:[%s5364_s16 + $0x1650] sm:$0xff] }
  0xce   : > { %2016 = vmatpush2.bf16.msra.mxu0 %v1521_v8  ;;  %2089 = vmatpush2.bf16.msra.mxu1 %v1523_v61  ;;  %v725_v8 = vld [vmem:[%s5364_s16 + $0x9c0] sm:$0xff]  ;;  %v750_v61 = vld [vmem:[%s5364_s16 + $0xa88] sm:$0xff] }
  0xcf   : > { %2017 = vmatprep.subr.bf16.mxu0 %v1497_v62  ;;  %2090 = vmatprep.subr.bf16.mxu1 %v1499_v3  ;;  %v727_v62 = vld [vmem:[%s5364_s16 + $0x9d0] sm:$0xff]  ;;  %v701_v3 = vld [vmem:[%s5364_s16 + $0x900] sm:$0xff]  ;;  %v1375_v10 = vpack.c.bf16 %v750_v61, %v725_v8  ;;  %v1251_v61 = vpack.c.bf16 %v501_v56, %v476_v55 }
  0xd0   : > { %v1377_v7 = vpack.c.bf16 %v752_v1, %v727_v62  ;;  %v475_v62 = vld [vmem:[%s5364_s16 + $0x1f0] sm:$0xff]  ;;  %v477_v1 = vld [vmem:[%s5364_s16 + $0x200] sm:$0xff] }
  0xd1   : > { %v1077_v55 = vld [vmem:[%s5364_s16 + $0x14c0] sm:$0xff] }
  0xd2   : > { %2018 = vmatpush2.bf16.msra.mxu0 %v1496_v9  ;;  %2091 = vmatpush2.bf16.msra.mxu1 %v1498_v11  ;;  %v1351_v9 = vpack.c.bf16 %v701_v3, %v676_v2  ;;  %v675_v11 = vld [vmem:[%s5364_s16 + $0x830] sm:$0xff] }
  0xd3   : > { %2019 = vmatprep.subr.bf16.mxu0 %v1472_v17  ;;  %2092 = vmatprep.subr.bf16.mxu1 %v1474_v14  ;;  %v700_v17 = vld [vmem:[%s5364_s16 + $0x8f8] sm:$0xff]  ;;  %v702_v14 = vld [vmem:[%s5364_s16 + $0x908] sm:$0xff] }
  0xd4   : > { %v1350_v20 = vpack.c.bf16 %v700_v17, %v675_v11  ;;  %v5939_v2 = vld [vmem:[%s8355_s2 + $0x34] ss:$8 sps:$4 sm:$0xff]   ;;  %v1252_v17 = vpack.c.bf16 %v502_v5, %v477_v1  ;;  %v1050_v5 = vld [vmem:[%s5364_s16 + $0x13e8] sm:$0xff] }
  0xd6   : > { %2020 = vmatpush2.bf16.msra.mxu0 %v1471_v22  ;;  %2093 = vmatpush2.bf16.msra.mxu1 %v1473_v21  ;;  %v1352_v22 = vpack.c.bf16 %v702_v14, %v677_v0  ;;  %v1326_v21 = vpack.c.bf16 %v651_v16, %v626_v15  ;;  %v450_v14 = vld [vmem:[%s5364_s16 + $0x128] sm:$0xff]  ;;  %v427_v15 = vld [vmem:[%s5364_s16 + $0x70] sm:$0xff] }
  0xd7   : > { %2021 = vmatprep.subr.bf16.mxu0 %v1447_v23  ;;  %2094 = vmatprep.subr.bf16.mxu1 %v1449_v27  ;;  %v625_v23 = vld [vmem:[%s5364_s16 + $0x6a0] sm:$0xff]  ;;  %v652_v27 = vld [vmem:[%s5364_s16 + $0x778] sm:$0xff] }
  0xda   : > { %2022 = vmatpush2.bf16.msra.mxu0 %v1446_v33  ;;  %2095 = vmatpush2.bf16.msra.mxu1 %v1448_v34  ;;  %v1325_v33 = vpack.c.bf16 %v650_v24, %v625_v23  ;;  %v1327_v34 = vpack.c.bf16 %v652_v27, %v627_v25  ;;  %v1203_v23 = vld [vmem:[%s5364_s16 + $0x18b0] sm:$0xff]  ;;  %v1227_v25 = vpack.c.bf16 %v452_v18, %v427_v15  ;;  %v1000_v18 = vld [vmem:[%s5364_s16 + $0x1258] sm:$0xff] }
  0xdb   : > { %2023 = vmatprep.subr.bf16.mxu0 %v1422_v35  ;;  %2096 = vmatprep.subr.bf16.mxu1 %v1424_v39  ;;  %v1301_v35 = vpack.c.bf16 %v601_v29, %v576_v28  ;;  %v5909_v39 = vld [vmem:[%s8355_s2 + $0x24] ss:$8 sps:$4 sm:$0xff]   ;;  %v1175_v27 = vld [vmem:[%s5364_s16 + $0x17d0] sm:$0xff]  ;;  %v1200_v28 = vld [vmem:[%s5364_s16 + $0x1898] sm:$0xff] }
  0xdc   : > { %v1177_v29 = vld [vmem:[%s5364_s16 + $0x17e0] sm:$0xff] }
  0xde   : > { %2024 = vmatpush2.bf16.msra.mxu0 %v1421_v46  ;;  %2097 = vmatpush2.bf16.msra.mxu1 %v1423_v47  ;;  %v553_v46 = vld [vmem:[%s5364_s16 + $0x460] sm:$0xff]  ;;  %v1300_v47 = vpack.c.bf16 %v600_v37, %v575_v45  ;;  %v1600_v37 = vpack.c.bf16 %v1200_v28, %v1175_v27 }
  0xdf   : > { %2139 = vmatprep.subr.bf16.mxu0 %v1401_v48  ;;  %2212 = vmatprep.subr.bf16.mxu1 %v1403_v52  ;;  %v1302_v48 = vpack.c.bf16 %v602_v41, %v577_v38  ;;  %v527_v52 = vld [vmem:[%s5364_s16 + $0x390] sm:$0xff]  ;;  %v1278_v53 = vpack.c.bf16 %v553_v46, %v528_v44  ;;  %v1153_v45 = vld [vmem:[%s5364_s16 + $0x1720] sm:$0xff]  ;;  %v1602_v38 = vpack.c.bf16 %v1202_v32, %v1177_v29  ;;  %v1152_v46 = vld [vmem:[%s5364_s16 + $0x1718] sm:$0xff] }
  0xe0   : > { %v1277_v8 = vpack.c.bf16 %v552_v54, %v527_v52  ;;  %v1125_v41 = vld [vmem:[%s5364_s16 + $0x1640] sm:$0xff]  ;;  %v1100_v54 = vld [vmem:[%s5364_s16 + $0x1578] sm:$0xff]  ;;  %v950_v32 = vld [vmem:[%s5364_s16 + $0x10c8] sm:$0xff] }
  0xe1   : > { %2026 = vmatmul.mubr.bf16.vlgmr.msra.gmra.mxu0 %v5867_v4  ;;  %2099 = vmatmul.mubr.bf16.vlgmr.msra.gmra.mxu1 %v5867_v4 }
  0xe2   : > { %2140 = vmatpush1.bf16.msra.mxu0 %v1400_v58  ;;  %2213 = vmatpush1.bf16.msra.mxu1 %v1402_v59  ;;  %v478_v58 = vld [vmem:[%s5364_s16 + $0x208] sm:$0xff]  ;;  %v503_v59 = vld [vmem:[%s5364_s16 + $0x2d0] sm:$0xff] }
  0xe3   : > { %2141 = vmatprep.subr.bf16.mxu0 %v1376_v60  ;;  %2214 = vmatprep.subr.bf16.mxu1 %v1378_v63  ;;  %v1275_v60 = vpack.c.bf16 %v550_v51, %v525_v50  ;;  %v500_v63 = vld [vmem:[%s5364_s16 + $0x2b8] sm:$0xff]  ;;  %v1253_v3 = vpack.c.bf16 %v503_v59, %v478_v58  ;;  %v1575_v50 = vpack.c.bf16 %v1150_v42, %v1125_v41  ;;  %v1102_v58 = vld [vmem:[%s5364_s16 + $0x1588] sm:$0xff] }
  0xe4   : > { %2035 = vmatprep.mubr.bf16.mxu0 %v5879_v12  ;;  %2108 = vmatprep.mubr.bf16.mxu1 %v5879_v12  ;;  %v1250_v11 = vpack.c.bf16 %v500_v63, %v475_v62  ;;  %v1577_v51 = vpack.c.bf16 %v1152_v46, %v1127_v43  ;;  %v1026_v59 = vld [vmem:[%s5364_s16 + $0x1328] sm:$0xff]  ;;  %v1552_v63 = vpack.c.bf16 %v1102_v58, %v1077_v55  ;;  %v900_v46 = vld [vmem:[%s5364_s16 + $0xf38] sm:$0xff] }
  0xe5   : > { %v850_v58 = vld [vmem:[%s5364_s16 + $0xda8] sm:$0xff] }
  0xe6   : > { %2142 = vmatpush1.bf16.msra.mxu0 %v1375_v10  ;;  %2215 = vmatpush1.bf16.msra.mxu1 %v1377_v7  ;;  %v451_v10 = vld [vmem:[%s5364_s16 + $0x130] sm:$0xff]  ;;  %v428_v7 = vld [vmem:[%s5364_s16 + $0x78] sm:$0xff] }
  0xe7   : > { %2143 = vmatprep.subr.bf16.mxu0 %v1351_v9  ;;  %2216 = vmatprep.subr.bf16.mxu1 %v1353_v13  ;;  %v453_v9 = vld [vmem:[%s5364_s16 + $0x140] sm:$0xff]  ;;  %v1226_v0 = vpack.c.bf16 %v451_v10, %v426_v6  ;;  %v1027_v6 = vld [vmem:[%s5364_s16 + $0x1330] sm:$0xff] }
  0xe8   : > { %v425_v13 = vld [vmem:[%s5364_s16 + $0x60] sm:$0xff]  ;;  %v1228_v16 = vpack.c.bf16 %v453_v9, %v428_v7  ;;  %v1052_v7 = vld [vmem:[%s5364_s16 + $0x13f8] sm:$0xff] }
  0xe9   : > { %2036 = vmatmul.mubr.bf16.gmra.mxu0 %v5897_v30  ;;  %2109 = vmatmul.mubr.bf16.gmra.mxu1 %v5897_v30  ;;  %v1225_v24 = vpack.c.bf16 %v450_v14, %v425_v13  ;;  %v976_v9 = vld [vmem:[%s5364_s16 + $0x1198] sm:$0xff]  ;;  %v1527_v14 = vpack.c.bf16 %v1052_v7, %v1027_v6 }
  0xea   : > { %2144 = vmatpush1.bf16.msra.mxu0 %v1350_v20  ;;  %2217 = vmatpush1.bf16.msra.mxu1 %v1352_v22  ;;  %v1201_v20 = vld [vmem:[%s5364_s16 + $0x18a0] sm:$0xff]  ;;  %v5957_v22 = vld [vmem:[%s8355_s2 + $0x30] ss:$8 sps:$4 sm:$0xff]  }
  0xeb   : > { %2145 = vmatprep.subr.bf16.mxu0 %v1326_v21  ;;  %2218 = vmatprep.subr.bf16.mxu1 %v1328_v26  ;;  %v1178_v21 = vld [vmem:[%s5364_s16 + $0x17e8] sm:$0xff]  ;;  %v1601_v26 = vpack.c.bf16 %v1201_v20, %v1176_v19  ;;  %v977_v19 = vld [vmem:[%s5364_s16 + $0x11a0] sm:$0xff]  ;;  %v804_v7 = vld [vmem:[%s5364_s16 + $0xc38] sm:$0xff] }
  0xec   : > { %2045 = vmatprep.mubr.bf16.mxu0 %v5909_v39  ;;  %2118 = vmatprep.mubr.bf16.mxu1 %v5909_v39  ;;  %v1603_v31 = vpack.c.bf16 %v1203_v23, %v1178_v21  ;;  %v1002_v21 = vld [vmem:[%s5364_s16 + $0x1268] sm:$0xff] }
  0xed   : > { %v926_v23 = vld [vmem:[%s5364_s16 + $0x1008] sm:$0xff]  ;;  %v1502_v28 = vpack.c.bf16 %v1002_v21, %v977_v19  ;;  %v729_v21 = vld [vmem:[%s5364_s16 + $0x9e0] sm:$0xff] }
  0xee   : > { %2146 = vmatpush1.bf16.msra.mxu0 %v1325_v33  ;;  %2219 = vmatpush1.bf16.msra.mxu1 %v1327_v34  ;;  %v1126_v33 = vld [vmem:[%s5364_s16 + $0x1648] sm:$0xff]  ;;  %v1151_v34 = vld [vmem:[%s5364_s16 + $0x1710] sm:$0xff] }
  0xef   : > { %2147 = vmatprep.subr.bf16.mxu0 %v1301_v35  ;;  %2220 = vmatprep.subr.bf16.mxu1 %v1303_v40  ;;  %v1128_v35 = vld [vmem:[%s5364_s16 + $0x1658] sm:$0xff]  ;;  %v1576_v40 = vpack.c.bf16 %v1151_v34, %v1126_v33  ;;  %v927_v33 = vld [vmem:[%s5364_s16 + $0x1010] sm:$0xff] }
  0xf0   : > { %v1578_v44 = vpack.c.bf16 %v1153_v45, %v1128_v35  ;;  %v952_v35 = vld [vmem:[%s5364_s16 + $0x10d8] sm:$0xff] }
  0xf1   : > { %2046 = vmatmul.mubr.bf16.gmra.mxu0 %v5927_v57  ;;  %2119 = vmatmul.mubr.bf16.gmra.mxu1 %v5927_v57  ;;  %v876_v45 = vld [vmem:[%s5364_s16 + $0xe78] sm:$0xff]  ;;  %v1477_v42 = vpack.c.bf16 %v952_v35, %v927_v33 }
  0xf2   : > { %2148 = vmatpush1.bf16.msra.mxu0 %v1300_v47  ;;  %2221 = vmatpush1.bf16.msra.mxu1 %v1302_v48  ;;  %v1076_v47 = vld [vmem:[%s5364_s16 + $0x14b8] sm:$0xff]  ;;  %v1078_v48 = vld [vmem:[%s5364_s16 + $0x14c8] sm:$0xff] }
  0xf3   : > { %2149 = vmatprep.subr.bf16.mxu0 %v1276_v49  ;;  %2222 = vmatprep.subr.bf16.mxu1 %v1278_v53  ;;  %v1103_v49 = vld [vmem:[%s5364_s16 + $0x1590] sm:$0xff] }
  0xf4   : > { %2055 = vmatprep.mubr.bf16.mxu0 %v5939_v2  ;;  %2128 = vmatprep.mubr.bf16.mxu1 %v5939_v2  ;;  %v1075_v53 = vld [vmem:[%s5364_s16 + $0x14b0] sm:$0xff]  ;;  %v1553_v56 = vpack.c.bf16 %v1103_v49, %v1078_v48  ;;  %v902_v48 = vld [vmem:[%s5364_s16 + $0xf48] sm:$0xff] }
  0xf5   : > { %v1550_v62 = vpack.c.bf16 %v1100_v54, %v1075_v53  ;;  %v826_v49 = vld [vmem:[%s5364_s16 + $0xce8] sm:$0xff] }
  0xf6   : > { %2150 = vmatpush1.bf16.msra.mxu0 %v1275_v60  ;;  %2223 = vmatpush1.bf16.msra.mxu1 %v1277_v8  ;;  %v1051_v60 = vld [vmem:[%s5364_s16 + $0x13f0] sm:$0xff]  ;;  %v1028_v8 = vld [vmem:[%s5364_s16 + $0x1338] sm:$0xff] }
  0xf7   : > { %2151 = vmatprep.subr.bf16.mxu0 %v1251_v61  ;;  %2224 = vmatprep.subr.bf16.mxu1 %v1253_v3  ;;  %v1053_v61 = vld [vmem:[%s5364_s16 + $0x1400] sm:$0xff]  ;;  %v1526_v1 = vpack.c.bf16 %v1051_v60, %v1026_v59  ;;  %v827_v59 = vld [vmem:[%s5364_s16 + $0xcf0] sm:$0xff] }
  0xf8   : > { %v1025_v3 = vld [vmem:[%s5364_s16 + $0x1320] sm:$0xff]  ;;  %v1528_v10 = vpack.c.bf16 %v1053_v61, %v1028_v8  ;;  %v852_v8 = vld [vmem:[%s5364_s16 + $0xdb8] sm:$0xff] }
  0xf9   : > { %2056 = vmatmul.mubr.bf16.gmra.mxu0 %v5957_v22  ;;  %2129 = vmatmul.mubr.bf16.gmra.mxu1 %v5957_v22  ;;  %v1525_v13 = vpack.c.bf16 %v1050_v5, %v1025_v3  ;;  %v780_v61 = vld [vmem:[%s5364_s16 + $0xb78] sm:$0xff]  ;;  %v1427_v5 = vpack.c.bf16 %v852_v8, %v827_v59  ;;  %v654_v8 = vld [vmem:[%s5364_s16 + $0x788] sm:$0xff] }
  0xfa   : > { %2152 = vmatpush1.bf16.msra.mxu0 %v1250_v11  ;;  %2225 = vmatpush1.bf16.msra.mxu1 %v1252_v17  ;;  %v1001_v11 = vld [vmem:[%s5364_s16 + $0x1260] sm:$0xff]  ;;  %v978_v17 = vld [vmem:[%s5364_s16 + $0x11a8] sm:$0xff] }
  0xfb   : > { %2153 = vmatprep.subr.bf16.mxu0 %v1226_v0  ;;  %2226 = vmatprep.subr.bf16.mxu1 %v1228_v16  ;;  %v1003_v0 = vld [vmem:[%s5364_s16 + $0x1270] sm:$0xff]  ;;  %v1501_v15 = vpack.c.bf16 %v1001_v11, %v976_v9  ;;  %v781_v9 = vld [vmem:[%s5364_s16 + $0xb80] sm:$0xff] }
  0xfc   : > { %2171 = vmatprep.mubr.bf16.mxu0 %v5788_v36  ;;  %2244 = vmatprep.mubr.bf16.mxu1 %v5788_v36  ;;  %v1101_v36 = vld [vmem:[%s5364_s16 + $0x1580] sm:$0xff]  ;;  %v975_v16 = vld [vmem:[%s5364_s16 + $0x1190] sm:$0xff]  ;;  %v1503_v20 = vpack.c.bf16 %v1003_v0, %v978_v17  ;;  %v806_v17 = vld [vmem:[%s5364_s16 + $0xc48] sm:$0xff] }
  0xfd   : > { %v1551_v52 = vpack.c.bf16 %v1101_v36, %v1076_v47  ;;  %v1500_v27 = vpack.c.bf16 %v1000_v18, %v975_v16  ;;  %v877_v47 = vld [vmem:[%s5364_s16 + $0xe80] sm:$0xff]  ;;  %v730_v0 = vld [vmem:[%s5364_s16 + $0x9e8] sm:$0xff]  ;;  %v1406_v19 = vpack.c.bf16 %v806_v17, %v781_v9 }
  0xfe   : > { %2154 = vmatpush1.bf16.msra.mxu0 %v1225_v24  ;;  %2227 = vmatpush1.bf16.msra.mxu1 %v1227_v25  ;;  %v951_v24 = vld [vmem:[%s5364_s16 + $0x10d0] sm:$0xff]  ;;  %v928_v25 = vld [vmem:[%s5364_s16 + $0x1018] sm:$0xff]  ;;  %v1452_v54 = vpack.c.bf16 %v902_v48, %v877_v47  ;;  %v757_v16 = vld [vmem:[%s5364_s16 + $0xac0] sm:$0xff] }
  0xff   : > { %2155 = vmatprep.subr.bf16.mxu0 %v1601_v26  ;;  %2228 = vmatprep.subr.bf16.mxu1 %v1603_v31  ;;  %v953_v26 = vld [vmem:[%s5364_s16 + $0x10e0] sm:$0xff]  ;;  %v1476_v29 = vpack.c.bf16 %v951_v24, %v926_v23  ;;  %v754_v23 = vld [vmem:[%s5364_s16 + $0xaa8] sm:$0xff]  ;;  %v731_v24 = vld [vmem:[%s5364_s16 + $0x9f0] sm:$0xff] }
 0x100   : > { %v925_v31 = vld [vmem:[%s5364_s16 + $0x1000] sm:$0xff]  ;;  %v1478_v34 = vpack.c.bf16 %v953_v26, %v928_v25  ;;  %v756_v26 = vld [vmem:[%s5364_s16 + $0xab8] sm:$0xff]  ;;  %v1379_v35 = vpack.c.bf16 %v754_v23, %v729_v21  ;;  %v579_v23 = vld [vmem:[%s5364_s16 + $0x530] sm:$0xff] }
 0x101   : > { %v1475_v41 = vpack.c.bf16 %v950_v32, %v925_v31  ;;  %v682_v31 = vld [vmem:[%s5364_s16 + $0x868] sm:$0xff]  ;;  %v707_v32 = vld [vmem:[%s5364_s16 + $0x930] sm:$0xff]  ;;  %v605_v17 = vld [vmem:[%s5364_s16 + $0x600] sm:$0xff] }
 0x102   : > { %2156 = vmatpush2.bf16.msra.mxu0 %v1600_v37  ;;  %2229 = vmatpush2.bf16.msra.mxu1 %v1602_v38  ;;  %v901_v37 = vld [vmem:[%s5364_s16 + $0xf40] sm:$0xff]  ;;  %v878_v38 = vld [vmem:[%s5364_s16 + $0xe88] sm:$0xff] }
 0x103   : > { %2157 = vmatprep.subr.bf16.mxu0 %v1576_v40  ;;  %2230 = vmatprep.subr.bf16.mxu1 %v1578_v44  ;;  %v903_v40 = vld [vmem:[%s5364_s16 + $0xf50] sm:$0xff]  ;;  %v1451_v43 = vpack.c.bf16 %v901_v37, %v876_v45  ;;  %v704_v37 = vld [vmem:[%s5364_s16 + $0x918] sm:$0xff] }
 0x104   : > { %v875_v44 = vld [vmem:[%s5364_s16 + $0xe70] sm:$0xff]  ;;  %v1453_v36 = vpack.c.bf16 %v903_v40, %v878_v38 }
 0x105   : > { %v1450_v53 = vpack.c.bf16 %v900_v46, %v875_v44  ;;  %v679_v45 = vld [vmem:[%s5364_s16 + $0x850] sm:$0xff]  ;;  %v706_v44 = vld [vmem:[%s5364_s16 + $0x928] sm:$0xff] }
 0x106   : > { %2158 = vmatpush2.bf16.msra.mxu0 %v1575_v50  ;;  %2231 = vmatpush2.bf16.msra.mxu1 %v1577_v51  ;;  %v851_v50 = vld [vmem:[%s5364_s16 + $0xdb0] sm:$0xff]  ;;  %v828_v51 = vld [vmem:[%s5364_s16 + $0xcf8] sm:$0xff]  ;;  %v630_v46 = vld [vmem:[%s5364_s16 + $0x6c8] sm:$0xff] }
 0x107   : > { %2159 = vmatprep.subr.bf16.mxu0 %v1551_v52  ;;  %2232 = vmatprep.subr.bf16.mxu1 %v1553_v56  ;;  %v853_v52 = vld [vmem:[%s5364_s16 + $0xdc0] sm:$0xff]  ;;  %v1426_v55 = vpack.c.bf16 %v851_v50, %v826_v49  ;;  %v1357_v49 = vpack.c.bf16 %v707_v32, %v682_v31  ;;  %v655_v50 = vld [vmem:[%s5364_s16 + $0x790] sm:$0xff] }
 0x108   : > { %v825_v56 = vld [vmem:[%s5364_s16 + $0xce0] sm:$0xff]  ;;  %v1428_v60 = vpack.c.bf16 %v853_v52, %v828_v51  ;;  %v632_v51 = vld [vmem:[%s5364_s16 + $0x6d8] sm:$0xff] }
 0x109   : > { %v1425_v3 = vpack.c.bf16 %v850_v58, %v825_v56  ;;  %v657_v52 = vld [vmem:[%s5364_s16 + $0x7a0] sm:$0xff] }
 0x10a   : > { %2160 = vmatpush2.bf16.msra.mxu0 %v1550_v62  ;;  %2233 = vmatpush2.bf16.msra.mxu1 %v1552_v63  ;;  %v805_v62 = vld [vmem:[%s5364_s16 + $0xc40] sm:$0xff]  ;;  %v782_v63 = vld [vmem:[%s5364_s16 + $0xb88] sm:$0xff] }
 0x10b   : > { %2161 = vmatprep.subr.bf16.mxu0 %v1526_v1  ;;  %2234 = vmatprep.subr.bf16.mxu1 %v1528_v10  ;;  %v807_v1 = vld [vmem:[%s5364_s16 + $0xc50] sm:$0xff]  ;;  %v1405_v6 = vpack.c.bf16 %v805_v62, %v780_v61  ;;  %v656_v62 = vld [vmem:[%s5364_s16 + $0x798] sm:$0xff] }
 0x10c   : > { %v779_v10 = vld [vmem:[%s5364_s16 + $0xb70] sm:$0xff]  ;;  %v1407_v11 = vpack.c.bf16 %v807_v1, %v782_v63  ;;  %v1330_v1 = vpack.c.bf16 %v655_v50, %v630_v46  ;;  %v557_v46 = vld [vmem:[%s5364_s16 + $0x480] sm:$0xff] }
 0x10d   : > { %v1404_v18 = vpack.c.bf16 %v804_v7, %v779_v10  ;;  %v631_v61 = vld [vmem:[%s5364_s16 + $0x6d0] sm:$0xff] }
 0x10e   : > { %2162 = vmatpush2.bf16.msra.mxu0 %v1525_v13  ;;  %2235 = vmatpush2.bf16.msra.mxu1 %v1527_v14  ;;  %v755_v13 = vld [vmem:[%s5364_s16 + $0xab0] sm:$0xff]  ;;  %v6035_v14 = vpop.permute.xlu0 %1623 }
 0x10f   : > { %2163 = vmatprep.subr.bf16.mxu0 %v1501_v15  ;;  %2236 = vmatprep.subr.bf16.mxu1 %v1503_v20  ;;  %v732_v15 = vld [vmem:[%s5364_s16 + $0x9f8] sm:$0xff]  ;;  %v1380_v20 = vpack.c.bf16 %v755_v13, %v730_v0  ;;  %v582_v0 = vld [vmem:[%s5364_s16 + $0x548] sm:$0xff]  ;;  %v607_v13 = vld [vmem:[%s5364_s16 + $0x610] sm:$0xff] }
 0x110   : > { %v1382_v25 = vpack.c.bf16 %v757_v16, %v732_v15  ;;  %v1331_v16 = vpack.c.bf16 %v656_v62, %v631_v61  ;;  %v556_v61 = vld [vmem:[%s5364_s16 + $0x478] sm:$0xff] }
 0x111   : > { %v480_v62 = vld [vmem:[%s5364_s16 + $0x218] sm:$0xff] }
 0x112   : > { %2164 = vmatpush2.bf16.msra.mxu0 %v1500_v27  ;;  %2237 = vmatpush2.bf16.msra.mxu1 %v1502_v28  ;;  %v680_v27 = vld [vmem:[%s5364_s16 + $0x858] sm:$0xff]  ;;  %v705_v28 = vld [vmem:[%s5364_s16 + $0x920] sm:$0xff]  ;;  %v6052_v40 = vpop.permute.xlu0 %1628 }
 0x113   : > { %2165 = vmatprep.subr.bf16.mxu0 %v1476_v29  ;;  %2238 = vmatprep.subr.bf16.mxu1 %v1478_v34 }
 0x116   : > { %2166 = vmatpush2.bf16.msra.mxu0 %v1475_v41  ;;  %2239 = vmatpush2.bf16.msra.mxu1 %v1477_v42  ;;  %v1381_v41 = vpack.c.bf16 %v756_v26, %v731_v24  ;;  %v1355_v42 = vpack.c.bf16 %v705_v28, %v680_v27  ;;  %v604_v24 = vld [vmem:[%s5364_s16 + $0x5f8] sm:$0xff]  ;;  %v1307_v28 = vpack.c.bf16 %v607_v13, %v582_v0 }
 0x117   : > { %2167 = vmatprep.subr.bf16.mxu0 %v1451_v43  ;;  %2240 = vmatprep.subr.bf16.mxu1 %v1453_v36  ;;  %v681_v43 = vld [vmem:[%s5364_s16 + $0x860] sm:$0xff]  ;;  %v504_v0 = vld [vmem:[%s5364_s16 + $0x2d8] sm:$0xff] }
 0x11a   : > { %2168 = vmatpush2.bf16.msra.mxu0 %v1450_v53  ;;  %2241 = vmatpush2.bf16.msra.mxu1 %v1452_v54  ;;  %v6067_v54 = vld [vmem:[%s5364_s16 + $0x6c0] sm:$0xff] }
 0x11b   : > { %2169 = vmatprep.subr.bf16.mxu0 %v1426_v55  ;;  %2242 = vmatprep.subr.bf16.mxu1 %v1428_v60  ;;  %v6069_v55 = vpop.permute.xlu1 %1633  ;;  %v1354_v60 = vpack.c.bf16 %v704_v37, %v679_v45  ;;  %v1329_v15 = vpack.c.bf16 %v654_v8, %v6067_v54  ;;  %v530_v45 = vld [vmem:[%s5364_s16 + $0x3a8] sm:$0xff]  ;;  %v555_v37 = vld [vmem:[%s5364_s16 + $0x470] sm:$0xff] }
 0x11c   : > { %v1280_v54 = vpack.c.bf16 %v555_v37, %v530_v45  ;;  %v432_v37 = vld [vmem:[%s5364_s16 + $0x98] sm:$0xff] }
 0x11e   : > { %2170 = vmatpush2.bf16.msra.mxu0 %v1425_v3  ;;  %2243 = vmatpush2.bf16.msra.mxu1 %v1427_v5  ;;  %v1332_v3 = vpack.c.bf16 %v657_v52, %v632_v51  ;;  %v580_v5 = vld [vmem:[%s5364_s16 + $0x538] sm:$0xff] }
 0x11f   : > { %2285 = vmatprep.subr.bf16.mxu0 %v1405_v6  ;;  %2358 = vmatprep.subr.bf16.mxu1 %v1407_v11  ;;  %v1305_v27 = vpack.c.bf16 %v605_v17, %v580_v5  ;;  %v479_v17 = vld [vmem:[%s5364_s16 + $0x210] sm:$0xff] }
 0x120   : > { %v1254_v45 = vpack.c.bf16 %v504_v0, %v479_v17 }
 0x121   : > { %v1735_v29 = vpop.f32.mrf.mxu0  ;;  %2172 = vmatmul.mubr.bf16.vlgmr.msra.gmra.mxu0 %v5867_v4  ;;  %v1808_v34 = vpop.f32.mrf.mxu1  ;;  %2245 = vmatmul.mubr.bf16.vlgmr.msra.gmra.mxu1 %v5867_v4 }
 0x122   : > { %v1736_v33 = vadd.f32 %v1735_v29, %v6035_v14  ;;  %2286 = vmatpush1.bf16.msra.mxu0 %v1404_v18  ;;  %2359 = vmatpush1.bf16.msra.mxu1 %v1406_v19  ;;  %v1809_v4 = vadd.f32 %v1808_v34, %v6035_v14  ;;  %v581_v29 = vld [vmem:[%s5364_s16 + $0x540] sm:$0xff] }
 0x123   : > { %v1737_v38 = vpop.f32.mrf.mxu0  ;;  %2287 = vmatprep.subr.bf16.mxu0 %v1380_v20  ;;  %v6059_v48 = vpop.f32.mrf.mxu1  ;;  %2360 = vmatprep.subr.bf16.mxu1 %v1382_v25 }
 0x124   : > { %v2642_v47 = vmax.f32 %v1736_v33, 0.0  ;;  %v1738_v36 = vadd.f32 %v1737_v38, %v6035_v14  ;;  %2181 = vmatprep.mubr.bf16.mxu0 %v5879_v12  ;;  %2254 = vmatprep.mubr.bf16.mxu1 %v5879_v12  ;;  %v1356_v12 = vpack.c.bf16 %v706_v44, %v681_v43  ;;  %v2644_v6 = vmax.f32 %v1809_v4, 0.0  ;;  %v6093_v33 = vpop.permute.xlu1 %1638  ;;  %v532_v44 = vld [vmem:[%s5364_s16 + $0x3b8] sm:$0xff] }
 0x125   : > { %v1739_v53 = vpop.f32.mrf.mxu0  ;;  %v1812_v59 = vpop.f32.mrf.mxu1  ;;  %v1304_v43 = vpack.c.bf16 %v604_v24, %v579_v23  ;;  %v1282_v8 = vpack.c.bf16 %v557_v46, %v532_v44  ;;  %v481_v24 = vld [vmem:[%s5364_s16 + $0x220] sm:$0xff]  ;;  %v454_v44 = vld [vmem:[%s5364_s16 + $0x148] sm:$0xff] }
 0x126   : > { %v2643_v56 = vmax.f32 %v1738_v36, 0.0  ;;  %v1740_v58 = vadd.f32 %v1739_v53, %v6052_v40  ;;  %2288 = vmatpush1.bf16.msra.mxu0 %v1379_v35  ;;  %2361 = vmatpush1.bf16.msra.mxu1 %v1381_v41  ;;  %v1813_v7 = vadd.f32 %v1812_v59, %v6052_v40  ;;  %v606_v35 = vld [vmem:[%s5364_s16 + $0x608] sm:$0xff]  ;;  %v529_v36 = vld [vmem:[%s5364_s16 + $0x3a0] sm:$0xff] }
 0x127   : > { %v1741_v63 = vpop.f32.mrf.mxu0  ;;  %2289 = vmatprep.subr.bf16.mxu0 %v1355_v42  ;;  %v6078_v11 = vpop.f32.mrf.mxu1  ;;  %2362 = vmatprep.subr.bf16.mxu1 %v1357_v49  ;;  %v554_v49 = vld [vmem:[%s5364_s16 + $0x468] sm:$0xff] }
 0x128   : > { %v2842_v10 = vadd.f32 %v2643_v56, %v2642_v47  ;;  %v1742_v9 = vadd.f32 %v1741_v63, %v6052_v40  ;;  %v2667_v20 = vmax.f32 %v1740_v58, 0.0  ;;  %v531_v56 = vld [vmem:[%s5364_s16 + $0x3b0] sm:$0xff]  ;;  %v505_v63 = vld [vmem:[%s5364_s16 + $0x2e0] sm:$0xff] }
 0x129   : > { %2182 = vmatmul.mubr.bf16.gmra.mxu0 %v5897_v30  ;;  %v1745_v18 = vpop.f32.mrf.mxu0  ;;  %2255 = vmatmul.mubr.bf16.gmra.mxu1 %v5897_v30  ;;  %v1818_v26 = vpop.f32.mrf.mxu1  ;;  %v2669_v30 = vmax.f32 %v1813_v7, 0.0  ;;  %v507_v7 = vld [vmem:[%s5364_s16 + $0x2f0] sm:$0xff]  ;;  %v1255_v23 = vpack.c.bf16 %v505_v63, %v480_v62 }
 0x12a   : > { %v6085_v19 = vadd.f32 %v2842_v10, %v2644_v6  ;;  %v2668_v21 = vmax.f32 %v1742_v9, 0.0  ;;  %2290 = vmatpush1.bf16.msra.mxu0 %v1354_v60  ;;  %v1746_v25 = vadd.f32 %v1745_v18, %v6069_v55  ;;  %2363 = vmatpush1.bf16.msra.mxu1 %v1356_v12  ;;  %v1819_v32 = vadd.f32 %v1818_v26, %v6069_v55  ;;  %v6112_v60 = vpop.permute.xlu0 %1643  ;;  %v482_v10 = vld [vmem:[%s5364_s16 + $0x228] sm:$0xff] }
 0x12b   : > { %2291 = vmatprep.subr.bf16.mxu0 %v1330_v1  ;;  %v1747_v31 = vpop.f32.mrf.mxu0  ;;  %2364 = vmatprep.subr.bf16.mxu1 %v1332_v3  ;;  %v6100_v42 = vpop.f32.mrf.mxu1  ;;  %v1279_v6 = vpack.c.bf16 %v554_v49, %v529_v36 }
 0x12c   : > { %v2870_v34 = vadd.f32 %v2668_v21, %v2667_v20  ;;  %2191 = vmatprep.mubr.bf16.mxu0 %v5909_v39  ;;  %v1748_v38 = vadd.f32 %v1747_v31, %v6069_v55  ;;  %v2692_v41 = vmax.f32 %v1746_v25, 0.0  ;;  %2264 = vmatprep.mubr.bf16.mxu1 %v5909_v39  ;;  %v2694_v51 = vmax.f32 %v1819_v32, 0.0  ;;  %v455_v31 = vld [vmem:[%s5364_s16 + $0x150] sm:$0xff] }
 0x12d   : > { %v1749_v47 = vpop.f32.mrf.mxu0  ;;  %v1822_v53 = vpop.f32.mrf.mxu1  ;;  %v1306_v39 = vpack.c.bf16 %v606_v35, %v581_v29  ;;  %v1281_v21 = vpack.c.bf16 %v556_v61, %v531_v56  ;;  %v430_v29 = vld [vmem:[%s5364_s16 + $0x88] sm:$0xff] }
 0x12e   : > { %v6105_v4 = vadd.f32 %v2870_v34, %v2669_v30  ;;  %2292 = vmatpush1.bf16.msra.mxu0 %v1329_v15  ;;  %v2693_v50 = vmax.f32 %v1748_v38, 0.0  ;;  %v1750_v52 = vadd.f32 %v1749_v47, %v6093_v33  ;;  %2365 = vmatpush1.bf16.msra.mxu1 %v1331_v16  ;;  %v1823_v59 = vadd.f32 %v1822_v53, %v6093_v33  ;;  %v457_v38 = vld [vmem:[%s5364_s16 + $0x160] sm:$0xff] }
 0x12f   : > { %2293 = vmatprep.subr.bf16.mxu0 %v1305_v27  ;;  %v1751_v58 = vpop.f32.mrf.mxu0  ;;  %2366 = vmatprep.subr.bf16.mxu1 %v1307_v28  ;;  %v6118_v5 = vpop.f32.mrf.mxu1  ;;  %v1257_v27 = vpack.c.bf16 %v507_v7, %v482_v10  ;;  %v506_v28 = vld [vmem:[%s5364_s16 + $0x2e8] sm:$0xff]  ;;  %v1232_v56 = vpack.c.bf16 %v457_v38, %v432_v37  ;;  %v1179_v7 = vld [vmem:[%s5364_s16 + $0x17f0] sm:$0xff]  ;;  %v1132_v38 = vld [vmem:[%s5364_s16 + $0x1678] sm:$0xff] }
 0x130   : > { %v2897_v12 = vadd.f32 %v2693_v50, %v2692_v41  ;;  %v1752_v1 = vadd.f32 %v1751_v58, %v6093_v33  ;;  %v2717_v3 = vmax.f32 %v1750_v52, 0.0  ;;  %v2719_v16 = vmax.f32 %v1823_v59, 0.0  ;;  %v431_v52 = vld [vmem:[%s5364_s16 + $0x90] sm:$0xff]  ;;  %v456_v58 = vld [vmem:[%s5364_s16 + $0x158] sm:$0xff] }
 0x131   : > { %2192 = vmatmul.mubr.bf16.gmra.mxu0 %v5927_v57  ;;  %v1755_v9 = vpop.f32.mrf.mxu0  ;;  %2265 = vmatmul.mubr.bf16.gmra.mxu1 %v5927_v57  ;;  %v1828_v18 = vpop.f32.mrf.mxu1  ;;  %v1180_v59 = vld [vmem:[%s5364_s16 + $0x17f8] sm:$0xff] }
 0x132   : > { %2294 = vmatpush1.bf16.msra.mxu0 %v1304_v43  ;;  %v6126_v13 = vadd.f32 %v2897_v12, %v2694_v51  ;;  %v2718_v15 = vmax.f32 %v1752_v1, 0.0  ;;  %v1756_v20 = vadd.f32 %v1755_v9, %v6112_v60  ;;  %2367 = vmatpush1.bf16.msra.mxu1 %v1306_v39  ;;  %v6130_v57 = vpop.permute.xlu1 %1648  ;;  %v1829_v26 = vadd.f32 %v1828_v18, %v6112_v60  ;;  %v429_v43 = vld [vmem:[%s5364_s16 + $0x80] sm:$0xff]  ;;  %v1204_v9 = vld [vmem:[%s5364_s16 + $0x18b8] sm:$0xff] }
 0x133   : > { %2295 = vmatprep.subr.bf16.mxu0 %v1280_v54  ;;  %v1757_v25 = vpop.f32.mrf.mxu0  ;;  %2368 = vmatprep.subr.bf16.mxu1 %v1282_v8  ;;  %v6138_v34 = vpop.f32.mrf.mxu1  ;;  %v1230_v51 = vpack.c.bf16 %v455_v31, %v430_v29  ;;  %v1205_v8 = vld [vmem:[%s5364_s16 + $0x18c0] sm:$0xff]  ;;  %v1229_v1 = vpack.c.bf16 %v454_v44, %v429_v43  ;;  %v1155_v29 = vld [vmem:[%s5364_s16 + $0x1730] sm:$0xff]  ;;  %v1604_v37 = vpack.c.bf16 %v1204_v9, %v1179_v7 }
 0x134   : > { %2201 = vmatprep.mubr.bf16.mxu0 %v5939_v2  ;;  %v2924_v32 = vadd.f32 %v2718_v15, %v2717_v3  ;;  %v1758_v30 = vadd.f32 %v1757_v25, %v6112_v60  ;;  %v2742_v35 = vmax.f32 %v1756_v20, 0.0  ;;  %2274 = vmatprep.mubr.bf16.mxu1 %v5939_v2  ;;  %v2744_v49 = vmax.f32 %v1829_v26, 0.0  ;;  %v6150_v54 = vpop.permute.xlu0 %1653  ;;  %v1182_v3 = vld [vmem:[%s5364_s16 + $0x1808] sm:$0xff] }
 0x135   : > { %v1759_v41 = vpop.f32.mrf.mxu0  ;;  %v1832_v50 = vpop.f32.mrf.mxu1  ;;  %v1256_v2 = vpack.c.bf16 %v506_v28, %v481_v24  ;;  %8375 = vst [vmem:[#allocation5_spill] sm:$0xff] %v6150_v54  ;;  %v1231_v20 = vpack.c.bf16 %v456_v58, %v431_v52  ;;  %v1130_v28 = vld [vmem:[%s5364_s16 + $0x1668] sm:$0xff]  ;;  %v1129_v52 = vld [vmem:[%s5364_s16 + $0x1660] sm:$0xff] }
 0x136   : > { %2296 = vmatpush1.bf16.msra.mxu0 %v1279_v6  ;;  %v6145_v46 = vadd.f32 %v2924_v32, %v2719_v16  ;;  %v1760_v47 = vadd.f32 %v1759_v41, %v6130_v57  ;;  %v2743_v36 = vmax.f32 %v1758_v30, 0.0  ;;  %2369 = vmatpush1.bf16.msra.mxu1 %v1281_v21  ;;  %v1833_v39 = vadd.f32 %v1832_v50, %v6130_v57  ;;  %v1207_v6 = vld [vmem:[%s5364_s16 + $0x18d0] sm:$0xff]  ;;  %v1157_v41 = vld [vmem:[%s5364_s16 + $0x1740] sm:$0xff] }
 0x137   : > { %2297 = vmatprep.subr.bf16.mxu0 %v1255_v23  ;;  %v1761_v53 = vpop.f32.mrf.mxu0  ;;  %2370 = vmatprep.subr.bf16.mxu1 %v1257_v27  ;;  %v6156_v12 = vpop.f32.mrf.mxu1  ;;  %v1605_v21 = vpack.c.bf16 %v1205_v8, %v1180_v59  ;;  %v1181_v23 = vld [vmem:[%s5364_s16 + $0x1800] sm:$0xff]  ;;  %v1607_v26 = vpack.c.bf16 %v1207_v6, %v1182_v3  ;;  %v1206_v27 = vld [vmem:[%s5364_s16 + $0x18c8] sm:$0xff]  ;;  %v1582_v59 = vpack.c.bf16 %v1157_v41, %v1132_v38  ;;  %v1156_v8 = vld [vmem:[%s5364_s16 + $0x1738] sm:$0xff] }
 0x138   : > { %v1762_v61 = vadd.f32 %v1761_v53, %v6130_v57  ;;  %v2767_v62 = vmax.f32 %v1760_v47, 0.0  ;;  %v2951_v63 = vadd.f32 %v2743_v36, %v2742_v35  ;;  %v2769_v15 = vmax.f32 %v1833_v39, 0.0  ;;  %v1154_v53 = vld [vmem:[%s5364_s16 + $0x1728] sm:$0xff]  ;;  %v1131_v39 = vld [vmem:[%s5364_s16 + $0x1670] sm:$0xff]  ;;  %v1029_v41 = vld [vmem:[%s5364_s16 + $0x1340] sm:$0xff] }
 0x139   : > { %2202 = vmatmul.mubr.bf16.gmra.mxu0 %v5957_v22  ;;  %v1765_v10 = vpop.f32.mrf.mxu0  ;;  %2275 = vmatmul.mubr.bf16.gmra.mxu1 %v5957_v22  ;;  %v1838_v16 = vpop.f32.mrf.mxu1  ;;  %v1082_v6 = vld [vmem:[%s5364_s16 + $0x14e8] sm:$0xff]  ;;  %v1579_v7 = vpack.c.bf16 %v1154_v53, %v1129_v52  ;;  %v1007_v52 = vld [vmem:[%s5364_s16 + $0x1290] sm:$0xff] }
 0x13a   : > { %2298 = vmatpush1.bf16.msra.mxu0 %v1254_v45  ;;  %v2768_v17 = vmax.f32 %v1762_v61, 0.0  ;;  %v6164_v0 = vadd.f32 %v2951_v63, %v2744_v49  ;;  %v1766_v18 = vadd.f32 %v1765_v10, %v6150_v54  ;;  %2371 = vmatpush1.bf16.msra.mxu1 %v1256_v2  ;;  %v6168_v22 = vpop.permute.xlu1 %1658  ;;  %v1839_v25 = vadd.f32 %v1838_v16, %v6150_v54  ;;  %v6180_v45 = vld [vmem:[%s8355_s2 + $0x4] ss:$8 sps:$4 sm:$0xff]   ;;  %v1080_v61 = vld [vmem:[%s5364_s16 + $0x14d8] sm:$0xff]  ;;  %v1107_v10 = vld [vmem:[%s5364_s16 + $0x15b0] sm:$0xff] }
 0x13b   : > { %2299 = vmatprep.subr.bf16.mxu0 %v1230_v51  ;;  %v1767_v24 = vpop.f32.mrf.mxu0  ;;  %8376 = vst [vmem:[#allocation6_spill] sm:$0xff] %v6168_v22  ;;  %2372 = vmatprep.subr.bf16.mxu1 %v1232_v56  ;;  %v6175_v30 = vpop.f32.mrf.mxu1  ;;  %v1606_v2 = vpack.c.bf16 %v1206_v27, %v1181_v23  ;;  %v1580_v51 = vpack.c.bf16 %v1155_v29, %v1130_v28  ;;  %v1081_v23 = vld [vmem:[%s5364_s16 + $0x14e0] sm:$0xff]  ;;  %v1055_v27 = vld [vmem:[%s5364_s16 + $0x1410] sm:$0xff]  ;;  %v1032_v29 = vld [vmem:[%s5364_s16 + $0x1358] sm:$0xff] }
 0x13c   : > { %v2978_v31 = vadd.f32 %v2768_v17, %v2767_v62  ;;  %v1768_v32 = vadd.f32 %v1767_v24, %v6150_v54  ;;  %v2792_v35 = vmax.f32 %v1766_v18, 0.0  ;;  %2317 = vmatprep.mubr.bf16.mxu0 %v6180_v45  ;;  %2390 = vmatprep.mubr.bf16.mxu1 %v6180_v45  ;;  %v2794_v49 = vmax.f32 %v1839_v25, 0.0  ;;  %v1105_v62 = vld [vmem:[%s5364_s16 + $0x15a0] sm:$0xff]  ;;  %v1106_v25 = vld [vmem:[%s5364_s16 + $0x15a8] sm:$0xff] }
 0x13d   : > { %v1769_v43 = vpop.f32.mrf.mxu0  ;;  %v1842_v50 = vpop.f32.mrf.mxu1  ;;  %v1581_v16 = vpack.c.bf16 %v1156_v8, %v1131_v39  ;;  %v1555_v18 = vpack.c.bf16 %v1105_v62, %v1080_v61  ;;  %v1557_v24 = vpack.c.bf16 %v1107_v10, %v1082_v6  ;;  %v981_v8 = vld [vmem:[%s5364_s16 + $0x11c0] sm:$0xff]  ;;  %v1006_v62 = vld [vmem:[%s5364_s16 + $0x1288] sm:$0xff] }
 0x13e   : > { %2300 = vmatpush1.bf16.msra.mxu0 %v1229_v1  ;;  %v6186_v44 = vadd.f32 %v2978_v31, %v2769_v15  ;;  %v1770_v47 = vadd.f32 %v1769_v43, %v6168_v22  ;;  %v2793_v36 = vmax.f32 %v1768_v32, 0.0  ;;  %2373 = vmatpush1.bf16.msra.mxu1 %v1231_v20  ;;  %v1843_v58 = vadd.f32 %v1842_v50, %v6168_v22  ;;  %v1079_v20 = vld [vmem:[%s5364_s16 + $0x14d0] sm:$0xff]  ;;  %v1057_v31 = vld [vmem:[%s5364_s16 + $0x1420] sm:$0xff]  ;;  %v1054_v43 = vld [vmem:[%s5364_s16 + $0x1408] sm:$0xff] }
 0x13f   : > { %2301 = vmatprep.subr.bf16.mxu0 %v1605_v21  ;;  %v1771_v56 = vpop.f32.mrf.mxu0  ;;  %2374 = vmatprep.subr.bf16.mxu1 %v1607_v26  ;;  %v1104_v21 = vld [vmem:[%s5364_s16 + $0x1598] sm:$0xff]  ;;  %v1030_v26 = vld [vmem:[%s5364_s16 + $0x1348] sm:$0xff]  ;;  %v1529_v53 = vpack.c.bf16 %v1054_v43, %v1029_v41  ;;  %v957_v6 = vld [vmem:[%s5364_s16 + $0x1100] sm:$0xff] }
 0x140   : > { %v1772_v63 = vadd.f32 %v1771_v56, %v6168_v22  ;;  %v2817_v1 = vmax.f32 %v1770_v47, 0.0  ;;  %v3005_v3 = vadd.f32 %v2793_v36, %v2792_v35  ;;  %v2819_v15 = vmax.f32 %v1843_v58, 0.0  ;;  %v1031_v47 = vld [vmem:[%s5364_s16 + $0x1350] sm:$0xff]  ;;  %v980_v50 = vld [vmem:[%s5364_s16 + $0x11b8] sm:$0xff]  ;;  %v906_v41 = vld [vmem:[%s5364_s16 + $0xf68] sm:$0xff] }
 0x141   : > { %v1554_v32 = vpack.c.bf16 %v1104_v21, %v1079_v20  ;;  %v1530_v38 = vpack.c.bf16 %v1055_v27, %v1030_v26  ;;  %v1532_v36 = vpack.c.bf16 %v1057_v31, %v1032_v29  ;;  %v979_v58 = vld [vmem:[%s5364_s16 + $0x11b0] sm:$0xff]  ;;  %v956_v21 = vld [vmem:[%s5364_s16 + $0x10f8] sm:$0xff]  ;;  %v830_v43 = vld [vmem:[%s5364_s16 + $0xd08] sm:$0xff] }
 0x142   : > { %2302 = vmatpush2.bf16.msra.mxu0 %v1604_v37  ;;  %v2818_v9 = vmax.f32 %v1772_v63, 0.0  ;;  %v6199_v17 = vadd.f32 %v3005_v3, %v2794_v49  ;;  %2375 = vmatpush2.bf16.msra.mxu1 %v1606_v2  ;;  %v1556_v37 = vpack.c.bf16 %v1106_v25, %v1081_v23  ;;  %v1056_v49 = vld [vmem:[%s5364_s16 + $0x1418] sm:$0xff]  ;;  %v1005_v2 = vld [vmem:[%s5364_s16 + $0x1280] sm:$0xff]  ;;  %v930_v63 = vld [vmem:[%s5364_s16 + $0x1028] sm:$0xff] }
 0x143   : > { %2303 = vmatprep.subr.bf16.mxu0 %v1580_v51  ;;  %2376 = vmatprep.subr.bf16.mxu1 %v1582_v59  ;;  %v982_v51 = vld [vmem:[%s5364_s16 + $0x11c8] sm:$0xff]  ;;  %v1531_v39 = vpack.c.bf16 %v1056_v49, %v1031_v47  ;;  %v1505_v56 = vpack.c.bf16 %v1005_v2, %v980_v50  ;;  %v1004_v59 = vld [vmem:[%s5364_s16 + $0x1278] sm:$0xff]  ;;  %v907_v26 = vld [vmem:[%s5364_s16 + $0xf70] sm:$0xff] }
 0x144   : > { %v3032_v28 = vadd.f32 %v2818_v9, %v2817_v1  ;;  %v1507_v61 = vpack.c.bf16 %v1007_v52, %v982_v51  ;;  %v955_v1 = vld [vmem:[%s5364_s16 + $0x10f0] sm:$0xff]  ;;  %v932_v3 = vld [vmem:[%s5364_s16 + $0x1038] sm:$0xff]  ;;  %v1504_v10 = vpack.c.bf16 %v1004_v59, %v979_v58  ;;  %v882_v25 = vld [vmem:[%s5364_s16 + $0xea8] sm:$0xff] }
 0x145   : > { %v1480_v9 = vpack.c.bf16 %v955_v1, %v930_v63  ;;  %v1482_v20 = vpack.c.bf16 %v957_v6, %v932_v3  ;;  %v880_v23 = vld [vmem:[%s5364_s16 + $0xe98] sm:$0xff]  ;;  %v879_v31 = vld [vmem:[%s5364_s16 + $0xe90] sm:$0xff]  ;;  %v857_v49 = vld [vmem:[%s5364_s16 + $0xde0] sm:$0xff] }
 0x146   : > { %2304 = vmatpush2.bf16.msra.mxu0 %v1579_v7  ;;  %v6209_v35 = vadd.f32 %v3032_v28, %v2819_v15  ;;  %2377 = vmatpush2.bf16.msra.mxu1 %v1581_v16  ;;  %v1506_v7 = vpack.c.bf16 %v1006_v62, %v981_v8  ;;  %v929_v15 = vld [vmem:[%s5364_s16 + $0x1020] sm:$0xff]  ;;  %v954_v16 = vld [vmem:[%s5364_s16 + $0x10e8] sm:$0xff]  ;;  %v855_v47 = vld [vmem:[%s5364_s16 + $0xdd0] sm:$0xff] }
 0x147   : > { %2305 = vmatprep.subr.bf16.mxu0 %v1555_v18  ;;  %2378 = vmatprep.subr.bf16.mxu1 %v1557_v24  ;;  %v931_v18 = vld [vmem:[%s5364_s16 + $0x1030] sm:$0xff]  ;;  %v905_v24 = vld [vmem:[%s5364_s16 + $0xf60] sm:$0xff]  ;;  %v1479_v27 = vpack.c.bf16 %v954_v16, %v929_v15  ;;  %v1430_v51 = vpack.c.bf16 %v855_v47, %v830_v43  ;;  %v856_v58 = vld [vmem:[%s5364_s16 + $0xdd8] sm:$0xff]  ;;  %v1815_v47 = vadd.f32 %v6078_v11, %v6052_v40 }
 0x148   : > { %v1481_v28 = vpack.c.bf16 %v956_v21, %v931_v18  ;;  %v1455_v29 = vpack.c.bf16 %v905_v24, %v880_v23  ;;  %v829_v52 = vld [vmem:[%s5364_s16 + $0xd00] sm:$0xff]  ;;  %v784_v59 = vld [vmem:[%s5364_s16 + $0xb98] sm:$0xff]  ;;  %v811_v62 = vld [vmem:[%s5364_s16 + $0xc70] sm:$0xff]  ;;  %v1811_v23 = vadd.f32 %v6059_v48, %v6035_v14  ;;  %v6274_v48 = vpop.f32.mrf.mxu1 }
 0x149   : > { %v809_v8 = vld [vmem:[%s5364_s16 + $0xc60] sm:$0xff]  ;;  %v783_v6 = vld [vmem:[%s5364_s16 + $0xb90] sm:$0xff]  ;;  %v810_v15 = vld [vmem:[%s5364_s16 + $0xc68] sm:$0xff] }
 0x14a   : > { %2306 = vmatpush2.bf16.msra.mxu0 %v1554_v32  ;;  %2379 = vmatpush2.bf16.msra.mxu1 %v1556_v37  ;;  %v904_v32 = vld [vmem:[%s5364_s16 + $0xf58] sm:$0xff]  ;;  %v881_v37 = vld [vmem:[%s5364_s16 + $0xea0] sm:$0xff]  ;;  %v1409_v3 = vpack.c.bf16 %v809_v8, %v784_v59  ;;  %v734_v16 = vld [vmem:[%s5364_s16 + $0xa08] sm:$0xff] }
 0x14b   : > { %2307 = vmatprep.subr.bf16.mxu0 %v1530_v38  ;;  %2380 = vmatprep.subr.bf16.mxu1 %v1532_v36  ;;  %v1457_v38 = vpack.c.bf16 %v907_v26, %v882_v25  ;;  %v832_v36 = vld [vmem:[%s5364_s16 + $0xd18] sm:$0xff]  ;;  %v1454_v50 = vpack.c.bf16 %v904_v32, %v879_v31  ;;  %v1456_v2 = vpack.c.bf16 %v906_v41, %v881_v37  ;;  %v759_v18 = vld [vmem:[%s5364_s16 + $0xad0] sm:$0xff]  ;;  %v761_v21 = vld [vmem:[%s5364_s16 + $0xae0] sm:$0xff] }
 0x14c   : > { %v6262_v25 = vld [vmem:[%s5364_s16 + $0xa00] sm:$0xff]  ;;  %v758_v26 = vld [vmem:[%s5364_s16 + $0xac8] sm:$0xff]  ;;  %v6269_v31 = vld [vmem:[%s5364_s16 + $0xad8] sm:$0xff] }
 0x14d   : > { %v6272_v32 = vld [vmem:[%s5364_s16 + $0x878] sm:$0xff]  ;;  %v6278_v41 = vld [vmem:[%s5364_s16 + $0x888] sm:$0xff]  ;;  %v6281_v43 = vld [vmem:[%s5364_s16 + $0x950] sm:$0xff] }
 0x14e   : > { %2308 = vmatpush2.bf16.msra.mxu0 %v1529_v53  ;;  %2381 = vmatpush2.bf16.msra.mxu1 %v1531_v39  ;;  %v854_v53 = vld [vmem:[%s5364_s16 + $0xdc8] sm:$0xff]  ;;  %v831_v39 = vld [vmem:[%s5364_s16 + $0xd10] sm:$0xff] }
 0x14f   : > { %2309 = vmatprep.subr.bf16.mxu0 %v1505_v56  ;;  %2382 = vmatprep.subr.bf16.mxu1 %v1507_v61  ;;  %v1432_v56 = vpack.c.bf16 %v857_v49, %v832_v36  ;;  %v786_v61 = vld [vmem:[%s5364_s16 + $0xba8] sm:$0xff]  ;;  %v1429_v63 = vpack.c.bf16 %v854_v53, %v829_v52  ;;  %v1431_v1 = vpack.c.bf16 %v856_v58, %v831_v39  ;;  %v2645_v52 = vmax.f32 %v1811_v23, 0.0  ;;  %v6312_v8 = vld [vmem:[%s5364_s16 + $0x7b0] sm:$0xff] }
 0x150   : > { %v6288_v49 = vld [vmem:[%s8355_s2] ss:$8 sps:$4 sm:$0xff]   ;;  %v1383_v39 = vpack.c.bf16 %v758_v26, %v6262_v25  ;;  %v6352_v26 = vld [vmem:[%s5364_s16 + $0x6f0] sm:$0xff] }
 0x151   : > { %v6306_v58 = vld [vmem:[%s5364_s16 + $0x948] sm:$0xff] }
 0x152   : > { %2310 = vmatpush2.bf16.msra.mxu0 %v1504_v10  ;;  %2383 = vmatpush2.bf16.msra.mxu1 %v1506_v7  ;;  %v808_v10 = vld [vmem:[%s5364_s16 + $0xc58] sm:$0xff]  ;;  %v785_v7 = vld [vmem:[%s5364_s16 + $0xba0] sm:$0xff]  ;;  %v6309_v59 = vld [vmem:[%s5364_s16 + $0x6e8] sm:$0xff] }
 0x153   : > { %2311 = vmatprep.subr.bf16.mxu0 %v1480_v9  ;;  %2384 = vmatprep.subr.bf16.mxu1 %v1482_v20  ;;  %v1411_v9 = vpack.c.bf16 %v811_v62, %v786_v61  ;;  %v736_v20 = vld [vmem:[%s5364_s16 + $0xa18] sm:$0xff]  ;;  %v1408_v24 = vpack.c.bf16 %v808_v10, %v783_v6  ;;  %v6316_v61 = vadd.f32 %v6100_v42, %v6069_v55  ;;  %v6324_v6 = vld [vmem:[%s5364_s16 + $0x7c0] sm:$0xff] }
 0x154   : > { %v1386_v37 = vpack.c.bf16 %v761_v21, %v736_v20  ;;  %v2844_v10 = vadd.f32 %v6085_v19, %v2645_v52  ;;  %v6339_v19 = vld [vmem:[%s5364_s16 + $0x6e0] sm:$0xff]  ;;  %v2670_v20 = vmax.f32 %v1815_v47, 0.0  ;;  %v1334_v25 = vpack.c.bf16 %v6312_v8, %v6309_v59  ;;  %v6370_v47 = vld [vmem:[%s5364_s16 + $0x630] sm:$0xff] }
 0x156   : > { %2312 = vmatpush2.bf16.msra.mxu0 %v1479_v27  ;;  %2385 = vmatpush2.bf16.msra.mxu1 %v1481_v28  ;;  %v1410_v27 = vpack.c.bf16 %v810_v15, %v785_v7  ;;  %v1384_v28 = vpack.c.bf16 %v759_v18, %v734_v16  ;;  %v6333_v15 = vld [vmem:[%s8355_s2 + $0x14] ss:$8 sps:$4 sm:$0xff]   ;;  %v1361_v16 = vpack.c.bf16 %v6281_v43, %v6278_v41  ;;  %v6342_v18 = vld [vmem:[%s5364_s16 + $0x7a8] sm:$0xff]  ;;  %v6364_v41 = vld [vmem:[%s5364_s16 + $0x620] sm:$0xff] }
 0x157   : > { %2313 = vmatprep.subr.bf16.mxu0 %v1455_v29  ;;  %2386 = vmatprep.subr.bf16.mxu1 %v1457_v38  ;;  %v6266_v29 = vld [vmem:[%s5364_s16 + $0xa10] sm:$0xff]  ;;  %v709_v38 = vld [vmem:[%s5364_s16 + $0x940] sm:$0xff]  ;;  %v6367_v43 = vld [vmem:[%s5364_s16 + $0x568] sm:$0xff] }
 0x15a   : > { %2314 = vmatpush2.bf16.msra.mxu0 %v1454_v50  ;;  %2387 = vmatpush2.bf16.msra.mxu1 %v1456_v2  ;;  %v6292_v50 = vld [vmem:[%s5364_s16 + $0x870] sm:$0xff]  ;;  %v6295_v2 = vld [vmem:[%s5364_s16 + $0x938] sm:$0xff] }
 0x15b   : > { %2315 = vmatprep.subr.bf16.mxu0 %v1430_v51  ;;  %2388 = vmatprep.subr.bf16.mxu1 %v1432_v56  ;;  %v6298_v51 = vld [vmem:[%s5364_s16 + $0x880] sm:$0xff]  ;;  %v1385_v56 = vpack.c.bf16 %v6269_v31, %v6266_v29  ;;  %v1358_v23 = vpack.c.bf16 %v6295_v2, %v6292_v50  ;;  %v2695_v50 = vmax.f32 %v6316_v61, 0.0  ;;  %v6376_v2 = vadd.f32 %v6118_v5, %v6093_v33  ;;  %v6385_v5 = vld [vmem:[%s8355_s2 + $0x10] ss:$8 sps:$4 sm:$0xff]  }
 0x15e   : > { %2316 = vmatpush2.bf16.msra.mxu0 %v1429_v63  ;;  %2389 = vmatpush2.bf16.msra.mxu1 %v1431_v1  ;;  %v1359_v1 = vpack.c.bf16 %v709_v38, %v6272_v32 }
 0x15f   : > { %2431 = vmatprep.subr.bf16.mxu0 %v1409_v3  ;;  %2504 = vmatprep.subr.bf16.mxu1 %v1411_v9  ;;  %v6321_v3 = vld [vmem:[%s5364_s16 + $0x6f8] sm:$0xff] }
 0x160   : > { %v1336_v38 = vpack.c.bf16 %v6324_v6, %v6321_v3  ;;  %v6403_v3 = vld [vmem:[%s5364_s16 + $0x560] sm:$0xff] }
 0x161   : > { %v1881_v36 = vpop.f32.mrf.mxu0  ;;  %2318 = vmatmul.mubr.bf16.vlgmr.msra.gmra.mxu0 %v6288_v49  ;;  %v1954_v11 = vpop.f32.mrf.mxu1  ;;  %2391 = vmatmul.mubr.bf16.vlgmr.msra.gmra.mxu1 %v6288_v49 }
 0x162   : > { %v1882_v53 = vadd.f32 %v1881_v36, %v6035_v14  ;;  %2432 = vmatpush1.bf16.msra.mxu0 %v1408_v24  ;;  %v1955_v62 = vadd.f32 %v1954_v11, %v6035_v14  ;;  %2505 = vmatpush1.bf16.msra.mxu1 %v1410_v27  ;;  %v1360_v24 = vpack.c.bf16 %v6306_v58, %v6298_v51  ;;  %v6355_v27 = vld [vmem:[%s5364_s16 + $0x7b8] sm:$0xff] }
 0x163   : > { %v1883_v63 = vpop.f32.mrf.mxu0  ;;  %2433 = vmatprep.subr.bf16.mxu0 %v1384_v28  ;;  %v6328_v9 = vpop.f32.mrf.mxu1  ;;  %2506 = vmatprep.subr.bf16.mxu1 %v1386_v37  ;;  %v6358_v28 = vld [vmem:[%s5364_s16 + $0x558] sm:$0xff]  ;;  %v2872_v36 = vadd.f32 %v6105_v4, %v2670_v20  ;;  %v1335_v8 = vpack.c.bf16 %v6355_v27, %v6352_v26  ;;  %v6416_v20 = vld [vmem:[%s5364_s16 + $0x490] sm:$0xff]  ;;  %v2720_v26 = vmax.f32 %v6376_v2, 0.0  ;;  %v6422_v27 = vadd.f32 %v6138_v34, %v6112_v60  ;;  %v6431_v34 = vld [vmem:[%s8355_s2 + $0x24] ss:$8 sps:$4 sm:$0xff]  }
 0x164   : > { %v2646_v7 = vmax.f32 %v1882_v53, 0.0  ;;  %v1884_v42 = vadd.f32 %v1883_v63, %v6035_v14  ;;  %2327 = vmatprep.mubr.bf16.mxu0 %v6333_v15  ;;  %2400 = vmatprep.mubr.bf16.mxu1 %v6333_v15  ;;  %v2648_v51 = vmax.f32 %v1955_v62, 0.0  ;;  %v1309_v61 = vpack.c.bf16 %v6364_v41, %v6358_v28  ;;  %v6397_v63 = vld [vmem:[%s5364_s16 + $0x550] sm:$0xff]  ;;  %v6451_v2 = vld [vmem:[%s5364_s16 + $0x488] sm:$0xff] }
 0x165   : > { %v1885_v21 = vpop.f32.mrf.mxu0  ;;  %v1958_v37 = vpop.f32.mrf.mxu1  ;;  %v1311_v62 = vpack.c.bf16 %v6370_v47, %v6367_v43 }
 0x166   : > { %v2845_v29 = vadd.f32 %v2844_v10, %v2646_v7  ;;  %v2647_v31 = vmax.f32 %v1884_v42, 0.0  ;;  %v1886_v32 = vadd.f32 %v1885_v21, %v6052_v40  ;;  %2434 = vmatpush1.bf16.msra.mxu0 %v1383_v39  ;;  %2507 = vmatpush1.bf16.msra.mxu1 %v1385_v56  ;;  %v1959_v39 = vadd.f32 %v1958_v37, %v6052_v40 }
 0x167   : > { %v1887_v52 = vpop.f32.mrf.mxu0  ;;  %2435 = vmatprep.subr.bf16.mxu0 %v1359_v1  ;;  %v6380_v4 = vpop.f32.mrf.mxu1  ;;  %2508 = vmatprep.subr.bf16.mxu1 %v1361_v16  ;;  %v1333_v56 = vpack.c.bf16 %v6342_v18, %v6339_v19  ;;  %v6400_v1 = vld [vmem:[%s5364_s16 + $0x618] sm:$0xff]  ;;  %v6410_v19 = vld [vmem:[%s5364_s16 + $0x628] sm:$0xff]  ;;  %v2899_v21 = vadd.f32 %v6126_v13, %v2695_v50  ;;  %v6448_v50 = vld [vmem:[%s5364_s16 + $0x3c0] sm:$0xff] }
 0x168   : > { %v2846_v53 = vadd.f32 %v2845_v29, %v2647_v31  ;;  %v2671_v11 = vmax.f32 %v1886_v32, 0.0  ;;  %v1888_v58 = vadd.f32 %v1887_v52, %v6052_v40  ;;  %v6413_v18 = vld [vmem:[%s5364_s16 + $0x3c8] sm:$0xff]  ;;  %v2673_v29 = vmax.f32 %v1959_v39, 0.0 }
 0x169   : > { %v1891_v59 = vpop.f32.mrf.mxu0  ;;  %2328 = vmatmul.mubr.bf16.gmra.mxu0 %v6385_v5  ;;  %v1964_v16 = vpop.f32.mrf.mxu1  ;;  %2401 = vmatmul.mubr.bf16.gmra.mxu1 %v6385_v5  ;;  %v1310_v47 = vpack.c.bf16 %v6410_v19, %v6403_v3  ;;  %v2745_v3 = vmax.f32 %v6422_v27, 0.0 }
 0x16a   : > { %v6405_v6 = vadd.f32 %v2846_v53, %v2648_v51  ;;  %v2873_v10 = vadd.f32 %v2872_v36, %v2671_v11  ;;  %v2672_v7 = vmax.f32 %v1888_v58, 0.0  ;;  %v1892_v42 = vadd.f32 %v1891_v59, %v6069_v55  ;;  %2436 = vmatpush1.bf16.msra.mxu0 %v1358_v23  ;;  %2509 = vmatpush1.bf16.msra.mxu1 %v1360_v24  ;;  %v6435_v24 = vld [vmem:[%s5364_s16 + $0x3d8] sm:$0xff]  ;;  %v6454_v51 = vld [vmem:[%s5364_s16 + $0x3d0] sm:$0xff] }
 0x16b   : > { %v1893_v23 = vpop.f32.mrf.mxu0  ;;  %v1965_v28 = vadd.f32 %v1964_v16, %v6069_v55  ;;  %2437 = vmatprep.subr.bf16.mxu0 %v1334_v25  ;;  %2510 = vmatprep.subr.bf16.mxu1 %v1336_v38  ;;  %v6426_v37 = vpop.f32.mrf.mxu1  ;;  %v6438_v25 = vld [vmem:[%s5364_s16 + $0x4a0] sm:$0xff]  ;;  %v1308_v38 = vpack.c.bf16 %v6400_v1, %v6397_v63  ;;  %v1284_v36 = vpack.c.bf16 %v6416_v20, %v6413_v18  ;;  %v6460_v59 = vld [vmem:[%s5364_s16 + $0x498] sm:$0xff] }
 0x16c   : > { %v2874_v31 = vadd.f32 %v2873_v10, %v2672_v7  ;;  %v2696_v32 = vmax.f32 %v1892_v42, 0.0  ;;  %v1894_v13 = vadd.f32 %v1893_v23, %v6069_v55  ;;  %2337 = vmatprep.mubr.bf16.mxu0 %v6431_v34  ;;  %2410 = vmatprep.mubr.bf16.mxu1 %v6431_v34  ;;  %v6463_v63 = vld [vmem:[%s5364_s16 + $0x238] sm:$0xff]  ;;  %v6466_v1 = vld [vmem:[%s5364_s16 + $0x300] sm:$0xff]  ;;  %v6471_v10 = vadd.f32 %v6156_v12, %v6130_v57 }
 0x16d   : > { %v1895_v41 = vpop.f32.mrf.mxu0  ;;  %v2698_v43 = vmax.f32 %v1965_v28, 0.0  ;;  %v1968_v58 = vpop.f32.mrf.mxu1  ;;  %v2926_v16 = vadd.f32 %v6145_v46, %v2720_v26  ;;  %v6489_v46 = vld [vmem:[%s8355_s2 + $0x20] ss:$8 sps:$4 sm:$0xff]   ;;  %v1285_v26 = vpack.c.bf16 %v6460_v59, %v6454_v51  ;;  %v1259_v23 = vpack.c.bf16 %v6466_v1, %v6463_v63  ;;  %v6499_v28 = vld [vmem:[%s5364_s16 + $0x230] sm:$0xff] }
 0x16e   : > { %v6456_v52 = vadd.f32 %v2874_v31, %v2673_v29  ;;  %v2900_v53 = vadd.f32 %v2899_v21, %v2696_v32  ;;  %v2697_v11 = vmax.f32 %v1894_v13, 0.0  ;;  %v1896_v39 = vadd.f32 %v1895_v41, %v6093_v33  ;;  %2438 = vmatpush1.bf16.msra.mxu0 %v1333_v56  ;;  %2511 = vmatpush1.bf16.msra.mxu1 %v1335_v8  ;;  %v6481_v8 = vld [vmem:[%s5364_s16 + $0x248] sm:$0xff]  ;;  %v6484_v21 = vld [vmem:[%s5364_s16 + $0x310] sm:$0xff]  ;;  %v6502_v29 = vld [vmem:[%s5364_s16 + $0x2f8] sm:$0xff] }
 0x16f   : > { %v1897_v7 = vpop.f32.mrf.mxu0  ;;  %v1969_v42 = vadd.f32 %v1968_v58, %v6093_v33  ;;  %2439 = vmatprep.subr.bf16.mxu0 %v1309_v61  ;;  %v1286_v56 = vpack.c.bf16 %v6438_v25, %v6435_v24  ;;  %2512 = vmatprep.subr.bf16.mxu1 %v1311_v62  ;;  %v6478_v12 = vpop.f32.mrf.mxu1  ;;  %v1283_v62 = vpack.c.bf16 %v6451_v2, %v6448_v50  ;;  %v6505_v31 = vld [vmem:[%s5364_s16 + $0x240] sm:$0xff]  ;;  %v6512_v50 = vld [vmem:[%s5364_s16 + $0x308] sm:$0xff]  ;;  %v6518_v51 = vld [vmem:[%s5364_s16 + $0x170] sm:$0xff] }
 0x170   : > { %v2901_v19 = vadd.f32 %v2900_v53, %v2697_v11  ;;  %v2721_v18 = vmax.f32 %v1896_v39, 0.0  ;;  %v1898_v20 = vadd.f32 %v1897_v7, %v6093_v33  ;;  %v6515_v2 = vld [vmem:[%s5364_s16 + $0xa8] sm:$0xff]  ;;  %v2770_v53 = vmax.f32 %v6471_v10, 0.0 }
 0x171   : > { %v1901_v61 = vpop.f32.mrf.mxu0  ;;  %v2723_v27 = vmax.f32 %v1969_v42, 0.0  ;;  %2338 = vmatmul.mubr.bf16.gmra.mxu0 %v6489_v46  ;;  %v1974_v41 = vpop.f32.mrf.mxu1  ;;  %2411 = vmatmul.mubr.bf16.gmra.mxu1 %v6489_v46  ;;  %v1261_v39 = vpack.c.bf16 %v6484_v21, %v6481_v8  ;;  %v2953_v58 = vadd.f32 %v6164_v0, %v2745_v3  ;;  %v6542_v0 = vld [vmem:[%s5364_s16 + $0x180] sm:$0xff]  ;;  %v1258_v7 = vpack.c.bf16 %v6502_v29, %v6499_v28  ;;  %v6561_v28 = vld [vmem:[%s5364_s16 + $0xb0] sm:$0xff]  ;;  %v6564_v29 = vld [vmem:[%s5364_s16 + $0x178] sm:$0xff] }
 0x172   : > { %v2927_v32 = vadd.f32 %v2926_v16, %v2721_v18  ;;  %v6507_v13 = vadd.f32 %v2901_v19, %v2698_v43  ;;  %v2722_v24 = vmax.f32 %v1898_v20, 0.0  ;;  %v1902_v25 = vadd.f32 %v1901_v61, %v6112_v60  ;;  %2440 = vmatpush1.bf16.msra.mxu0 %v1308_v38  ;;  %2513 = vmatpush1.bf16.msra.mxu1 %v1310_v47  ;;  %v6539_v47 = vld [vmem:[%s5364_s16 + $0xb8] sm:$0xff]  ;;  %v6552_v16 = vld [vmem:[%s5364_s16 + $0xa0] sm:$0xff]  ;;  %v6558_v61 = vld [vmem:[%s5364_s16 + $0x168] sm:$0xff] }
 0x173   : > { %v6523_v43 = vadd.f32 %v6175_v30, %v6150_v54  ;;  %v1903_v11 = vpop.f32.mrf.mxu0  ;;  %v1975_v38 = vadd.f32 %v1974_v41, %v6112_v60  ;;  %2441 = vmatprep.subr.bf16.mxu0 %v1284_v36  ;;  %2514 = vmatprep.subr.bf16.mxu1 %v1286_v56  ;;  %v6530_v10 = vpop.f32.mrf.mxu1  ;;  %v6535_v30 = vld [vmem:[%s8355_s2 + $0x34] ss:$8 sps:$4 sm:$0xff]   ;;  %v1260_v42 = vpack.c.bf16 %v6512_v50, %v6505_v31 }
 0x174   : > { %v2928_v59 = vadd.f32 %v2927_v32, %v2722_v24  ;;  %v2746_v63 = vmax.f32 %v1902_v25, 0.0  ;;  %v1904_v1 = vadd.f32 %v1903_v11, %v6112_v60  ;;  %2347 = vmatprep.mubr.bf16.mxu0 %v6535_v30  ;;  %2420 = vmatprep.mubr.bf16.mxu1 %v6535_v30  ;;  %v1234_v56 = vpack.c.bf16 %v6518_v51, %v6515_v2  ;;  %v1184_v25 = vld [vmem:[%s5364_s16 + $0x1818] sm:$0xff]  ;;  %v1211_v11 = vld [vmem:[%s5364_s16 + $0x18f0] sm:$0xff] }
 0x175   : > { %v1905_v36 = vpop.f32.mrf.mxu0  ;;  %v2748_v3 = vmax.f32 %v1975_v38, 0.0  ;;  %v1978_v21 = vpop.f32.mrf.mxu1  ;;  %v2795_v31 = vmax.f32 %v6523_v43, 0.0  ;;  %v1236_v24 = vpack.c.bf16 %v6542_v0, %v6539_v47  ;;  %v2980_v41 = vadd.f32 %v6186_v44, %v2770_v53 }
 0x176   : > { %v2954_v19 = vadd.f32 %v2953_v58, %v2746_v63  ;;  %v6554_v18 = vadd.f32 %v2928_v59, %v2723_v27  ;;  %v2747_v20 = vmax.f32 %v1904_v1, 0.0  ;;  %v1906_v8 = vadd.f32 %v1905_v36, %v6130_v57  ;;  %2442 = vmatpush1.bf16.msra.mxu0 %v1283_v62  ;;  %2515 = vmatpush1.bf16.msra.mxu1 %v1285_v26  ;;  %v1186_v26 = vld [vmem:[%s5364_s16 + $0x1828] sm:$0xff]  ;;  %v6585_v58 = vld [vmem:[%s8355_s2 + $0x30] ss:$8 sps:$4 sm:$0xff]  }
 0x177   : > { %v6569_v27 = vadd.f32 %v6274_v48, %v6168_v22  ;;  %v1907_v32 = vpop.f32.mrf.mxu0  ;;  %v1979_v62 = vadd.f32 %v1978_v21, %v6130_v57  ;;  %2443 = vmatprep.subr.bf16.mxu0 %v1259_v23  ;;  %2516 = vmatprep.subr.bf16.mxu1 %v1261_v39  ;;  %v6577_v43 = vpop.f32.mrf.mxu1  ;;  %v1209_v48 = vld [vmem:[%s5364_s16 + $0x18e0] sm:$0xff]  ;;  %v1233_v44 = vpack.c.bf16 %v6558_v61, %v6552_v16  ;;  %v6593_v39 = vld [vmem:[%s5364_s16 + $0x1810] sm:$0xff]  ;;  %v1208_v36 = vld [vmem:[%s5364_s16 + $0x18d8] sm:$0xff] }
 0x178   : > { %v2955_v50 = vadd.f32 %v2954_v19, %v2747_v20  ;;  %v2771_v2 = vmax.f32 %v1906_v8, 0.0  ;;  %v1908_v51 = vadd.f32 %v1907_v32, %v6130_v57  ;;  %v1235_v53 = vpack.c.bf16 %v6564_v29, %v6561_v28  ;;  %v1185_v19 = vld [vmem:[%s5364_s16 + $0x1820] sm:$0xff]  ;;  %v1210_v16 = vld [vmem:[%s5364_s16 + $0x18e8] sm:$0xff] }
 0x179   : > { %v1911_v23 = vpop.f32.mrf.mxu0  ;;  %v2773_v38 = vmax.f32 %v1979_v62, 0.0  ;;  %2348 = vmatmul.mubr.bf16.gmra.mxu0 %v6585_v58  ;;  %v1984_v0 = vpop.f32.mrf.mxu1  ;;  %2421 = vmatmul.mubr.bf16.gmra.mxu1 %v6585_v58  ;;  %v2820_v20 = vmax.f32 %v6569_v27, 0.0  ;;  %v1609_v21 = vpack.c.bf16 %v1209_v48, %v1184_v25  ;;  %v1611_v61 = vpack.c.bf16 %v1211_v11, %v1186_v26  ;;  %v1134_v28 = vld [vmem:[%s5364_s16 + $0x1688] sm:$0xff]  ;;  %v1159_v27 = vld [vmem:[%s5364_s16 + $0x1750] sm:$0xff]  ;;  %v1133_v11 = vld [vmem:[%s5364_s16 + $0x1680] sm:$0xff] }
 0x17a   : > { %v2981_v59 = vadd.f32 %v2980_v41, %v2771_v2  ;;  %v6595_v63 = vadd.f32 %v2955_v50, %v2748_v3  ;;  %v2772_v1 = vmax.f32 %v1908_v51, 0.0  ;;  %v1912_v47 = vadd.f32 %v1911_v23, %v6150_v54  ;;  %2444 = vmatpush1.bf16.msra.mxu0 %v1258_v7  ;;  %2517 = vmatpush1.bf16.msra.mxu1 %v1260_v42  ;;  %v1136_v42 = vld [vmem:[%s5364_s16 + $0x1698] sm:$0xff]  ;;  %v1161_v50 = vld [vmem:[%s5364_s16 + $0x1760] sm:$0xff]  ;;  %v1158_v23 = vld [vmem:[%s5364_s16 + $0x1748] sm:$0xff] }
 0x17b   : > { %v1913_v8 = vpop.f32.mrf.mxu0  ;;  %v1985_v3 = vadd.f32 %v1984_v0, %v6150_v54  ;;  %2445 = vmatprep.subr.bf16.mxu0 %v1234_v56  ;;  %v3007_v7 = vadd.f32 %v6199_v17, %v2795_v31  ;;  %2518 = vmatprep.subr.bf16.mxu1 %v1236_v24  ;;  %v6607_v41 = vpop.f32.mrf.mxu1  ;;  %v1608_v2 = vpack.c.bf16 %v1208_v36, %v6593_v39 }
 0x17c   : > { %v2982_v29 = vadd.f32 %v2981_v59, %v2772_v1  ;;  %v2796_v32 = vmax.f32 %v1912_v47, 0.0  ;;  %v1914_v62 = vadd.f32 %v1913_v8, %v6150_v54  ;;  %2463 = vmatprep.mubr.bf16.mxu0 %v6180_v45  ;;  %v1610_v51 = vpack.c.bf16 %v1210_v16, %v1185_v19  ;;  %2536 = vmatprep.mubr.bf16.mxu1 %v6180_v45  ;;  %v1135_v1 = vld [vmem:[%s5364_s16 + $0x1690] sm:$0xff]  ;;  %v1160_v19 = vld [vmem:[%s5364_s16 + $0x1758] sm:$0xff]  ;;  %v1109_v16 = vld [vmem:[%s5364_s16 + $0x15c0] sm:$0xff] }
 0x17d   : > { %v1915_v56 = vpop.f32.mrf.mxu0  ;;  %v2798_v25 = vmax.f32 %v1985_v3, 0.0  ;;  %v1988_v26 = vpop.f32.mrf.mxu1  ;;  %v1584_v45 = vpack.c.bf16 %v1159_v27, %v1134_v28  ;;  %v3034_v47 = vadd.f32 %v6209_v35, %v2820_v20  ;;  %v1583_v8 = vpack.c.bf16 %v1158_v23, %v1133_v11  ;;  %v1086_v3 = vld [vmem:[%s5364_s16 + $0x1508] sm:$0xff]  ;;  %v1085_v27 = vld [vmem:[%s5364_s16 + $0x1500] sm:$0xff] }
 0x17e   : > { %v3008_v17 = vadd.f32 %v3007_v7, %v2796_v32  ;;  %v6615_v31 = vadd.f32 %v2982_v29, %v2773_v38  ;;  %v2797_v24 = vmax.f32 %v1914_v62, 0.0  ;;  %v1916_v48 = vadd.f32 %v1915_v56, %v6168_v22  ;;  %2446 = vmatpush1.bf16.msra.mxu0 %v1233_v44  ;;  %2519 = vmatpush1.bf16.msra.mxu1 %v1235_v53  ;;  %v1084_v53 = vld [vmem:[%s5364_s16 + $0x14f8] sm:$0xff]  ;;  %v1111_v7 = vld [vmem:[%s5364_s16 + $0x15d0] sm:$0xff]  ;;  %v1110_v56 = vld [vmem:[%s5364_s16 + $0x15c8] sm:$0xff] }
 0x17f   : > { %v1917_v39 = vpop.f32.mrf.mxu0  ;;  %v1989_v59 = vadd.f32 %v1988_v26, %v6168_v22  ;;  %2447 = vmatprep.subr.bf16.mxu0 %v1609_v21  ;;  %v1586_v38 = vpack.c.bf16 %v1161_v50, %v1136_v42  ;;  %2520 = vmatprep.subr.bf16.mxu1 %v1611_v61  ;;  %v1585_v61 = vpack.c.bf16 %v1160_v19, %v1135_v1  ;;  %v1083_v32 = vld [vmem:[%s5364_s16 + $0x14f0] sm:$0xff]  ;;  %v1108_v62 = vld [vmem:[%s5364_s16 + $0x15b8] sm:$0xff]  ;;  %v1033_v23 = vld [vmem:[%s5364_s16 + $0x1360] sm:$0xff] }
 0x180   : > { %v3009_v0 = vadd.f32 %v3008_v17, %v2797_v24  ;;  %v2821_v44 = vmax.f32 %v1916_v48, 0.0  ;;  %v1918_v36 = vadd.f32 %v1917_v39, %v6168_v22  ;;  %v1559_v29 = vpack.c.bf16 %v1109_v16, %v1084_v53  ;;  %v1059_v17 = vld [vmem:[%s5364_s16 + $0x1430] sm:$0xff]  ;;  %v1036_v24 = vld [vmem:[%s5364_s16 + $0x1378] sm:$0xff]  ;;  %v1058_v39 = vld [vmem:[%s5364_s16 + $0x1428] sm:$0xff] }
 0x181   : > { %v2823_v20 = vmax.f32 %v1989_v59, 0.0  ;;  %v1561_v50 = vpack.c.bf16 %v1111_v7, %v1086_v3  ;;  %v1558_v48 = vpack.c.bf16 %v1108_v62, %v1083_v32  ;;  %v1560_v26 = vpack.c.bf16 %v1110_v56, %v1085_v27  ;;  %v1035_v59 = vld [vmem:[%s5364_s16 + $0x1370] sm:$0xff]  ;;  %v984_v1 = vld [vmem:[%s5364_s16 + $0x11d8] sm:$0xff]  ;;  %v985_v3 = vld [vmem:[%s5364_s16 + $0x11e0] sm:$0xff] }
 0x182   : > { %v3035_v21 = vadd.f32 %v3034_v47, %v2821_v44  ;;  %v6629_v28 = vadd.f32 %v3009_v0, %v2798_v25  ;;  %v2822_v35 = vmax.f32 %v1918_v36, 0.0  ;;  %2448 = vmatpush2.bf16.msra.mxu0 %v1608_v2  ;;  %2521 = vmatpush2.bf16.msra.mxu1 %v1610_v51  ;;  %v1034_v25 = vld [vmem:[%s5364_s16 + $0x1368] sm:$0xff]  ;;  %v1061_v2 = vld [vmem:[%s5364_s16 + $0x1440] sm:$0xff]  ;;  %v1011_v44 = vld [vmem:[%s5364_s16 + $0x12b0] sm:$0xff]  ;;  %v1533_v36 = vpack.c.bf16 %v1058_v39, %v1033_v23 }
 0x183   : > { %2449 = vmatprep.subr.bf16.mxu0 %v1584_v45  ;;  %2522 = vmatprep.subr.bf16.mxu1 %v1586_v38  ;;  %v1534_v11 = vpack.c.bf16 %v1059_v17, %v1034_v25  ;;  %v1536_v45 = vpack.c.bf16 %v1061_v2, %v1036_v24  ;;  %v1060_v38 = vld [vmem:[%s5364_s16 + $0x1438] sm:$0xff]  ;;  %v1009_v47 = vld [vmem:[%s5364_s16 + $0x12a0] sm:$0xff]  ;;  %v986_v0 = vld [vmem:[%s5364_s16 + $0x11e8] sm:$0xff] }
 0x184   : > { %v3036_v42 = vadd.f32 %v3035_v21, %v2822_v35  ;;  %v1535_v19 = vpack.c.bf16 %v1060_v38, %v1035_v59  ;;  %v1509_v53 = vpack.c.bf16 %v1009_v47, %v984_v1  ;;  %v983_v16 = vld [vmem:[%s5364_s16 + $0x11d0] sm:$0xff]  ;;  %v1511_v7 = vpack.c.bf16 %v1011_v44, %v986_v0  ;;  %v1010_v21 = vld [vmem:[%s5364_s16 + $0x12a8] sm:$0xff]  ;;  %v960_v17 = vld [vmem:[%s5364_s16 + $0x1118] sm:$0xff] }
 0x185   : > { %v934_v35 = vld [vmem:[%s5364_s16 + $0x1048] sm:$0xff]  ;;  %v1510_v62 = vpack.c.bf16 %v1010_v21, %v985_v3  ;;  %v935_v56 = vld [vmem:[%s5364_s16 + $0x1050] sm:$0xff]  ;;  %v884_v24 = vld [vmem:[%s5364_s16 + $0xeb8] sm:$0xff] }
 0x186   : > { %v6639_v51 = vadd.f32 %v3036_v42, %v2823_v20  ;;  %2450 = vmatpush2.bf16.msra.mxu0 %v1583_v8  ;;  %2523 = vmatpush2.bf16.msra.mxu1 %v1585_v61  ;;  %v1008_v8 = vld [vmem:[%s5364_s16 + $0x1298] sm:$0xff]  ;;  %v959_v20 = vld [vmem:[%s5364_s16 + $0x1110] sm:$0xff]  ;;  %v933_v42 = vld [vmem:[%s5364_s16 + $0x1040] sm:$0xff]  ;;  %v1485_v23 = vpack.c.bf16 %v960_v17, %v935_v56 }
 0x187   : > { %2451 = vmatprep.subr.bf16.mxu0 %v1559_v29  ;;  %2524 = vmatprep.subr.bf16.mxu1 %v1561_v50  ;;  %v936_v61 = vld [vmem:[%s5364_s16 + $0x1058] sm:$0xff]  ;;  %v961_v29 = vld [vmem:[%s5364_s16 + $0x1120] sm:$0xff]  ;;  %v1508_v32 = vpack.c.bf16 %v1008_v8, %v983_v16  ;;  %v1484_v27 = vpack.c.bf16 %v959_v20, %v934_v35  ;;  %v958_v50 = vld [vmem:[%s5364_s16 + $0x1108] sm:$0xff] }
 0x188   : > { %v1486_v25 = vpack.c.bf16 %v961_v29, %v936_v61  ;;  %v909_v2 = vld [vmem:[%s5364_s16 + $0xf80] sm:$0xff]  ;;  %v883_v59 = vld [vmem:[%s5364_s16 + $0xeb0] sm:$0xff]  ;;  %v910_v47 = vld [vmem:[%s5364_s16 + $0xf88] sm:$0xff] }
 0x189   : > { %v1459_v39 = vpack.c.bf16 %v909_v2, %v884_v24  ;;  %v885_v38 = vld [vmem:[%s5364_s16 + $0xec0] sm:$0xff]  ;;  %v834_v0 = vld [vmem:[%s5364_s16 + $0xd28] sm:$0xff]  ;;  %v859_v44 = vld [vmem:[%s5364_s16 + $0xdf0] sm:$0xff]  ;;  %v1957_v24 = vadd.f32 %v6328_v9, %v6035_v14  ;;  %v1961_v9 = vadd.f32 %v6380_v4, %v6052_v40 }
 0x18a   : > { %2452 = vmatpush2.bf16.msra.mxu0 %v1558_v48  ;;  %2525 = vmatpush2.bf16.msra.mxu1 %v1560_v26  ;;  %v886_v48 = vld [vmem:[%s5364_s16 + $0xec8] sm:$0xff]  ;;  %v911_v26 = vld [vmem:[%s5364_s16 + $0xf90] sm:$0xff]  ;;  %v1460_v16 = vpack.c.bf16 %v910_v47, %v885_v38  ;;  %v1434_v8 = vpack.c.bf16 %v859_v44, %v834_v0  ;;  %v833_v3 = vld [vmem:[%s5364_s16 + $0xd20] sm:$0xff] }
 0x18b   : > { %2453 = vmatprep.subr.bf16.mxu0 %v1534_v11  ;;  %2526 = vmatprep.subr.bf16.mxu1 %v1536_v45  ;;  %v1483_v11 = vpack.c.bf16 %v958_v50, %v933_v42  ;;  %v908_v45 = vld [vmem:[%s5364_s16 + $0xf78] sm:$0xff]  ;;  %v1461_v1 = vpack.c.bf16 %v911_v26, %v886_v48  ;;  %v835_v21 = vld [vmem:[%s5364_s16 + $0xd30] sm:$0xff]  ;;  %v1137_v56 = vld [vmem:[%s5364_s16 + $0x16a0] sm:$0xff]  ;;  %v2649_v47 = vmax.f32 %v1957_v24, 0.0 }
 0x18c   : > { %v860_v20 = vld [vmem:[%s5364_s16 + $0xdf8] sm:$0xff]  ;;  %v1187_v61 = vld [vmem:[%s5364_s16 + $0x1830] sm:$0xff]  ;;  %v737_v26 = vld [vmem:[%s5364_s16 + $0xa20] sm:$0xff] }
 0x18d   : > { %v1212_v29 = vld [vmem:[%s5364_s16 + $0x18f8] sm:$0xff]  ;;  %v787_v42 = vld [vmem:[%s5364_s16 + $0xbb0] sm:$0xff] }
 0x18e   : > { %2454 = vmatpush2.bf16.msra.mxu0 %v1533_v36  ;;  %2527 = vmatpush2.bf16.msra.mxu1 %v1535_v19  ;;  %v836_v36 = vld [vmem:[%s5364_s16 + $0xd38] sm:$0xff]  ;;  %v861_v19 = vld [vmem:[%s5364_s16 + $0xe00] sm:$0xff] }
 0x18f   : > { %2455 = vmatprep.subr.bf16.mxu0 %v1509_v53  ;;  %2528 = vmatprep.subr.bf16.mxu1 %v1511_v7  ;;  %v1458_v53 = vpack.c.bf16 %v908_v45, %v883_v59  ;;  %v858_v7 = vld [vmem:[%s5364_s16 + $0xde8] sm:$0xff]  ;;  %v1436_v35 = vpack.c.bf16 %v861_v19, %v836_v36  ;;  %v812_v50 = vld [vmem:[%s5364_s16 + $0xc78] sm:$0xff]  ;;  %v1087_v59 = vld [vmem:[%s5364_s16 + $0x1510] sm:$0xff] }
 0x190   : > { %v3227_v17 = vld [vmem:[%s6683_s24 + $0xf8] sm:$0xff]  ;;  %v1412_v2 = vpack.c.bf16 %v812_v50, %v787_v42  ;;  %v3210_v36 = vld [vmem:[%s6683_s24 + $0x70] sm:$0xff]  ;;  %v3224_v42 = vld [vmem:[%s6683_s24 + $0xe0] sm:$0xff] }
 0x191   : > { %v1112_v45 = vld [vmem:[%s5364_s16 + $0x15d8] sm:$0xff]  ;;  %v3208_v50 = vld [vmem:[%s6683_s24 + $0x60] sm:$0xff] }
 0x192   : > { %2456 = vmatpush2.bf16.msra.mxu0 %v1508_v32  ;;  %2529 = vmatpush2.bf16.msra.mxu1 %v1510_v62  ;;  %v1433_v32 = vpack.c.bf16 %v858_v7, %v833_v3  ;;  %v1435_v62 = vpack.c.bf16 %v860_v20, %v835_v21  ;;  %v6710_v4 = vld [vmem:[%s5364_s16 + $0x958] sm:$0xff]  ;;  %v3225_v7 = vld [vmem:[%s6683_s24 + $0xe8] sm:$0xff]  ;;  %v6719_v21 = vld [vmem:[%s5364_s16 + $0x1380] sm:$0xff]  ;;  %v2848_v20 = vadd.f32 %v6405_v6, %v2649_v47 }
 0x193   : > { %2457 = vmatprep.subr.bf16.mxu0 %v1484_v27  ;;  %2530 = vmatprep.subr.bf16.mxu1 %v1486_v25  ;;  %v1612_v27 = vpack.c.bf16 %v1212_v29, %v1187_v61  ;;  %v1162_v25 = vld [vmem:[%s5364_s16 + $0x1768] sm:$0xff] }
 0x194   : > { %v1587_v48 = vpack.c.bf16 %v1162_v25, %v1137_v56  ;;  %v6736_v56 = vld [vmem:[%s5364_s16 + $0x700] sm:$0xff] }
 0x196   : > { %2458 = vmatpush2.bf16.msra.mxu0 %v1483_v11  ;;  %2531 = vmatpush2.bf16.msra.mxu1 %v1485_v23  ;;  %v762_v11 = vld [vmem:[%s5364_s16 + $0xae8] sm:$0xff]  ;;  %v6694_v23 = vpop.f32.mrf.mxu1 }
 0x197   : > { %2459 = vmatprep.subr.bf16.mxu0 %v1459_v39  ;;  %2532 = vmatprep.subr.bf16.mxu1 %v1461_v1  ;;  %v3211_v39 = vld [vmem:[%s6683_s24 + $0x78] sm:$0xff]  ;;  %v3226_v1 = vld [vmem:[%s6683_s24 + $0xf0] sm:$0xff]  ;;  %v1387_v19 = vpack.c.bf16 %v762_v11, %v737_v26  ;;  %v6742_v26 = vld [vmem:[%s5364_s16 + $0x7c8] sm:$0xff] }
 0x198   : > { %v6748_v11 = vld [vmem:[%s5364_s16 + $0x12b8] sm:$0xff] }
 0x19a   : > { %2460 = vmatpush2.bf16.msra.mxu0 %v1458_v53  ;;  %2533 = vmatpush2.bf16.msra.mxu1 %v1460_v16  ;;  %v6707_v53 = vld [vmem:[%s5364_s16 + $0x890] sm:$0xff]  ;;  %v6714_v16 = vadd.f32 %v6426_v37, %v6069_v55 }
 0x19b   : > { %2461 = vmatprep.subr.bf16.mxu0 %v1434_v8  ;;  %2534 = vmatprep.subr.bf16.mxu1 %v1436_v35  ;;  %v6722_v35 = vld [vmem:[%s5364_s16 + $0x1448] sm:$0xff]  ;;  %v1362_v6 = vpack.c.bf16 %v6710_v4, %v6707_v53  ;;  %v3222_v53 = vld [vmem:[%s6683_s24 + $0xd0] sm:$0xff]  ;;  %v1337_v4 = vpack.c.bf16 %v6742_v26, %v6736_v56 }
 0x19e   : > { %2462 = vmatpush2.bf16.msra.mxu0 %v1433_v32  ;;  %2535 = vmatpush2.bf16.msra.mxu1 %v1435_v62  ;;  %v3209_v32 = vld [vmem:[%s6683_s24 + $0x68] sm:$0xff]  ;;  %v2674_v62 = vmax.f32 %v1961_v9, 0.0 }
 0x19f   : > { %4578 = vmatprep.subr.bf16.mxu0 %v1612_v27  ;;  %4618 = vmatprep.subr.mxu1 %v3227_v17 }
 0x1a1   : > { %v2027_v38 = vpop.f32.mrf.mxu0  ;;  %2464 = vmatmul.mubr.bf16.vlgmr.msra.gmra.mxu0 %v6288_v49  ;;  %v2100_v44 = vpop.f32.mrf.mxu1  ;;  %2537 = vmatmul.mubr.bf16.vlgmr.msra.gmra.mxu1 %v6288_v49  ;;  %v1562_v49 = vpack.c.bf16 %v1112_v45, %v1087_v59  ;;  %v2699_v59 = vmax.f32 %v6714_v16, 0.0  ;;  %v6754_v45 = vadd.f32 %v6478_v12, %v6093_v33 }
 0x1a2   : > { %v2028_v0 = vadd.f32 %v2027_v38, %v6035_v14  ;;  %4579 = vmatpush3.bf16.msra.mxu0 %v1412_v2  ;;  %v2101_v8 = vadd.f32 %v2100_v44, %v6035_v14  ;;  %4619 = vmatpush3.msra.mxu1 %v3211_v39  ;;  %v2876_v39 = vadd.f32 %v6456_v52, %v2674_v62 }
 0x1a3   : > { %v2029_v3 = vpop.f32.mrf.mxu0  ;;  %4580 = vmatprep.subr.bf16.mxu0 %v1587_v48  ;;  %v6726_v29 = vpop.f32.mrf.mxu1  ;;  %4620 = vmatprep.subr.mxu1 %v3226_v1  ;;  %v1537_v48 = vpack.c.bf16 %v6722_v35, %v6719_v21  ;;  %v3223_v1 = vld [vmem:[%s6683_s24 + $0xd8] sm:$0xff]  ;;  %v3206_v21 = vld [vmem:[%s6683_s24 + $0x50] sm:$0xff]  ;;  %v6783_v62 = vadd.f32 %v6530_v10, %v6112_v60  ;;  %v6792_v10 = vld [vmem:[%s5364_s16 + $0x1060] sm:$0xff] }
 0x1a4   : > { %v2650_v61 = vmax.f32 %v2028_v0, 0.0  ;;  %v2030_v37 = vadd.f32 %v2029_v3, %v6035_v14  ;;  %2473 = vmatprep.mubr.bf16.mxu0 %v6333_v15  ;;  %4621 = vmatpush3.msra.mxu1 %v3210_v36  ;;  %v2652_v9 = vmax.f32 %v2101_v8, 0.0 }
 0x1a5   : > { %v2031_v27 = vpop.f32.mrf.mxu0  ;;  %2546 = vmatprep.mubr.bf16.mxu1 %v6333_v15  ;;  %v2104_v2 = vpop.f32.mrf.mxu1  ;;  %4622 = vmatprep.subr.mxu1 %v3225_v7  ;;  %v6745_v15 = vld [vmem:[%s5364_s16 + $0x11f0] sm:$0xff] }
 0x1a6   : > { %v2849_v25 = vadd.f32 %v2848_v20, %v2650_v61  ;;  %v2651_v17 = vmax.f32 %v2030_v37, 0.0  ;;  %v2032_v24 = vadd.f32 %v2031_v27, %v6052_v40  ;;  %4581 = vmatpush3.bf16.msra.mxu0 %v1387_v19  ;;  %4623 = vmatpush3.msra.mxu1 %v3209_v32  ;;  %v2105_v44 = vadd.f32 %v2104_v2, %v6052_v40  ;;  %v3207_v19 = vld [vmem:[%s6683_s24 + $0x58] sm:$0xff]  ;;  %v6774_v20 = vld [vmem:[%s5364_s16 + $0x570] sm:$0xff] }
 0x1a7   : > { %v2033_v38 = vpop.f32.mrf.mxu0  ;;  %4582 = vmatprep.subr.bf16.mxu0 %v1562_v49  ;;  %v6759_v52 = vpop.f32.mrf.mxu1  ;;  %4624 = vmatprep.subr.mxu1 %v3224_v42  ;;  %v1512_v16 = vpack.c.bf16 %v6748_v11, %v6745_v15  ;;  %v6777_v61 = vld [vmem:[%s5364_s16 + $0x638] sm:$0xff]  ;;  %v2903_v37 = vadd.f32 %v6507_v13, %v2699_v59  ;;  %v2724_v32 = vmax.f32 %v6754_v45, 0.0  ;;  %v3221_v42 = vld [vmem:[%s6683_s24 + $0xc8] sm:$0xff]  ;;  %v3220_v15 = vld [vmem:[%s6683_s24 + $0xc0] sm:$0xff] }
 0x1a8   : > { %v2850_v47 = vadd.f32 %v2849_v25, %v2651_v17  ;;  %v2675_v0 = vmax.f32 %v2032_v24, 0.0  ;;  %v2034_v36 = vadd.f32 %v2033_v38, %v6052_v40  ;;  %4625 = vmatpush3.msra.mxu1 %v3208_v50  ;;  %v2677_v50 = vmax.f32 %v2105_v44, 0.0  ;;  %v3205_v17 = vld [vmem:[%s6683_s24 + $0x48] sm:$0xff] }
 0x1a9   : > { %v2037_v12 = vpop.f32.mrf.mxu0  ;;  %2474 = vmatmul.mubr.bf16.gmra.mxu0 %v6385_v5  ;;  %2547 = vmatmul.mubr.bf16.gmra.mxu1 %v6385_v5  ;;  %v2110_v35 = vpop.f32.mrf.mxu1  ;;  %v1312_v11 = vpack.c.bf16 %v6777_v61, %v6774_v20  ;;  %v6815_v44 = vadd.f32 %v6577_v43, %v6130_v57  ;;  %v3203_v43 = vld [vmem:[%s6683_s24 + $0x38] sm:$0xff] }
 0x1aa   : > { %v6768_v8 = vadd.f32 %v2850_v47, %v2652_v9  ;;  %v2877_v3 = vadd.f32 %v2876_v39, %v2675_v0  ;;  %v2676_v7 = vmax.f32 %v2034_v36, 0.0  ;;  %v2038_v49 = vadd.f32 %v2037_v12, %v6069_v55  ;;  %4626 = vmatprep.subr.mxu1 %v3223_v1  ;;  %4583 = vmatpush3.bf16.msra.mxu0 %v1362_v6  ;;  %v6795_v6 = vld [vmem:[%s5364_s16 + $0x1128] sm:$0xff]  ;;  %v3204_v9 = vld [vmem:[%s6683_s24 + $0x40] sm:$0xff] }
 0x1ab   : > { %4627 = vmatpush3.msra.mxu1 %v3207_v19  ;;  %v2039_v5 = vpop.f32.mrf.mxu0  ;;  %v2111_v27 = vadd.f32 %v2110_v35, %v6069_v55  ;;  %4584 = vmatprep.subr.bf16.mxu0 %v1537_v48  ;;  %v6789_v24 = vpop.f32.mrf.mxu1  ;;  %v6807_v1 = vld [vmem:[%s5364_s16 + $0x3e0] sm:$0xff]  ;;  %v6810_v47 = vld [vmem:[%s5364_s16 + $0x4a8] sm:$0xff]  ;;  %v2749_v0 = vmax.f32 %v6783_v62, 0.0  ;;  %v3219_v19 = vld [vmem:[%s6683_s24 + $0xb8] sm:$0xff]  ;;  %v1487_v12 = vpack.c.bf16 %v6795_v6, %v6792_v10 }
 0x1ac   : > { %v2878_v56 = vadd.f32 %v2877_v3, %v2676_v7  ;;  %v2700_v25 = vmax.f32 %v2038_v49, 0.0  ;;  %v2040_v13 = vadd.f32 %v2039_v5, %v6069_v55  ;;  %4628 = vmatprep.subr.mxu1 %v3222_v53  ;;  %2483 = vmatprep.mubr.bf16.mxu0 %v6431_v34  ;;  %v2930_v53 = vadd.f32 %v6554_v18, %v2724_v32  ;;  %v912_v35 = vld [vmem:[%s5364_s16 + $0xf98] sm:$0xff]  ;;  %v3218_v18 = vld [vmem:[%s6683_s24 + $0xb0] sm:$0xff]  ;;  %v3217_v10 = vld [vmem:[%s6683_s24 + $0xa8] sm:$0xff] }
 0x1ad   : > { %4629 = vmatpush3.msra.mxu1 %v3206_v21  ;;  %v2041_v2 = vpop.f32.mrf.mxu0  ;;  %v2702_v26 = vmax.f32 %v2111_v27, 0.0  ;;  %2556 = vmatprep.mubr.bf16.mxu1 %v6431_v34  ;;  %v2114_v38 = vpop.f32.mrf.mxu1  ;;  %v6827_v21 = vld [vmem:[%s5364_s16 + $0xed0] sm:$0xff] }
 0x1ae   : > { %v6801_v48 = vadd.f32 %v2878_v56, %v2677_v50  ;;  %v2904_v39 = vadd.f32 %v2903_v37, %v2700_v25  ;;  %v2701_v59 = vmax.f32 %v2040_v13, 0.0  ;;  %v2042_v45 = vadd.f32 %v2041_v2, %v6093_v33  ;;  %4630 = vmatprep.subr.mxu1 %v3221_v42  ;;  %4585 = vmatpush3.bf16.msra.mxu0 %v1337_v4  ;;  %v3202_v27 = vld [vmem:[%s6683_s24 + $0x30] sm:$0xff]  ;;  %v6843_v56 = vld [vmem:[%s5364_s16 + $0x318] sm:$0xff] }
 0x1af   : > { %4631 = vmatpush3.msra.mxu1 %v3205_v17  ;;  %v2043_v36 = vpop.f32.mrf.mxu0  ;;  %v2115_v34 = vadd.f32 %v2114_v38, %v6093_v33  ;;  %4586 = vmatprep.subr.bf16.mxu0 %v1512_v16  ;;  %v6824_v4 = vpop.f32.mrf.mxu1  ;;  %v1287_v37 = vpack.c.bf16 %v6810_v47, %v6807_v1  ;;  %v6840_v50 = vld [vmem:[%s5364_s16 + $0x250] sm:$0xff]  ;;  %v2774_v25 = vmax.f32 %v6815_v44, 0.0  ;;  %v6848_v13 = vadd.f32 %v6607_v41, %v6150_v54  ;;  %v3201_v41 = vld [vmem:[%s6683_s24 + $0x28] sm:$0xff]  ;;  %v3216_v1 = vld [vmem:[%s6683_s24 + $0xa0] sm:$0xff] }
 0x1b0   : > { %v2905_v3 = vadd.f32 %v2904_v39, %v2701_v59  ;;  %v2725_v7 = vmax.f32 %v2042_v45, 0.0  ;;  %v2044_v49 = vadd.f32 %v2043_v36, %v6093_v33  ;;  %4632 = vmatprep.subr.mxu1 %v3220_v15  ;;  %v1462_v6 = vpack.c.bf16 %v912_v35, %v6827_v21  ;;  %v862_v45 = vld [vmem:[%s5364_s16 + $0xe08] sm:$0xff] }
 0x1b1   : > { %4633 = vmatpush3.msra.mxu1 %v3204_v9  ;;  %v2047_v20 = vpop.f32.mrf.mxu0  ;;  %v2727_v61 = vmax.f32 %v2115_v34, 0.0  ;;  %2484 = vmatmul.mubr.bf16.gmra.mxu0 %v6489_v46  ;;  %v2120_v42 = vpop.f32.mrf.mxu1  ;;  %v2957_v2 = vadd.f32 %v6595_v63, %v2749_v0  ;;  %v1262_v63 = vpack.c.bf16 %v6843_v56, %v6840_v50  ;;  %v3200_v34 = vld [vmem:[%s6683_s24 + $0x20] sm:$0xff]  ;;  %v3198_v56 = vld [vmem:[%s6683_s24 + $0x10] sm:$0xff] }
 0x1b2   : > { %v2931_v32 = vadd.f32 %v2930_v53, %v2725_v7  ;;  %v6834_v16 = vadd.f32 %v2905_v3, %v2702_v26  ;;  %v2726_v62 = vmax.f32 %v2044_v49, 0.0  ;;  %v2048_v5 = vadd.f32 %v2047_v20, %v6112_v60  ;;  %2557 = vmatmul.mubr.bf16.gmra.mxu1 %v6489_v46  ;;  %4634 = vmatprep.subr.mxu1 %v3219_v19  ;;  %v3215_v49 = vld [vmem:[%s6683_s24 + $0x98] sm:$0xff] }
 0x1b3   : > { %4587 = vmatpush3.bf16.msra.mxu0 %v1312_v11  ;;  %4635 = vmatpush3.msra.mxu1 %v3203_v43  ;;  %v2049_v17 = vpop.f32.mrf.mxu0  ;;  %v2121_v46 = vadd.f32 %v2120_v42, %v6112_v60  ;;  %v6856_v59 = vpop.f32.mrf.mxu1  ;;  %v837_v11 = vld [vmem:[%s5364_s16 + $0xd40] sm:$0xff]  ;;  %v6872_v53 = vadd.f32 %v6694_v23, %v6168_v22  ;;  %v3199_v23 = vld [vmem:[%s6683_s24 + $0x18] sm:$0xff] }
 0x1b4   : > { %v2932_v26 = vadd.f32 %v2931_v32, %v2726_v62  ;;  %v2750_v15 = vmax.f32 %v2048_v5, 0.0  ;;  %v2050_v39 = vadd.f32 %v2049_v17, %v6112_v60  ;;  %4636 = vmatprep.subr.mxu1 %v3218_v18  ;;  %4588 = vmatprep.subr.bf16.mxu0 %v1487_v12  ;;  %v2799_v12 = vmax.f32 %v6848_v13, 0.0  ;;  %v437_v18 = vld [vmem:[%s5364_s16 + $0xc0] sm:$0xff]  ;;  %v3214_v5 = vld [vmem:[%s6683_s24 + $0x90] sm:$0xff] }
 0x1b5   : > { %4637 = vmatpush3.msra.mxu1 %v3202_v27  ;;  %v2051_v9 = vpop.f32.mrf.mxu0  ;;  %v2752_v38 = vmax.f32 %v2121_v46, 0.0  ;;  %2493 = vmatprep.mubr.bf16.mxu0 %v6535_v30  ;;  %v2124_v19 = vpop.f32.mrf.mxu1  ;;  %v1437_v43 = vpack.c.bf16 %v862_v45, %v837_v11  ;;  %v2824_v13 = vmax.f32 %v6872_v53, 0.0 }
 0x1b6   : > { %v2958_v47 = vadd.f32 %v2957_v2, %v2750_v15  ;;  %v6864_v0 = vadd.f32 %v2932_v26, %v2727_v61  ;;  %v2751_v44 = vmax.f32 %v2050_v39, 0.0  ;;  %v2052_v36 = vadd.f32 %v2051_v9, %v6130_v57  ;;  %4638 = vmatprep.subr.mxu1 %v3217_v10  ;;  %2566 = vmatprep.mubr.bf16.mxu1 %v6535_v30  ;;  %v3213_v10 = vld [vmem:[%s6683_s24 + $0x88] sm:$0xff] }
 0x1b7   : > { %4589 = vmatpush3.bf16.msra.mxu0 %v1287_v37  ;;  %4639 = vmatpush3.msra.mxu1 %v3201_v41  ;;  %v2053_v3 = vpop.f32.mrf.mxu0  ;;  %v2125_v7 = vadd.f32 %v2124_v19, %v6130_v57  ;;  %v2984_v30 = vadd.f32 %v6615_v31, %v2774_v25  ;;  %v6879_v61 = vpop.f32.mrf.mxu1  ;;  %v462_v37 = vld [vmem:[%s5364_s16 + $0x188] sm:$0xff]  ;;  %s4479_s16 = scalar_lea.sflag [#allocation3], %s392_s12 }
 0x1b8   : > { %v2959_v21 = vadd.f32 %v2958_v47, %v2751_v44  ;;  %v2775_v35 = vmax.f32 %v2052_v36, 0.0  ;;  %v2054_v20 = vadd.f32 %v2053_v3, %v6130_v57  ;;  %4640 = vmatprep.subr.mxu1 %v3216_v1  ;;  %4590 = vmatprep.subr.bf16.mxu0 %v1462_v6  ;;  %v1237_v6 = vpack.c.bf16 %v462_v37, %v437_v18  ;;  %v3069_v2 = vld [vmem:[%s8357_s4 + $0x8] sm:$0xff]  ;;  %v3258_v18 = vld [vmem:[%s6683_s24 + $0x1f0] sm:$0xff] }
 0x1b9   : > { %4641 = vmatpush3.msra.mxu1 %v3200_v34  ;;  %v2057_v32 = vpop.f32.mrf.mxu0  ;;  %v2777_v62 = vmax.f32 %v2125_v7, 0.0  ;;  %2494 = vmatmul.mubr.bf16.gmra.mxu0 %v6585_v58  ;;  %v2130_v25 = vpop.f32.mrf.mxu1  ;;  %v3197_v41 = vld [vmem:[%s6683_s24 + $0x8] sm:$0xff]  ;;  %v3196_v34 = vld [vmem:[%s6683_s24] sm:$0xff] }
 0x1ba   : > { %v2985_v31 = vadd.f32 %v2984_v30, %v2775_v35  ;;  %v6885_v27 = vadd.f32 %v2959_v21, %v2752_v38  ;;  %v2776_v42 = vmax.f32 %v2054_v20, 0.0  ;;  %v2058_v50 = vadd.f32 %v2057_v32, %v6150_v54  ;;  %2567 = vmatmul.mubr.bf16.gmra.mxu1 %v6585_v58  ;;  %4642 = vmatprep.subr.mxu1 %v3215_v49  ;;  %v3212_v38 = vld [vmem:[%s6683_s24 + $0x80] sm:$0xff]  ;;  %v3291_v35 = vld [vmem:[%s6683_s24 + $0x2f8] sm:$0xff] }
 0x1bb   : > { %4591 = vmatpush3.bf16.msra.mxu0 %v1262_v63  ;;  %4643 = vmatpush3.msra.mxu1 %v3199_v23  ;;  %v2059_v17 = vpop.f32.mrf.mxu0  ;;  %v2131_v46 = vadd.f32 %v2130_v25, %v6150_v54  ;;  %v3011_v58 = vadd.f32 %v6629_v28, %v2799_v12  ;;  %v6899_v11 = vpop.f32.mrf.mxu1  ;;  %v5169_v1 = vld [vmem:[%s8355_s2 + $0x4] ss:$8 sps:$4 sm:$0xff]   ;;  %v3259_v28 = vld [vmem:[%s6683_s24 + $0x1f8] sm:$0xff]  ;;  %v3038_v49 = vadd.f32 %v6639_v51, %v2824_v13 }
 0x1bc   : > { %v2986_v26 = vadd.f32 %v2985_v31, %v2776_v42  ;;  %v2800_v15 = vmax.f32 %v2058_v50, 0.0  ;;  %v2060_v39 = vadd.f32 %v2059_v17, %v6150_v54  ;;  %4644 = vmatprep.subr.mxu1 %v3214_v5  ;;  %4592 = vmatprep.subr.bf16.mxu0 %v1437_v43  ;;  %v3452_v12 = vld [vmem:[%s8358_s5] sm:$0xff]  ;;  %v3243_v20 = vld [vmem:[%s6683_s24 + $0x178] sm:$0xff]  ;;  %v3290_v31 = vld [vmem:[%s6683_s24 + $0x2f0] sm:$0xff] }
 0x1bd   : > { %4645 = vmatpush3.msra.mxu1 %v3198_v56  ;;  %v2061_v45 = vpop.f32.mrf.mxu0  ;;  %v2802_v9 = vmax.f32 %v2131_v46, 0.0  ;;  %2609 = vmatprep.mubr.bf16.mxu0 %v5169_v1  ;;  %v2134_v19 = vpop.f32.mrf.mxu1  ;;  %v3068_v7 = vld [vmem:[%s8357_s4] sm:$0xff]  ;;  %v3275_v23 = vld [vmem:[%s6683_s24 + $0x278] sm:$0xff]  ;;  %v3085_v42 = vld [vmem:[%s8357_s4 + $0x88] sm:$0xff] }
 0x1be   : > { %v3012_v63 = vadd.f32 %v3011_v58, %v2800_v15  ;;  %v6906_v47 = vadd.f32 %v2986_v26, %v2777_v62  ;;  %v2801_v44 = vmax.f32 %v2060_v39, 0.0  ;;  %v2062_v36 = vadd.f32 %v2061_v45, %v6168_v22  ;;  %4646 = vmatprep.subr.mxu1 %v3213_v10  ;;  %3564 = vmatprep.mubr.f32.mxu1 %v3069_v2  ;;  %v5170_v5 = vld [vmem:[%s8355_s2] ss:$8 sps:$4 sm:$0xff]   ;;  %v3242_v50 = vld [vmem:[%s6683_s24 + $0x170] sm:$0xff]  ;;  %v3287_v1 = vld [vmem:[%s6683_s24 + $0x2d8] sm:$0xff] }
 0x1bf   : > { %4593 = vmatpush3.bf16.msra.mxu0 %v1237_v6  ;;  %4647 = vmatpush3.msra.mxu1 %v3197_v41  ;;  %v2063_v53 = vpop.f32.mrf.mxu0  ;;  %v2135_v3 = vadd.f32 %v2134_v19, %v6168_v22  ;;  %v3274_v56 = vld [vmem:[%s6683_s24 + $0x270] sm:$0xff]  ;;  %v3084_v13 = vld [vmem:[%s8357_s4 + $0x80] sm:$0xff]  ;;  %v3257_v17 = vld [vmem:[%s6683_s24 + $0x1e8] sm:$0xff] }
 0x1c0   : > { %v3013_v43 = vadd.f32 %v3012_v63, %v2801_v44  ;;  %v2825_v30 = vmax.f32 %v2062_v36, 0.0  ;;  %v2064_v21 = vadd.f32 %v2063_v53, %v6168_v22  ;;  %4648 = vmatprep.subr.mxu1 %v3212_v38  ;;  %4674 = vmatprep.subr.mxu0 %v3259_v28  ;;  %v3289_v46 = vld [vmem:[%s6683_s24 + $0x2e8] sm:$0xff]  ;;  %v3256_v58 = vld [vmem:[%s6683_s24 + $0x1e0] sm:$0xff]  ;;  %v5171_v45 = vld [vmem:[%s8355_s2 + $0x14] ss:$8 sps:$4 sm:$0xff]  }
 0x1c1   : > { %4649 = vmatpush3.msra.mxu1 %v3196_v34  ;;  %3462 = vperm.xlu0 %5139, %v3452_v12   ;;  %v2827_v62 = vmax.f32 %v2135_v3, 0.0  ;;  %v3241_v10 = vld [vmem:[%s6683_s24 + $0x168] sm:$0xff]  ;;  %v3288_v26 = vld [vmem:[%s6683_s24 + $0x2e0] sm:$0xff]  ;;  %v3255_v38 = vld [vmem:[%s6683_s24 + $0x1d8] sm:$0xff] }
 0x1c2   : > { %v3039_v37 = vadd.f32 %v3038_v49, %v2825_v30  ;;  %v6923_v32 = vadd.f32 %v3013_v43, %v2802_v9  ;;  %v2826_v51 = vmax.f32 %v2064_v21, 0.0  ;;  %2610 = vmatmul.mubr.bf16.vlgmr.msra.gmra.mxu0 %v5170_v5  ;;  %3565 = vmatmul.mubr.f32.vlgmr.msra.gmra.mxu1 %v3068_v7  ;;  %v3273_v2 = vld [vmem:[%s6683_s24 + $0x268] sm:$0xff]  ;;  %v3240_v39 = vld [vmem:[%s6683_s24 + $0x160] sm:$0xff]  ;;  %v3239_v28 = vld [vmem:[%s6683_s24 + $0x158] sm:$0xff] }
 0x1c3   : > { %4730 = vmatprep.subr.mxu1 %v3291_v35  ;;  %4675 = vmatpush3.msra.mxu0 %v3243_v20  ;;  %v3101_v15 = vld [vmem:[%s8357_s4 + $0x108] sm:$0xff]  ;;  %v3272_v41 = vld [vmem:[%s6683_s24 + $0x260] sm:$0xff]  ;;  %v5172_v63 = vld [vmem:[%s8355_s2 + $0x10] ss:$8 sps:$4 sm:$0xff]  }
 0x1c4   : > { %v3040_v25 = vadd.f32 %v3039_v37, %v2826_v51  ;;  %4731 = vmatpush3.msra.mxu1 %v3275_v23  ;;  %4676 = vmatprep.subr.mxu0 %v3258_v18  ;;  %v3100_v9 = vld [vmem:[%s8357_s4 + $0x100] sm:$0xff]  ;;  %v3271_v44 = vld [vmem:[%s6683_s24 + $0x258] sm:$0xff]  ;;  %v3254_v36 = vld [vmem:[%s6683_s24 + $0x1d0] sm:$0xff] }
 0x1c5   : > { %4732 = vmatprep.subr.mxu1 %v3290_v31  ;;  %3569 = vmatprep.mubr.f32.mxu1 %v3085_v42  ;;  %v3286_v34 = vld [vmem:[%s6683_s24 + $0x2d0] sm:$0xff]  ;;  %v3117_v19 = vld [vmem:[%s8357_s4 + $0x188] sm:$0xff]  ;;  %v3116_v3 = vld [vmem:[%s8357_s4 + $0x180] sm:$0xff] }
 0x1c6   : > { %v6940_v6 = vadd.f32 %v3040_v25, %v2827_v62  ;;  %4677 = vmatpush3.msra.mxu0 %v3242_v50  ;;  %4733 = vmatpush3.msra.mxu1 %v3274_v56  ;;  %v3238_v12 = vld [vmem:[%s6683_s24 + $0x150] sm:$0xff]  ;;  %v3253_v7 = vld [vmem:[%s6683_s24 + $0x1c8] sm:$0xff]  ;;  %v3252_v21 = vld [vmem:[%s6683_s24 + $0x1c0] sm:$0xff] }
 0x1c7   : > { %3570 = vmatmul.mubr.f32.gmra.mxu1 %v3084_v13  ;;  %4678 = vmatprep.subr.mxu0 %v3257_v17  ;;  %v3270_v53 = vld [vmem:[%s6683_s24 + $0x250] sm:$0xff]  ;;  %v3285_v49 = vld [vmem:[%s6683_s24 + $0x2c8] sm:$0xff]  ;;  %v3284_v35 = vld [vmem:[%s6683_s24 + $0x2c0] sm:$0xff] }
 0x1c8   : > { %4734 = vmatprep.subr.mxu1 %v3289_v46  ;;  %4679 = vmatpush3.msra.mxu0 %v3241_v10  ;;  %v3237_v43 = vld [vmem:[%s6683_s24 + $0x148] sm:$0xff]  ;;  %v3236_v23 = vld [vmem:[%s6683_s24 + $0x140] sm:$0xff]  ;;  %v3251_v62 = vld [vmem:[%s6683_s24 + $0x1b8] sm:$0xff] }
 0x1c9   : > { %4735 = vmatpush3.msra.mxu1 %v3273_v2  ;;  %4680 = vmatprep.subr.mxu0 %v3256_v58  ;;  %v3269_v30 = vld [vmem:[%s6683_s24 + $0x248] sm:$0xff]  ;;  %v3268_v18 = vld [vmem:[%s6683_s24 + $0x240] sm:$0xff]  ;;  %v3283_v5 = vld [vmem:[%s6683_s24 + $0x2b8] sm:$0xff] }
 0x1ca   : > { %4736 = vmatprep.subr.mxu1 %v3288_v26  ;;  %2617 = vmatprep.mubr.bf16.mxu0 %v5171_v45  ;;  %v3133_v20 = vld [vmem:[%s8357_s4 + $0x208] sm:$0xff]  ;;  %v3132_v51 = vld [vmem:[%s8357_s4 + $0x200] sm:$0xff]  ;;  %v3235_v31 = vld [vmem:[%s6683_s24 + $0x138] sm:$0xff]  ;;  %v2103_v45 = vadd.f32 %v6726_v29, %v6035_v14 }
 0x1cb   : > { %3574 = vmatprep.mubr.f32.mxu1 %v3101_v15  ;;  %4681 = vmatpush3.msra.mxu0 %v3240_v39  ;;  %v5173_v37 = vld [vmem:[%s8355_s2 + $0x24] ss:$8 sps:$4 sm:$0xff]   ;;  %v5174_v42 = vld [vmem:[%s8355_s2 + $0x20] ss:$8 sps:$4 sm:$0xff]   ;;  %v3267_v50 = vld [vmem:[%s6683_s24 + $0x238] sm:$0xff] }
 0x1cc   : > { %4737 = vmatpush3.msra.mxu1 %v3272_v41  ;;  %2618 = vmatmul.mubr.bf16.gmra.mxu0 %v5172_v63  ;;  %v3250_v56 = vld [vmem:[%s6683_s24 + $0x1b0] sm:$0xff]  ;;  %v3149_v13 = vld [vmem:[%s8357_s4 + $0x288] sm:$0xff]  ;;  %v3148_v10 = vld [vmem:[%s8357_s4 + $0x280] sm:$0xff] }
 0x1cd   : > { %3575 = vmatmul.mubr.f32.gmra.mxu1 %v3100_v9  ;;  %4682 = vmatprep.subr.mxu0 %v3255_v38  ;;  %v3282_v25 = vld [vmem:[%s6683_s24 + $0x2b0] sm:$0xff]  ;;  %v3249_v2 = vld [vmem:[%s6683_s24 + $0x1a8] sm:$0xff]  ;;  %v3248_v39 = vld [vmem:[%s6683_s24 + $0x1a0] sm:$0xff] }
 0x1ce   : > { %4738 = vmatprep.subr.mxu1 %v3287_v1  ;;  %4683 = vmatpush3.msra.mxu0 %v3239_v28  ;;  %v3234_v17 = vld [vmem:[%s6683_s24 + $0x130] sm:$0xff]  ;;  %v3281_v58 = vld [vmem:[%s6683_s24 + $0x2a8] sm:$0xff]  ;;  %v3280_v41 = vld [vmem:[%s6683_s24 + $0x2a0] sm:$0xff]  ;;  %v7020_v28 = vpop.f32.mrf.mxu1 }
 0x1cf   : > { %4739 = vmatpush3.msra.mxu1 %v3271_v44  ;;  %4684 = vmatprep.subr.mxu0 %v3254_v36  ;;  %v3266_v46 = vld [vmem:[%s6683_s24 + $0x230] sm:$0xff]  ;;  %v3233_v26 = vld [vmem:[%s6683_s24 + $0x128] sm:$0xff]  ;;  %v3232_v38 = vld [vmem:[%s6683_s24 + $0x120] sm:$0xff] }
 0x1d0   : > { %4740 = vmatprep.subr.mxu1 %v3286_v34  ;;  %3579 = vmatprep.mubr.f32.mxu1 %v3117_v19  ;;  %v3265_v15 = vld [vmem:[%s6683_s24 + $0x228] sm:$0xff]  ;;  %v3264_v1 = vld [vmem:[%s6683_s24 + $0x220] sm:$0xff]  ;;  %v5175_v29 = vld [vmem:[%s8355_s2 + $0x34] ss:$8 sps:$4 sm:$0xff]  }
 0x1d1   : > { %4685 = vmatpush3.msra.mxu0 %v3238_v12  ;;  %4741 = vmatpush3.msra.mxu1 %v3270_v53  ;;  %v3165_v9 = vld [vmem:[%s8357_s4 + $0x308] sm:$0xff]  ;;  %v3164_v63 = vld [vmem:[%s8357_s4 + $0x300] sm:$0xff]  ;;  %v3247_v44 = vld [vmem:[%s6683_s24 + $0x198] sm:$0xff]  ;;  %v2653_v12 = vmax.f32 %v2103_v45, 0.0  ;;  %v2107_v53 = vadd.f32 %v6759_v52, %v6052_v40 }
 0x1d2   : > { %3580 = vmatmul.mubr.f32.gmra.mxu1 %v3116_v3  ;;  %4686 = vmatprep.subr.mxu0 %v3253_v7  ;;  %v3279_v36 = vld [vmem:[%s6683_s24 + $0x298] sm:$0xff]  ;;  %v3181_v52 = vld [vmem:[%s8357_s4 + $0x388] sm:$0xff] }
 0x1d3   : > { %4742 = vmatprep.subr.mxu1 %v3285_v49  ;;  %4687 = vmatpush3.msra.mxu0 %v3237_v43  ;;  %v3231_v34 = vld [vmem:[%s6683_s24 + $0x118] sm:$0xff]  ;;  %v3246_v49 = vld [vmem:[%s6683_s24 + $0x190] sm:$0xff] }
 0x1d4   : > { %4743 = vmatpush3.msra.mxu1 %v3269_v30  ;;  %4688 = vmatprep.subr.mxu0 %v3252_v21  ;;  %v5176_v3 = vld [vmem:[%s8355_s2 + $0x30] ss:$8 sps:$4 sm:$0xff]  }
 0x1d5   : > { %4744 = vmatprep.subr.mxu1 %v3284_v35  ;;  %2625 = vmatprep.mubr.bf16.mxu0 %v5173_v37  ;;  %v3263_v7 = vld [vmem:[%s6683_s24 + $0x218] sm:$0xff]  ;;  %v3278_v21 = vld [vmem:[%s6683_s24 + $0x290] sm:$0xff] }
 0x1d6   : > { %3584 = vmatprep.mubr.f32.mxu1 %v3133_v20  ;;  %4689 = vmatpush3.msra.mxu0 %v3236_v23  ;;  %v2852_v20 = vadd.f32 %v6768_v8, %v2653_v12  ;;  %v2113_v23 = vadd.f32 %v6789_v24, %v6069_v55  ;;  %v3262_v37 = vld [vmem:[%s6683_s24 + $0x210] sm:$0xff]  ;;  %v3180_v8 = vld [vmem:[%s8357_s4 + $0x380] sm:$0xff]  ;;  %v3277_v24 = vld [vmem:[%s6683_s24 + $0x288] sm:$0xff] }
 0x1d7   : > { %4745 = vmatpush3.msra.mxu1 %v3268_v18  ;;  %2626 = vmatmul.mubr.bf16.gmra.mxu0 %v5174_v42  ;;  %v3230_v18 = vld [vmem:[%s6683_s24 + $0x110] sm:$0xff]  ;;  %v2678_v42 = vmax.f32 %v2107_v53, 0.0 }
 0x1d8   : > { %3585 = vmatmul.mubr.f32.gmra.mxu1 %v3132_v51  ;;  %4690 = vmatprep.subr.mxu0 %v3251_v62 }
 0x1d9   : > { %4746 = vmatprep.subr.mxu1 %v3283_v5  ;;  %4691 = vmatpush3.msra.mxu0 %v3235_v31  ;;  %v3245_v5 = vld [vmem:[%s6683_s24 + $0x188] sm:$0xff] }
 0x1da   : > { %4747 = vmatpush3.msra.mxu1 %v3267_v50  ;;  %4692 = vmatprep.subr.mxu0 %v3250_v56  ;;  %v3229_v50 = vld [vmem:[%s6683_s24 + $0x108] sm:$0xff] }
 0x1db   : > { %4748 = vmatprep.subr.mxu1 %v3282_v25  ;;  %3589 = vmatprep.mubr.f32.mxu1 %v3149_v13 }
 0x1dc   : > { %4693 = vmatpush3.msra.mxu0 %v3234_v17  ;;  %4749 = vmatpush3.msra.mxu1 %v3266_v46  ;;  %v3261_v17 = vld [vmem:[%s6683_s24 + $0x208] sm:$0xff]  ;;  %v3244_v46 = vld [vmem:[%s6683_s24 + $0x180] sm:$0xff] }
 0x1dd   : > { %3590 = vmatmul.mubr.f32.gmra.mxu1 %v3148_v10  ;;  %4694 = vmatprep.subr.mxu0 %v3249_v2  ;;  %v2880_v2 = vadd.f32 %v6801_v48, %v2678_v42 }
 0x1de   : > { %4750 = vmatprep.subr.mxu1 %v3281_v58  ;;  %4695 = vmatpush3.msra.mxu0 %v3233_v26  ;;  %v2703_v58 = vmax.f32 %v2113_v23, 0.0  ;;  %v2117_v26 = vadd.f32 %v6824_v4, %v6093_v33  ;;  %v3073_v4 = vld [vmem:[%s8357_s4 + $0x28] sm:$0xff] }
 0x1df   : > { %4751 = vmatpush3.msra.mxu1 %v3265_v15  ;;  %4696 = vmatprep.subr.mxu0 %v3248_v39  ;;  %v3276_v15 = vld [vmem:[%s6683_s24 + $0x280] sm:$0xff] }
 0x1e0   : > { %4752 = vmatprep.subr.mxu1 %v3280_v41  ;;  %2633 = vmatprep.mubr.bf16.mxu0 %v5175_v29  ;;  %v3228_v39 = vld [vmem:[%s6683_s24 + $0x100] sm:$0xff]  ;;  %v2907_v12 = vadd.f32 %v6834_v16, %v2703_v58  ;;  %v2728_v53 = vmax.f32 %v2117_v26, 0.0  ;;  %v3354_v16 = vld [vmem:[%s6683_s24 + $0x4f0] sm:$0xff]  ;;  %v3321_v58 = vld [vmem:[%s6683_s24 + $0x3e8] sm:$0xff] }
 0x1e1   : > { %3594 = vmatprep.mubr.f32.mxu1 %v3165_v9  ;;  %4697 = vmatpush3.msra.mxu0 %v3232_v38  ;;  %v2173_v19 = vpop.f32.mrf.mxu0  ;;  %v7039_v30 = vpop.f32.mrf.mxu1  ;;  %v3071_v9 = vld [vmem:[%s8357_s4 + $0x18] sm:$0xff]  ;;  %v3260_v38 = vld [vmem:[%s6683_s24 + $0x200] sm:$0xff]  ;;  %v3353_v26 = vld [vmem:[%s6683_s24 + $0x4e8] sm:$0xff] }
 0x1e2   : > { %4753 = vmatpush3.msra.mxu1 %v3264_v1  ;;  %2634 = vmatmul.mubr.bf16.gmra.mxu0 %v5176_v3  ;;  %v2174_v43 = vadd.f32 %v2173_v19, %v6035_v14  ;;  %v3070_v1 = vld [vmem:[%s8357_s4 + $0x10] sm:$0xff]  ;;  %v2123_v3 = vadd.f32 %v6856_v59, %v6112_v60  ;;  %v3087_v59 = vld [vmem:[%s8357_s4 + $0x98] sm:$0xff]  ;;  %v2934_v42 = vadd.f32 %v6864_v0, %v2728_v53  ;;  %v3088_v0 = vld [vmem:[%s8357_s4 + $0xa0] sm:$0xff] }
 0x1e3   : > { %3595 = vmatmul.mubr.f32.gmra.mxu1 %v3164_v63  ;;  %4698 = vmatprep.subr.mxu0 %v3247_v44  ;;  %v7045_v35 = vpop.f32.mrf.mxu0  ;;  %v7052_v62 = vpop.f32.mrf.mxu1 }
 0x1e4   : > { %4754 = vmatprep.subr.mxu1 %v3279_v36  ;;  %4699 = vmatpush3.msra.mxu0 %v3231_v34  ;;  %v2654_v51 = vmax.f32 %v2174_v43, 0.0  ;;  %v3072_v36 = vld [vmem:[%s8357_s4 + $0x20] sm:$0xff]  ;;  %v3323_v34 = vld [vmem:[%s6683_s24 + $0x3f8] sm:$0xff] }
 0x1e5   : > { %4755 = vmatpush3.msra.mxu1 %v3263_v7  ;;  %4700 = vmatprep.subr.mxu0 %v3246_v49  ;;  %v2177_v31 = vpop.f32.mrf.mxu0  ;;  %v7063_v13 = vpop.f32.mrf.mxu1  ;;  %v3355_v7 = vld [vmem:[%s6683_s24 + $0x4f8] sm:$0xff] }
 0x1e6   : > { %4756 = vmatprep.subr.mxu1 %v3278_v21  ;;  %3599 = vmatprep.mubr.f32.mxu1 %v3181_v52  ;;  %v7060_v56 = vadd.f32 %v2852_v20, %v2654_v51  ;;  %v2178_v25 = vadd.f32 %v2177_v31, %v6052_v40  ;;  %v3307_v49 = vld [vmem:[%s6683_s24 + $0x378] sm:$0xff]  ;;  %v3322_v20 = vld [vmem:[%s6683_s24 + $0x3f0] sm:$0xff] }
 0x1e7   : > { %4701 = vmatpush3.msra.mxu0 %v3230_v18  ;;  %4757 = vmatpush3.msra.mxu1 %v3262_v37  ;;  %v7067_v10 = vpop.f32.mrf.mxu0  ;;  %v7074_v45 = vpop.f32.mrf.mxu1  ;;  %v3339_v52 = vld [vmem:[%s6683_s24 + $0x478] sm:$0xff] }
 0x1e8   : > { %3600 = vmatmul.mubr.f32.gmra.mxu1 %v3180_v8  ;;  %4702 = vmatprep.subr.mxu0 %v3245_v5  ;;  %v2679_v41 = vmax.f32 %v2178_v25, 0.0  ;;  %v3089_v8 = vld [vmem:[%s8357_s4 + $0xa8] sm:$0xff]  ;;  %v3306_v5 = vld [vmem:[%s6683_s24 + $0x370] sm:$0xff] }
 0x1e9   : > { %4758 = vmatprep.subr.mxu1 %v3277_v24  ;;  %4703 = vmatpush3.msra.mxu0 %v3229_v50  ;;  %v2183_v48 = vpop.f32.mrf.mxu0  ;;  %v7089_v44 = vpop.f32.mrf.mxu1  ;;  %v2753_v24 = vmax.f32 %v2123_v3, 0.0  ;;  %v2127_v50 = vadd.f32 %v6879_v61, %v6130_v57  ;;  %v3338_v25 = vld [vmem:[%s6683_s24 + $0x470] sm:$0xff] }
 0x1ea   : > { %4759 = vmatpush3.msra.mxu1 %v3261_v17  ;;  %4704 = vmatprep.subr.mxu0 %v3244_v46  ;;  %v7086_v29 = vadd.f32 %v2880_v2, %v2679_v41  ;;  %v2184_v63 = vadd.f32 %v2183_v48, %v6069_v55  ;;  %v3086_v17 = vld [vmem:[%s8357_s4 + $0x90] sm:$0xff]  ;;  %v3337_v48 = vld [vmem:[%s6683_s24 + $0x468] sm:$0xff] }
 0x1eb   : > { %4760 = vmatprep.subr.mxu1 %v3276_v15  ;;  %4705 = vmatpush3.msra.mxu0 %v3228_v39  ;;  %v7095_v19 = vpop.f32.mrf.mxu0  ;;  %v7102_v21 = vpop.f32.mrf.mxu1  ;;  %v3305_v15 = vld [vmem:[%s6683_s24 + $0x368] sm:$0xff] }
 0x1ec   : > { %3669 = vmatprep.mubr.f32.mxu0 %v3071_v9  ;;  %4761 = vmatpush3.msra.mxu1 %v3260_v38  ;;  %v2704_v43 = vmax.f32 %v2184_v63, 0.0  ;;  %v7143_v38 = vadd.f32 %v6899_v11, %v6150_v54  ;;  %v2961_v63 = vadd.f32 %v6885_v27, %v2753_v24  ;;  %v3105_v27 = vld [vmem:[%s8357_s4 + $0x128] sm:$0xff] }
 0x1ed   : > { %3774 = vmatprep.mubr.f32.mxu1 %v3073_v4  ;;  %3670 = vmatmul.mubr.f32.vlgmr.msra.gmra.mxu0 %v3070_v1  ;;  %v2187_v23 = vpop.f32.mrf.mxu0  ;;  %v7113_v51 = vpop.f32.mrf.mxu1  ;;  %v3320_v4 = vld [vmem:[%s6683_s24 + $0x3e0] sm:$0xff] }
 0x1ee   : > { %3775 = vmatmul.mubr.f32.vlgmr.msra.gmra.mxu1 %v3072_v36  ;;  %4786 = vmatprep.subr.mxu0 %v3323_v34  ;;  %v7110_v18 = vadd.f32 %v2907_v12, %v2704_v43  ;;  %v2188_v37 = vadd.f32 %v2187_v23, %v6093_v33  ;;  %v2778_v36 = vmax.f32 %v2127_v50, 0.0  ;;  %v3352_v34 = vld [vmem:[%s6683_s24 + $0x4e0] sm:$0xff]  ;;  %v3103_v12 = vld [vmem:[%s8357_s4 + $0x118] sm:$0xff] }
 0x1ef   : > { %4842 = vmatprep.subr.mxu1 %v3355_v7  ;;  %4787 = vmatpush3.msra.mxu0 %v3307_v49  ;;  %v7119_v31 = vpop.f32.mrf.mxu0  ;;  %v7128_v2 = vpop.f32.mrf.mxu1  ;;  %v3304_v7 = vld [vmem:[%s6683_s24 + $0x360] sm:$0xff] }
 0x1f0   : > { %4843 = vmatpush3.msra.mxu1 %v3339_v52  ;;  %4788 = vmatprep.subr.mxu0 %v3322_v20  ;;  %v2729_v46 = vmax.f32 %v2188_v37, 0.0  ;;  %v3336_v43 = vld [vmem:[%s6683_s24 + $0x460] sm:$0xff]  ;;  %v3102_v52 = vld [vmem:[%s8357_s4 + $0x110] sm:$0xff]  ;;  %v2803_v37 = vmax.f32 %v7143_v38, 0.0  ;;  %v2988_v50 = vadd.f32 %v6906_v47, %v2778_v36  ;;  %v3121_v36 = vld [vmem:[%s8357_s4 + $0x1a8] sm:$0xff] }
 0x1f1   : > { %4844 = vmatprep.subr.mxu1 %v3354_v16  ;;  %3674 = vmatprep.mubr.f32.mxu0 %v3087_v59  ;;  %v2193_v61 = vpop.f32.mrf.mxu0  ;;  %v7139_v9 = vpop.f32.mrf.mxu1  ;;  %v3350_v47 = vld [vmem:[%s6683_s24 + $0x4d0] sm:$0xff] }
 0x1f2   : > { %3779 = vmatprep.mubr.f32.mxu1 %v3089_v8  ;;  %4789 = vmatpush3.msra.mxu0 %v3306_v5  ;;  %v7136_v39 = vadd.f32 %v2934_v42, %v2729_v46  ;;  %v2194_v41 = vadd.f32 %v2193_v61, %v6112_v60  ;;  %v2137_v8 = vadd.f32 %v7020_v28, %v6168_v22  ;;  %v3104_v5 = vld [vmem:[%s8357_s4 + $0x120] sm:$0xff]  ;;  %v3319_v42 = vld [vmem:[%s6683_s24 + $0x3d8] sm:$0xff] }
 0x1f3   : > { %4845 = vmatpush3.msra.mxu1 %v3338_v25  ;;  %3675 = vmatmul.mubr.f32.gmra.mxu0 %v3086_v17  ;;  %v2195_v1 = vpop.f32.mrf.mxu0  ;;  %v7153_v3 = vpop.f32.mrf.mxu1  ;;  %v3351_v25 = vld [vmem:[%s6683_s24 + $0x4d8] sm:$0xff] }
 0x1f4   : > { %3780 = vmatmul.mubr.f32.gmra.mxu1 %v3088_v0  ;;  %4790 = vmatprep.subr.mxu0 %v3321_v58  ;;  %v2754_v53 = vmax.f32 %v2194_v41, 0.0  ;;  %v2196_v11 = vadd.f32 %v2195_v1, %v6112_v60  ;;  %v3303_v17 = vld [vmem:[%s6683_s24 + $0x358] sm:$0xff] }
 0x1f5   : > { %4846 = vmatprep.subr.mxu1 %v3353_v26  ;;  %4791 = vmatpush3.msra.mxu0 %v3305_v15  ;;  %v2197_v49 = vpop.f32.mrf.mxu0  ;;  %v7164_v59 = vpop.f32.mrf.mxu1  ;;  %v3335_v61 = vld [vmem:[%s6683_s24 + $0x458] sm:$0xff]  ;;  %v3318_v26 = vld [vmem:[%s6683_s24 + $0x3d0] sm:$0xff] }
 0x1f6   : > { %4847 = vmatpush3.msra.mxu1 %v3337_v48  ;;  %4792 = vmatprep.subr.mxu0 %v3320_v4  ;;  %v2962_v20 = vadd.f32 %v2961_v63, %v2754_v53  ;;  %v2755_v23 = vmax.f32 %v2196_v11, 0.0  ;;  %v2198_v16 = vadd.f32 %v2197_v49, %v6130_v57  ;;  %v3119_v41 = vld [vmem:[%s8357_s4 + $0x198] sm:$0xff]  ;;  %v2828_v63 = vmax.f32 %v2137_v8, 0.0  ;;  %v3349_v8 = vld [vmem:[%s6683_s24 + $0x4c8] sm:$0xff] }
 0x1f7   : > { %4848 = vmatprep.subr.mxu1 %v3352_v34  ;;  %3679 = vmatprep.mubr.f32.mxu0 %v3103_v12  ;;  %v2199_v24 = vpop.f32.mrf.mxu0  ;;  %v7179_v58 = vpop.f32.mrf.mxu1  ;;  %v3302_v34 = vld [vmem:[%s6683_s24 + $0x350] sm:$0xff]  ;;  %v3015_v11 = vadd.f32 %v6923_v32, %v2803_v37  ;;  %v3120_v32 = vld [vmem:[%s8357_s4 + $0x1a0] sm:$0xff] }
 0x1f8   : > { %3784 = vmatprep.mubr.f32.mxu1 %v3105_v27  ;;  %4793 = vmatpush3.msra.mxu0 %v3304_v7  ;;  %v7176_v46 = vadd.f32 %v2962_v20, %v2755_v23  ;;  %v2779_v28 = vmax.f32 %v2198_v16, 0.0  ;;  %v2200_v0 = vadd.f32 %v2199_v24, %v6130_v57  ;;  %v3334_v27 = vld [vmem:[%s6683_s24 + $0x450] sm:$0xff]  ;;  %v3317_v23 = vld [vmem:[%s6683_s24 + $0x3c8] sm:$0xff] }
 0x1f9   : > { %4849 = vmatpush3.msra.mxu1 %v3336_v43  ;;  %3680 = vmatmul.mubr.f32.gmra.mxu0 %v3102_v52  ;;  %v2203_v15 = vpop.f32.mrf.mxu0  ;;  %v2276_v1 = vpop.f32.mrf.mxu1  ;;  %v3118_v7 = vld [vmem:[%s8357_s4 + $0x190] sm:$0xff] }
 0x1fa   : > { %3785 = vmatmul.mubr.f32.gmra.mxu1 %v3104_v5  ;;  %4794 = vmatprep.subr.mxu0 %v3319_v42  ;;  %v2989_v38 = vadd.f32 %v2988_v50, %v2779_v28  ;;  %v2780_v48 = vmax.f32 %v2200_v0, 0.0  ;;  %v2204_v4 = vadd.f32 %v2203_v15, %v6150_v54  ;;  %v2277_v53 = vadd.f32 %v2276_v1, %v6150_v54  ;;  %v3301_v5 = vld [vmem:[%s6683_s24 + $0x348] sm:$0xff] }
 0x1fb   : > { %4850 = vmatprep.subr.mxu1 %v3351_v25  ;;  %4795 = vmatpush3.msra.mxu0 %v3303_v17  ;;  %v2205_v12 = vpop.f32.mrf.mxu0  ;;  %v2278_v20 = vpop.f32.mrf.mxu1  ;;  %v3042_v28 = vadd.f32 %v6940_v6, %v2828_v63  ;;  %v3333_v0 = vld [vmem:[%s6683_s24 + $0x448] sm:$0xff] }
 0x1fc   : > { %4851 = vmatpush3.msra.mxu1 %v3335_v61  ;;  %4796 = vmatprep.subr.mxu0 %v3318_v26  ;;  %v7198_v49 = vadd.f32 %v2989_v38, %v2780_v48  ;;  %v2804_v43 = vmax.f32 %v2204_v4, 0.0  ;;  %v2206_v52 = vadd.f32 %v2205_v12, %v6150_v54  ;;  %v2279_v37 = vadd.f32 %v2278_v20, %v6150_v54  ;;  %v3316_v61 = vld [vmem:[%s6683_s24 + $0x3c0] sm:$0xff]  ;;  %v3137_v63 = vld [vmem:[%s8357_s4 + $0x228] sm:$0xff]  ;;  %v3315_v20 = vld [vmem:[%s6683_s24 + $0x3b8] sm:$0xff] }
 0x1fd   : > { %4852 = vmatprep.subr.mxu1 %v3350_v47  ;;  %3684 = vmatprep.mubr.f32.mxu0 %v3119_v41  ;;  %v2207_v16 = vpop.f32.mrf.mxu0  ;;  %v2806_v25 = vmax.f32 %v2277_v53, 0.0  ;;  %v2280_v17 = vpop.f32.mrf.mxu1  ;;  %v3348_v47 = vld [vmem:[%s6683_s24 + $0x4c0] sm:$0xff]  ;;  %v3135_v41 = vld [vmem:[%s8357_s4 + $0x218] sm:$0xff]  ;;  %v3134_v53 = vld [vmem:[%s8357_s4 + $0x210] sm:$0xff] }
 0x1fe   : > { %8378 = vst [vmem:[#allocation7_spill] sm:$0xff] %v7198_v49  ;;  %3789 = vmatprep.mubr.f32.mxu1 %v3121_v36  ;;  %4797 = vmatpush3.msra.mxu0 %v3302_v34  ;;  %v3016_v42 = vadd.f32 %v3015_v11, %v2804_v43  ;;  %v2805_v24 = vmax.f32 %v2206_v52, 0.0  ;;  %v2208_v50 = vadd.f32 %v2207_v16, %v6168_v22  ;;  %v2807_v4 = vmax.f32 %v2279_v37, 0.0  ;;  %v3300_v36 = vld [vmem:[%s6683_s24 + $0x340] sm:$0xff]  ;;  %v3393_v49 = vld [vmem:[%s6683_s24 + $0x628] sm:$0xff] }
 0x1ff   : > { %4853 = vmatpush3.msra.mxu1 %v3334_v27  ;;  %3685 = vmatmul.mubr.f32.gmra.mxu0 %v3118_v7  ;;  %v2209_v26 = vpop.f32.mrf.mxu0  ;;  %v2281_v15 = vadd.f32 %v2280_v17, %v6168_v22  ;;  %v2282_v1 = vpop.f32.mrf.mxu1  ;;  %v3332_v12 = vld [vmem:[%s6683_s24 + $0x440] sm:$0xff]  ;;  %v3153_v17 = vld [vmem:[%s8357_s4 + $0x2a8] sm:$0xff] }
 0x200   : > { %3790 = vmatmul.mubr.f32.gmra.mxu1 %v3120_v32  ;;  %4798 = vmatprep.subr.mxu0 %v3317_v23  ;;  %v3017_v38 = vadd.f32 %v3016_v42, %v2805_v24  ;;  %v2829_v48 = vmax.f32 %v2208_v50, 0.0  ;;  %v2210_v6 = vadd.f32 %v2209_v26, %v6168_v22  ;;  %v2283_v34 = vadd.f32 %v2282_v1, %v6168_v22  ;;  %v3136_v52 = vld [vmem:[%s8357_s4 + $0x220] sm:$0xff]  ;;  %v3347_v32 = vld [vmem:[%s6683_s24 + $0x4b8] sm:$0xff]  ;;  %v3314_v42 = vld [vmem:[%s6683_s24 + $0x3b0] sm:$0xff] }
 0x201   : > { %4854 = vmatprep.subr.mxu1 %v3349_v8  ;;  %4799 = vmatpush3.msra.mxu0 %v3301_v5  ;;  %v2831_v43 = vmax.f32 %v2281_v15, 0.0  ;;  %v3299_v23 = vld [vmem:[%s6683_s24 + $0x338] sm:$0xff]  ;;  %v3346_v24 = vld [vmem:[%s6683_s24 + $0x4b0] sm:$0xff]  ;;  %v3152_v15 = vld [vmem:[%s8357_s4 + $0x2a0] sm:$0xff] }
 0x202   : > { %4855 = vmatpush3.msra.mxu1 %v3333_v0  ;;  %4800 = vmatprep.subr.mxu0 %v3316_v61  ;;  %v3043_v11 = vadd.f32 %v3042_v28, %v2829_v48  ;;  %v3018_v27 = vadd.f32 %v3017_v38, %v2806_v25  ;;  %v2830_v7 = vmax.f32 %v2210_v6, 0.0  ;;  %v2832_v8 = vmax.f32 %v2283_v34, 0.0  ;;  %v3331_v5 = vld [vmem:[%s6683_s24 + $0x438] sm:$0xff]  ;;  %v3298_v28 = vld [vmem:[%s6683_s24 + $0x330] sm:$0xff]  ;;  %v3297_v38 = vld [vmem:[%s6683_s24 + $0x328] sm:$0xff] }
 0x203   : > { %4856 = vmatprep.subr.mxu1 %v3348_v47  ;;  %3689 = vmatprep.mubr.f32.mxu0 %v3135_v41  ;;  %v3151_v50 = vld [vmem:[%s8357_s4 + $0x298] sm:$0xff]  ;;  %v3330_v0 = vld [vmem:[%s6683_s24 + $0x430] sm:$0xff]  ;;  %v3313_v47 = vld [vmem:[%s6683_s24 + $0x3a8] sm:$0xff] }
 0x204   : > { %3794 = vmatprep.mubr.f32.mxu1 %v3137_v63  ;;  %4801 = vmatpush3.msra.mxu0 %v3300_v36  ;;  %v3044_v16 = vadd.f32 %v3043_v11, %v2830_v7  ;;  %v7233_v37 = vadd.f32 %v3018_v27, %v2807_v4  ;;  %v3150_v61 = vld [vmem:[%s8357_s4 + $0x290] sm:$0xff]  ;;  %v3345_v41 = vld [vmem:[%s6683_s24 + $0x4a8] sm:$0xff]  ;;  %v3312_v6 = vld [vmem:[%s6683_s24 + $0x3a0] sm:$0xff] }
 0x205   : > { %4857 = vmatpush3.msra.mxu1 %v3332_v12  ;;  %3690 = vmatmul.mubr.f32.gmra.mxu0 %v3134_v53  ;;  %v3329_v48 = vld [vmem:[%s6683_s24 + $0x428] sm:$0xff]  ;;  %v3344_v4 = vld [vmem:[%s6683_s24 + $0x4a0] sm:$0xff]  ;;  %v3167_v1 = vld [vmem:[%s8357_s4 + $0x318] sm:$0xff] }
 0x206   : > { %3795 = vmatmul.mubr.f32.gmra.mxu1 %v3136_v52  ;;  %4802 = vmatprep.subr.mxu0 %v3315_v20  ;;  %v3045_v25 = vadd.f32 %v3044_v16, %v2831_v43  ;;  %v3169_v63 = vld [vmem:[%s8357_s4 + $0x328] sm:$0xff]  ;;  %v3296_v36 = vld [vmem:[%s6683_s24 + $0x320] sm:$0xff]  ;;  %v3166_v12 = vld [vmem:[%s8357_s4 + $0x310] sm:$0xff] }
 0x207   : > { %4858 = vmatprep.subr.mxu1 %v3347_v32  ;;  %4803 = vmatpush3.msra.mxu0 %v3299_v23  ;;  %v3328_v34 = vld [vmem:[%s6683_s24 + $0x420] sm:$0xff]  ;;  %v3311_v11 = vld [vmem:[%s6683_s24 + $0x398] sm:$0xff]  ;;  %v3310_v52 = vld [vmem:[%s6683_s24 + $0x390] sm:$0xff] }
 0x208   : > { %4859 = vmatpush3.msra.mxu1 %v3331_v5  ;;  %4804 = vmatprep.subr.mxu0 %v3314_v42  ;;  %v7249_v26 = vadd.f32 %v3045_v25, %v2832_v8  ;;  %v3168_v53 = vld [vmem:[%s8357_s4 + $0x320] sm:$0xff]  ;;  %v3343_v27 = vld [vmem:[%s6683_s24 + $0x498] sm:$0xff]  ;;  %v3342_v20 = vld [vmem:[%s6683_s24 + $0x490] sm:$0xff] }
 0x209   : > { %4860 = vmatprep.subr.mxu1 %v3346_v24  ;;  %3694 = vmatprep.mubr.f32.mxu0 %v3151_v50  ;;  %v3295_v7 = vld [vmem:[%s6683_s24 + $0x318] sm:$0xff]  ;;  %v3185_v23 = vld [vmem:[%s8357_s4 + $0x3a8] sm:$0xff]  ;;  %v3294_v16 = vld [vmem:[%s6683_s24 + $0x310] sm:$0xff] }
 0x20a   : > { %3799 = vmatprep.mubr.f32.mxu1 %v3153_v17  ;;  %4805 = vmatpush3.msra.mxu0 %v3298_v28  ;;  %v3327_v43 = vld [vmem:[%s6683_s24 + $0x418] sm:$0xff]  ;;  %v3326_v8 = vld [vmem:[%s6683_s24 + $0x410] sm:$0xff]  ;;  %v3184_v42 = vld [vmem:[%s8357_s4 + $0x3a0] sm:$0xff] }
 0x20b   : > { %4861 = vmatpush3.msra.mxu1 %v3330_v0  ;;  %3695 = vmatmul.mubr.f32.gmra.mxu0 %v3150_v61  ;;  %v3183_v32 = vld [vmem:[%s8357_s4 + $0x398] sm:$0xff]  ;;  %v3182_v5 = vld [vmem:[%s8357_s4 + $0x390] sm:$0xff]  ;;  %v3309_v24 = vld [vmem:[%s6683_s24 + $0x388] sm:$0xff] }
 0x20c   : > { %3800 = vmatmul.mubr.f32.gmra.mxu1 %v3152_v15  ;;  %4806 = vmatprep.subr.mxu0 %v3313_v47  ;;  %v3341_v50 = vld [vmem:[%s6683_s24 + $0x488] sm:$0xff]  ;;  %v3308_v28 = vld [vmem:[%s6683_s24 + $0x380] sm:$0xff]  ;;  %v3075_v15 = vld [vmem:[%s8357_s4 + $0x38] sm:$0xff] }
 0x20d   : > { %4862 = vmatprep.subr.mxu1 %v3345_v41  ;;  %4807 = vmatpush3.msra.mxu0 %v3297_v38  ;;  %v3293_v25 = vld [vmem:[%s6683_s24 + $0x308] sm:$0xff]  ;;  %v3340_v0 = vld [vmem:[%s6683_s24 + $0x480] sm:$0xff]  ;;  %v3074_v38 = vld [vmem:[%s8357_s4 + $0x30] sm:$0xff] }
 0x20e   : > { %4863 = vmatpush3.msra.mxu1 %v3329_v48  ;;  %4808 = vmatprep.subr.mxu0 %v3312_v6  ;;  %v3325_v17 = vld [vmem:[%s6683_s24 + $0x408] sm:$0xff]  ;;  %v3292_v61 = vld [vmem:[%s6683_s24 + $0x300] sm:$0xff]  ;;  %v3387_v6 = vld [vmem:[%s6683_s24 + $0x5f8] sm:$0xff] }
 0x20f   : > { %4864 = vmatprep.subr.mxu1 %v3344_v4  ;;  %3699 = vmatprep.mubr.f32.mxu0 %v3167_v1  ;;  %v3324_v47 = vld [vmem:[%s6683_s24 + $0x400] sm:$0xff]  ;;  %v3077_v41 = vld [vmem:[%s8357_s4 + $0x48] sm:$0xff]  ;;  %v3419_v4 = vld [vmem:[%s6683_s24 + $0x6f8] sm:$0xff] }
 0x210   : > { %3804 = vmatprep.mubr.f32.mxu1 %v3169_v63  ;;  %4809 = vmatpush3.msra.mxu0 %v3296_v36  ;;  %v3076_v48 = vld [vmem:[%s8357_s4 + $0x40] sm:$0xff]  ;;  %v3371_v1 = vld [vmem:[%s6683_s24 + $0x578] sm:$0xff]  ;;  %v3386_v36 = vld [vmem:[%s6683_s24 + $0x5f0] sm:$0xff] }
 0x211   : > { %4865 = vmatpush3.msra.mxu1 %v3328_v34  ;;  %3700 = vmatmul.mubr.f32.gmra.mxu0 %v3166_v12  ;;  %v3403_v63 = vld [vmem:[%s6683_s24 + $0x678] sm:$0xff]  ;;  %v3418_v34 = vld [vmem:[%s6683_s24 + $0x6f0] sm:$0xff] }
 0x212   : > { %3805 = vmatmul.mubr.f32.gmra.mxu1 %v3168_v53  ;;  %4810 = vmatprep.subr.mxu0 %v3311_v11  ;;  %v3091_v12 = vld [vmem:[%s8357_s4 + $0xb8] sm:$0xff]  ;;  %v3093_v53 = vld [vmem:[%s8357_s4 + $0xc8] sm:$0xff]  ;;  %v3370_v11 = vld [vmem:[%s6683_s24 + $0x570] sm:$0xff] }
 0x213   : > { %4866 = vmatprep.subr.mxu1 %v3343_v27  ;;  %4811 = vmatpush3.msra.mxu0 %v3295_v7  ;;  %v3402_v27 = vld [vmem:[%s6683_s24 + $0x670] sm:$0xff] }
 0x214   : > { %4867 = vmatpush3.msra.mxu1 %v3327_v43  ;;  %4812 = vmatprep.subr.mxu0 %v3310_v52  ;;  %v3090_v7 = vld [vmem:[%s8357_s4 + $0xb0] sm:$0xff]  ;;  %v3092_v43 = vld [vmem:[%s8357_s4 + $0xc0] sm:$0xff]  ;;  %v3385_v52 = vld [vmem:[%s6683_s24 + $0x5e8] sm:$0xff] }
 0x215   : > { %4868 = vmatprep.subr.mxu1 %v3342_v20  ;;  %3704 = vmatprep.mubr.f32.mxu0 %v3183_v32  ;;  %v3417_v32 = vld [vmem:[%s6683_s24 + $0x6e8] sm:$0xff] }
 0x216   : > { %3809 = vmatprep.mubr.f32.mxu1 %v3185_v23  ;;  %4813 = vmatpush3.msra.mxu0 %v3294_v16  ;;  %v3369_v23 = vld [vmem:[%s6683_s24 + $0x568] sm:$0xff] }
 0x217   : > { %4869 = vmatpush3.msra.mxu1 %v3326_v8  ;;  %3705 = vmatmul.mubr.f32.gmra.mxu0 %v3182_v5  ;;  %v3401_v8 = vld [vmem:[%s6683_s24 + $0x668] sm:$0xff]  ;;  %v3384_v5 = vld [vmem:[%s6683_s24 + $0x5e0] sm:$0xff] }
 0x218   : > { %3810 = vmatmul.mubr.f32.gmra.mxu1 %v3184_v42  ;;  %4814 = vmatprep.subr.mxu0 %v3309_v24  ;;  %v3416_v24 = vld [vmem:[%s6683_s24 + $0x6e0] sm:$0xff] }
 0x219   : > { %4870 = vmatprep.subr.mxu1 %v3341_v50  ;;  %4815 = vmatpush3.msra.mxu0 %v3293_v25  ;;  %v3107_v50 = vld [vmem:[%s8357_s4 + $0x138] sm:$0xff] }
 0x21a   : > { %4871 = vmatpush3.msra.mxu1 %v3325_v17  ;;  %4816 = vmatprep.subr.mxu0 %v3308_v28  ;;  %v3109_v17 = vld [vmem:[%s8357_s4 + $0x148] sm:$0xff]  ;;  %v3368_v28 = vld [vmem:[%s6683_s24 + $0x560] sm:$0xff] }
 0x21b   : > { %4872 = vmatprep.subr.mxu1 %v3340_v0  ;;  %4817 = vmatpush3.msra.mxu0 %v3292_v61  ;;  %v3400_v61 = vld [vmem:[%s6683_s24 + $0x660] sm:$0xff] }
 0x21c   : > { %3879 = vmatprep.mubr.f32.mxu0 %v3075_v15  ;;  %4873 = vmatpush3.msra.mxu1 %v3324_v47  ;;  %v3106_v15 = vld [vmem:[%s8357_s4 + $0x130] sm:$0xff] }
 0x21d   : > { %3984 = vmatprep.mubr.f32.mxu1 %v3077_v41  ;;  %3880 = vmatmul.mubr.f32.vlgmr.msra.gmra.mxu0 %v3074_v38  ;;  %v3108_v41 = vld [vmem:[%s8357_s4 + $0x140] sm:$0xff]  ;;  %v3383_v38 = vld [vmem:[%s6683_s24 + $0x5d8] sm:$0xff] }
 0x21e   : > { %3985 = vmatmul.mubr.f32.vlgmr.msra.gmra.mxu1 %v3076_v48  ;;  %4898 = vmatprep.subr.mxu0 %v3387_v6  ;;  %v3415_v6 = vld [vmem:[%s6683_s24 + $0x6d8] sm:$0xff] }
 0x21f   : > { %4954 = vmatprep.subr.mxu1 %v3419_v4  ;;  %4899 = vmatpush3.msra.mxu0 %v3371_v1  ;;  %v3367_v4 = vld [vmem:[%s6683_s24 + $0x558] sm:$0xff] }
 0x220   : > { %4955 = vmatpush3.msra.mxu1 %v3403_v63  ;;  %4900 = vmatprep.subr.mxu0 %v3386_v36  ;;  %v3399_v63 = vld [vmem:[%s6683_s24 + $0x658] sm:$0xff]  ;;  %v3382_v36 = vld [vmem:[%s6683_s24 + $0x5d0] sm:$0xff] }
 0x221   : > { %4956 = vmatprep.subr.mxu1 %v3418_v34  ;;  %3884 = vmatprep.mubr.f32.mxu0 %v3091_v12  ;;  %v7335_v20 = vpop.f32.mrf.mxu0  ;;  %v7339_v16 = vpop.f32.mrf.mxu1  ;;  %v3414_v12 = vld [vmem:[%s6683_s24 + $0x6d0] sm:$0xff] }
 0x222   : > { %3989 = vmatprep.mubr.f32.mxu1 %v3093_v53  ;;  %4901 = vmatpush3.msra.mxu0 %v3370_v11  ;;  %v3123_v53 = vld [vmem:[%s8357_s4 + $0x1b8] sm:$0xff] }
 0x223   : > { %4957 = vmatpush3.msra.mxu1 %v3402_v27  ;;  %3885 = vmatmul.mubr.f32.gmra.mxu0 %v3090_v7  ;;  %v7343_v42 = vpop.f32.mrf.mxu0  ;;  %v7349_v25 = vpop.f32.mrf.mxu1  ;;  %v3125_v27 = vld [vmem:[%s8357_s4 + $0x1c8] sm:$0xff]  ;;  %v3366_v7 = vld [vmem:[%s6683_s24 + $0x550] sm:$0xff] }
 0x224   : > { %3990 = vmatmul.mubr.f32.gmra.mxu1 %v3092_v43  ;;  %4902 = vmatprep.subr.mxu0 %v3385_v52  ;;  %8379 = vst [vmem:[#allocation8_spill] sm:$0xff] %v7349_v25  ;;  %v3398_v52 = vld [vmem:[%s6683_s24 + $0x650] sm:$0xff] }
 0x225   : > { %4958 = vmatprep.subr.mxu1 %v3417_v32  ;;  %4903 = vmatpush3.msra.mxu0 %v3369_v23  ;;  %v7355_v0 = vpop.f32.mrf.mxu0  ;;  %v7361_v47 = vpop.f32.mrf.mxu1  ;;  %v3122_v32 = vld [vmem:[%s8357_s4 + $0x1b0] sm:$0xff] }
 0x226   : > { %4959 = vmatpush3.msra.mxu1 %v3401_v8  ;;  %4904 = vmatprep.subr.mxu0 %v3384_v5  ;;  %v3124_v8 = vld [vmem:[%s8357_s4 + $0x1c0] sm:$0xff]  ;;  %v3381_v5 = vld [vmem:[%s6683_s24 + $0x5c8] sm:$0xff]  ;;  %v3374_v25 = vld [vmem:[%s6683_s24 + $0x590] sm:$0xff] }
 0x227   : > { %4960 = vmatprep.subr.mxu1 %v3416_v24  ;;  %3889 = vmatprep.mubr.f32.mxu0 %v3107_v50  ;;  %v7367_v48 = vpop.f32.mrf.mxu0  ;;  %v7371_v1 = vpop.f32.mrf.mxu1  ;;  %v3413_v50 = vld [vmem:[%s6683_s24 + $0x6c8] sm:$0xff] }
 0x228   : > { %3994 = vmatprep.mubr.f32.mxu1 %v3109_v17  ;;  %4905 = vmatpush3.msra.mxu0 %v3368_v28  ;;  %8380 = vst [vmem:[#allocation9_spill] sm:$0xff] %v7371_v1  ;;  %v3453_v17 = vld [vmem:[%s8358_s5 + $0x8] sm:$0xff] }
 0x229   : > { %4961 = vmatpush3.msra.mxu1 %v3400_v61  ;;  %3890 = vmatmul.mubr.f32.gmra.mxu0 %v3106_v15  ;;  %v7375_v34 = vpop.f32.mrf.mxu0  ;;  %v7381_v11 = vpop.f32.mrf.mxu1  ;;  %v3365_v61 = vld [vmem:[%s6683_s24 + $0x548] sm:$0xff] }
 0x22a   : > { %3995 = vmatmul.mubr.f32.gmra.mxu1 %v3108_v41  ;;  %4906 = vmatprep.subr.mxu0 %v3383_v38  ;;  %v3397_v15 = vld [vmem:[%s6683_s24 + $0x648] sm:$0xff]  ;;  %v3380_v38 = vld [vmem:[%s6683_s24 + $0x5c0] sm:$0xff] }
 0x22b   : > { %4962 = vmatprep.subr.mxu1 %v3415_v6  ;;  %4907 = vmatpush3.msra.mxu0 %v3367_v4  ;;  %v7387_v43 = vpop.f32.mrf.mxu0  ;;  %v7393_v23 = vpop.f32.mrf.mxu1  ;;  %v3412_v6 = vld [vmem:[%s6683_s24 + $0x6c0] sm:$0xff] }
 0x22c   : > { %4963 = vmatpush3.msra.mxu1 %v3399_v63  ;;  %4908 = vmatprep.subr.mxu0 %v3382_v36  ;;  %8381 = vst [vmem:[#allocation10_spill] sm:$0xff] %v7393_v23  ;;  %v3139_v63 = vld [vmem:[%s8357_s4 + $0x238] sm:$0xff]  ;;  %v3141_v36 = vld [vmem:[%s8357_s4 + $0x248] sm:$0xff] }
 0x22d   : > { %4964 = vmatprep.subr.mxu1 %v3414_v12  ;;  %3894 = vmatprep.mubr.f32.mxu0 %v3123_v53  ;;  %v7399_v24 = vpop.f32.mrf.mxu0  ;;  %v7405_v28 = vpop.f32.mrf.mxu1  ;;  %v3364_v53 = vld [vmem:[%s6683_s24 + $0x540] sm:$0xff] }
 0x22e   : > { %3999 = vmatprep.mubr.f32.mxu1 %v3125_v27  ;;  %4909 = vmatpush3.msra.mxu0 %v3366_v7  ;;  %v3396_v27 = vld [vmem:[%s6683_s24 + $0x640] sm:$0xff] }
 0x22f   : > { %4965 = vmatpush3.msra.mxu1 %v3398_v52  ;;  %3895 = vmatmul.mubr.f32.gmra.mxu0 %v3122_v32  ;;  %v7409_v41 = vpop.f32.mrf.mxu0  ;;  %v7413_v4 = vpop.f32.mrf.mxu1  ;;  %v3138_v52 = vld [vmem:[%s8357_s4 + $0x230] sm:$0xff]  ;;  %v3140_v32 = vld [vmem:[%s8357_s4 + $0x240] sm:$0xff] }
 0x230   : > { %4000 = vmatmul.mubr.f32.gmra.mxu1 %v3124_v8  ;;  %4910 = vmatprep.subr.mxu0 %v3381_v5  ;;  %8382 = vst [vmem:[#allocation11_spill] sm:$0xff] %v7413_v4  ;;  %v3379_v5 = vld [vmem:[%s6683_s24 + $0x5b8] sm:$0xff] }
 0x231   : > { %4966 = vmatprep.subr.mxu1 %v3413_v50  ;;  %3467 = vperm.xlu1 %5140, %v3453_v17   ;;  %v7421_v12 = vpop.f32.mrf.mxu0  ;;  %v7425_v7 = vpop.f32.mrf.mxu1  ;;  %v3411_v50 = vld [vmem:[%s6683_s24 + $0x6b8] sm:$0xff] }
 0x232   : > { %4911 = vmatpush3.msra.mxu0 %v3365_v61  ;;  %4967 = vmatpush3.msra.mxu1 %v3397_v15  ;;  %8383 = vst [vmem:[#allocation12_spill] sm:$0xff] %v7425_v7  ;;  %v3454_v61 = vld [vmem:[%s8358_s5 + $0x10] sm:$0xff]  ;;  %v3363_v15 = vld [vmem:[%s6683_s24 + $0x538] sm:$0xff] }
 0x233   : > { %4912 = vmatprep.subr.mxu0 %v3380_v38  ;;  %4968 = vmatprep.subr.mxu1 %v3412_v6  ;;  %v7433_v8 = vpop.f32.mrf.mxu0  ;;  %v7437_v17 = vpop.f32.mrf.mxu1  ;;  %v3395_v6 = vld [vmem:[%s6683_s24 + $0x638] sm:$0xff] }
 0x234   : > { %8384 = vst [vmem:[#allocation13_spill] sm:$0xff] %v7433_v8  ;;  %3899 = vmatprep.mubr.f32.mxu0 %v3139_v63  ;;  %4004 = vmatprep.mubr.f32.mxu1 %v3141_v36  ;;  %8385 = vst [vmem:[#allocation14_spill] sm:$0xff] %v7437_v17  ;;  %v3378_v63 = vld [vmem:[%s6683_s24 + $0x5b0] sm:$0xff] }
 0x235   : > { %4913 = vmatpush3.msra.mxu0 %v3364_v53  ;;  %4969 = vmatpush3.msra.mxu1 %v3396_v27  ;;  %v7443_v38 = vpop.f32.mrf.mxu0  ;;  %v7447_v36 = vpop.f32.mrf.mxu1  ;;  %v3410_v17 = vld [vmem:[%s6683_s24 + $0x6b0] sm:$0xff]  ;;  %v3155_v53 = vld [vmem:[%s8357_s4 + $0x2b8] sm:$0xff] }
 0x236   : > { %8386 = vst [vmem:[#allocation15_spill] sm:$0xff] %v7443_v38  ;;  %3900 = vmatmul.mubr.f32.gmra.mxu0 %v3138_v52  ;;  %4005 = vmatmul.mubr.f32.gmra.mxu1 %v3140_v32  ;;  %8387 = vst [vmem:[#allocation16_spill] sm:$0xff] %v7447_v36  ;;  %v3157_v52 = vld [vmem:[%s8357_s4 + $0x2c8] sm:$0xff]  ;;  %v3362_v32 = vld [vmem:[%s6683_s24 + $0x530] sm:$0xff] }
 0x237   : > { %4914 = vmatprep.subr.mxu0 %v3379_v5  ;;  %4970 = vmatprep.subr.mxu1 %v3411_v50  ;;  %v7453_v27 = vpop.f32.mrf.mxu0  ;;  %v7459_v7 = vpop.f32.mrf.mxu1  ;;  %v3394_v5 = vld [vmem:[%s6683_s24 + $0x630] sm:$0xff] }
 0x238   : > { %8388 = vst [vmem:[#allocation17_spill] sm:$0xff] %v7453_v27  ;;  %3472 = vperm.xlu0 %5139, %v3454_v61   ;;  %4915 = vmatpush3.msra.mxu0 %v3363_v15  ;;  %8389 = vst [vmem:[#allocation18_spill] sm:$0xff] %v7459_v7  ;;  %v3154_v50 = vld [vmem:[%s8357_s4 + $0x2b0] sm:$0xff]  ;;  %v3156_v61 = vld [vmem:[%s8357_s4 + $0x2c0] sm:$0xff] }
 0x239   : > { %4971 = vmatpush3.msra.mxu1 %v3395_v6  ;;  %4916 = vmatprep.subr.mxu0 %v3378_v63  ;;  %v2349_v36 = vpop.f32.mrf.mxu0  ;;  %v3377_v15 = vld [vmem:[%s6683_s24 + $0x5a8] sm:$0xff]  ;;  %v2422_v7 = vpop.f32.mrf.mxu1  ;;  %v3455_v63 = vld [vmem:[%s8358_s5 + $0x18] sm:$0xff] }
 0x23a   : > { %4972 = vmatprep.subr.mxu1 %v3410_v17  ;;  %3904 = vmatprep.mubr.f32.mxu0 %v3155_v53  ;;  %v2350_v27 = vadd.f32 %v2349_v36, %v6150_v54  ;;  %v3409_v6 = vld [vmem:[%s6683_s24 + $0x6a8] sm:$0xff]  ;;  %v2423_v17 = vadd.f32 %v2422_v7, %v6150_v54  ;;  %v3171_v7 = vld [vmem:[%s8357_s4 + $0x338] sm:$0xff] }
 0x23b   : > { %4009 = vmatprep.mubr.f32.mxu1 %v3157_v52  ;;  %4917 = vmatpush3.msra.mxu0 %v3362_v32  ;;  %v2351_v38 = vpop.f32.mrf.mxu0  ;;  %v3361_v53 = vld [vmem:[%s6683_s24 + $0x528] sm:$0xff]  ;;  %v2424_v4 = vpop.f32.mrf.mxu1  ;;  %v3376_v52 = vld [vmem:[%s6683_s24 + $0x5a0] sm:$0xff] }
 0x23c   : > { %4973 = vmatpush3.msra.mxu1 %v3394_v5  ;;  %3905 = vmatmul.mubr.f32.gmra.mxu0 %v3154_v50  ;;  %v2808_v8 = vmax.f32 %v2350_v27, 0.0  ;;  %v2352_v36 = vadd.f32 %v2351_v38, %v6150_v54  ;;  %v3408_v32 = vld [vmem:[%s6683_s24 + $0x6a0] sm:$0xff]  ;;  %v2425_v1 = vadd.f32 %v2424_v4, %v6150_v54  ;;  %v3173_v38 = vld [vmem:[%s8357_s4 + $0x348] sm:$0xff] }
 0x23d   : > { %4010 = vmatmul.mubr.f32.gmra.mxu1 %v3156_v61  ;;  %4918 = vmatprep.subr.mxu0 %v3377_v15  ;;  %v2353_v23 = vpop.f32.mrf.mxu0  ;;  %v2810_v61 = vmax.f32 %v2423_v17, 0.0  ;;  %v2426_v15 = vpop.f32.mrf.mxu1  ;;  %v3360_v4 = vld [vmem:[%s6683_s24 + $0x520] sm:$0xff] }
 0x23e   : > { %4974 = vmatprep.subr.mxu1 %v3409_v6  ;;  %3477 = vperm.xlu1 %5140, %v3455_v63   ;;  %v3020_v27 = vadd.f32 %v7233_v37, %v2808_v8  ;;  %v2809_v5 = vmax.f32 %v2352_v36, 0.0  ;;  %v2354_v50 = vadd.f32 %v2353_v23, %v6168_v22  ;;  %v3392_v6 = vld [vmem:[%s6683_s24 + $0x620] sm:$0xff]  ;;  %v2427_v54 = vadd.f32 %v2426_v15, %v6168_v22  ;;  %v3170_v37 = vld [vmem:[%s8357_s4 + $0x330] sm:$0xff] }
 0x23f   : > { %4919 = vmatpush3.msra.mxu0 %v3361_v53  ;;  %4975 = vmatpush3.msra.mxu1 %v3393_v49  ;;  %v2355_v63 = vpop.f32.mrf.mxu0  ;;  %v3172_v23 = vld [vmem:[%s8357_s4 + $0x340] sm:$0xff]  ;;  %v2811_v53 = vmax.f32 %v2425_v1, 0.0  ;;  %v2428_v36 = vpop.f32.mrf.mxu1 }
 0x240   : > { %4920 = vmatprep.subr.mxu0 %v3376_v52  ;;  %4976 = vmatprep.subr.mxu1 %v3408_v32  ;;  %v3021_v8 = vadd.f32 %v3020_v27, %v2809_v5  ;;  %v2833_v49 = vmax.f32 %v2354_v50, 0.0  ;;  %v2356_v17 = vadd.f32 %v2355_v63, %v6168_v22  ;;  %v3375_v52 = vld [vmem:[%s6683_s24 + $0x598] sm:$0xff]  ;;  %v2429_v15 = vadd.f32 %v2428_v36, %v6168_v22  ;;  %v3456_v27 = vld [vmem:[%s8358_s5 + $0x20] sm:$0xff] }
 0x241   : > { %3909 = vmatprep.mubr.f32.mxu0 %v3171_v7  ;;  %4014 = vmatprep.mubr.f32.mxu1 %v3173_v38  ;;  %v3407_v32 = vld [vmem:[%s6683_s24 + $0x698] sm:$0xff]  ;;  %v2835_v7 = vmax.f32 %v2427_v54, 0.0  ;;  %v3189_v54 = vld [vmem:[%s8357_s4 + $0x3c8] sm:$0xff] }
 0x242   : > { %4921 = vmatpush3.msra.mxu0 %v3360_v4  ;;  %4977 = vmatpush3.msra.mxu1 %v3392_v6  ;;  %v3359_v5 = vld [vmem:[%s6683_s24 + $0x518] sm:$0xff]  ;;  %v3047_v50 = vadd.f32 %v7249_v26, %v2833_v49  ;;  %v3022_v1 = vadd.f32 %v3021_v8, %v2810_v61  ;;  %v2834_v63 = vmax.f32 %v2356_v17, 0.0  ;;  %v3406_v4 = vld [vmem:[%s6683_s24 + $0x690] sm:$0xff]  ;;  %v2836_v26 = vmax.f32 %v2429_v15, 0.0  ;;  %v3188_v49 = vld [vmem:[%s8357_s4 + $0x3c0] sm:$0xff] }
 0x243   : > { %3910 = vmatmul.mubr.f32.gmra.mxu0 %v3170_v37  ;;  %4015 = vmatmul.mubr.f32.gmra.mxu1 %v3172_v23  ;;  %v3391_v38 = vld [vmem:[%s6683_s24 + $0x618] sm:$0xff]  ;;  %v3358_v61 = vld [vmem:[%s6683_s24 + $0x510] sm:$0xff]  ;;  %v3373_v17 = vld [vmem:[%s6683_s24 + $0x588] sm:$0xff] }
 0x244   : > { %4922 = vmatprep.subr.mxu0 %v3375_v52  ;;  %4978 = vmatprep.subr.mxu1 %v3407_v32  ;;  %v3187_v6 = vld [vmem:[%s8357_s4 + $0x3b8] sm:$0xff]  ;;  %v3048_v36 = vadd.f32 %v3047_v50, %v2834_v63  ;;  %v7513_v22 = vadd.f32 %v3022_v1, %v2811_v53  ;;  %v3390_v37 = vld [vmem:[%s6683_s24 + $0x610] sm:$0xff]  ;;  %v3457_v53 = vld [vmem:[%s8358_s5 + $0x28] sm:$0xff] }
 0x245   : > { %3482 = vperm.xlu0 %5139, %v3456_v27   ;;  %4923 = vmatpush3.msra.mxu0 %v3359_v5  ;;  %v3186_v23 = vld [vmem:[%s8357_s4 + $0x3b0] sm:$0xff]  ;;  %v3357_v32 = vld [vmem:[%s6683_s24 + $0x508] sm:$0xff]  ;;  %v3372_v27 = vld [vmem:[%s6683_s24 + $0x580] sm:$0xff] }
 0x246   : > { %4979 = vmatpush3.msra.mxu1 %v3391_v38  ;;  %4924 = vmatprep.subr.mxu0 %v3374_v25  ;;  %v3049_v8 = vadd.f32 %v3048_v36, %v2835_v7  ;;  %v3405_v25 = vld [vmem:[%s6683_s24 + $0x688] sm:$0xff]  ;;  %v3404_v5 = vld [vmem:[%s6683_s24 + $0x680] sm:$0xff]  ;;  %v3079_v1 = vld [vmem:[%s8357_s4 + $0x58] sm:$0xff] }
 0x247   : > { %4980 = vmatprep.subr.mxu1 %v3406_v4  ;;  %3914 = vmatprep.mubr.f32.mxu0 %v3187_v6  ;;  %v3389_v15 = vld [vmem:[%s6683_s24 + $0x608] sm:$0xff]  ;;  %v3356_v50 = vld [vmem:[%s6683_s24 + $0x500] sm:$0xff]  ;;  %v3078_v38 = vld [vmem:[%s8357_s4 + $0x50] sm:$0xff] }
 0x248   : > { %4019 = vmatprep.mubr.f32.mxu1 %v3189_v54  ;;  %4925 = vmatpush3.msra.mxu0 %v3358_v61  ;;  %v7531_v52 = vadd.f32 %v3049_v8, %v2836_v26  ;;  %v3388_v63 = vld [vmem:[%s6683_s24 + $0x600] sm:$0xff]  ;;  %v3081_v7 = vld [vmem:[%s8357_s4 + $0x68] sm:$0xff]  ;;  %v3451_v6 = vld [vmem:[%s6683_s24 + $0x7f8] sm:$0xff] }
 0x249   : > { %4981 = vmatpush3.msra.mxu1 %v3390_v37  ;;  %3915 = vmatmul.mubr.f32.gmra.mxu0 %v3186_v23  ;;  %v3080_v4 = vld [vmem:[%s8357_s4 + $0x60] sm:$0xff]  ;;  %v3458_v36 = vld [vmem:[%s8358_s5 + $0x30] sm:$0xff]  ;;  %v3435_v26 = vld [vmem:[%s6683_s24 + $0x778] sm:$0xff] }
 0x24a   : > { %4020 = vmatmul.mubr.f32.gmra.mxu1 %v3188_v49  ;;  %4926 = vmatprep.subr.mxu0 %v3373_v17  ;;  %v3450_v54 = vld [vmem:[%s6683_s24 + $0x7f0] sm:$0xff]  ;;  %v3095_v61 = vld [vmem:[%s8357_s4 + $0xd8] sm:$0xff]  ;;  %v3097_v37 = vld [vmem:[%s8357_s4 + $0xe8] sm:$0xff] }
 0x24b   : > { %4982 = vmatprep.subr.mxu1 %v3405_v25  ;;  %3487 = vperm.xlu1 %5140, %v3457_v53   ;;  %v3434_v23 = vld [vmem:[%s6683_s24 + $0x770] sm:$0xff]  ;;  %v3096_v49 = vld [vmem:[%s8357_s4 + $0xe0] sm:$0xff]  ;;  %v3449_v17 = vld [vmem:[%s6683_s24 + $0x7e8] sm:$0xff] }
 0x24c   : > { %4927 = vmatpush3.msra.mxu0 %v3357_v32  ;;  %4983 = vmatpush3.msra.mxu1 %v3389_v15  ;;  %v3094_v8 = vld [vmem:[%s8357_s4 + $0xd0] sm:$0xff]  ;;  %v3459_v25 = vld [vmem:[%s8358_s5 + $0x38] sm:$0xff]  ;;  %v3433_v53 = vld [vmem:[%s6683_s24 + $0x768] sm:$0xff]  ;;  %v2176_v15 = vadd.f32 %v7045_v35, %v6035_v14 }
 0x24d   : > { %4928 = vmatprep.subr.mxu0 %v3372_v27  ;;  %4984 = vmatprep.subr.mxu1 %v3404_v5  ;;  %v3448_v32 = vld [vmem:[%s6683_s24 + $0x7e0] sm:$0xff]  ;;  %v2180_v27 = vadd.f32 %v7067_v10, %v6052_v40  ;;  %v3111_v5 = vld [vmem:[%s8357_s4 + $0x158] sm:$0xff]  ;;  %v3110_v10 = vld [vmem:[%s8357_s4 + $0x150] sm:$0xff] }
 0x24e   : > { %4929 = vmatpush3.msra.mxu0 %v3356_v50  ;;  %4089 = vmatprep.mubr.f32.mxu0 %v3079_v1  ;;  %v3113_v50 = vld [vmem:[%s8357_s4 + $0x168] sm:$0xff]  ;;  %v2186_v1 = vadd.f32 %v7095_v19, %v6069_v55  ;;  %v3432_v35 = vld [vmem:[%s6683_s24 + $0x760] sm:$0xff]  ;;  %v3447_v19 = vld [vmem:[%s6683_s24 + $0x7d8] sm:$0xff] }
 0x24f   : > { %4985 = vmatpush3.msra.mxu1 %v3388_v63  ;;  %4194 = vmatprep.mubr.f32.mxu1 %v3081_v7  ;;  %v3112_v63 = vld [vmem:[%s8357_s4 + $0x160] sm:$0xff]  ;;  %v2190_v7 = vadd.f32 %v7119_v31, %v6093_v33  ;;  %v2251_v31 = vadd.f32 %v7063_v13, %v6052_v40 }
 0x250   : > { %4090 = vmatmul.mubr.f32.vlgmr.msra.gmra.mxu0 %v3078_v38  ;;  %4195 = vmatmul.mubr.f32.vlgmr.msra.gmra.mxu1 %v3080_v4  ;;  %v2655_v38 = vmax.f32 %v2176_v15, 0.0  ;;  %v2680_v4 = vmax.f32 %v2180_v27, 0.0 }
 0x251   : > { %5010 = vmatprep.subr.mxu0 %v3451_v6  ;;  %5066 = vmatprep.subr.mxu1 %v3451_v6  ;;  %v3431_v6 = vld [vmem:[%s6683_s24 + $0x758] sm:$0xff] }
 0x252   : > { %3492 = vperm.xlu0 %5139, %v3458_v36   ;;  %5011 = vmatpush3.msra.mxu0 %v3435_v26  ;;  %v2705_v36 = vmax.f32 %v2186_v1, 0.0  ;;  %v2854_v13 = vadd.f32 %v7060_v56, %v2655_v38  ;;  %v2259_v56 = vadd.f32 %v7102_v21, %v6069_v55  ;;  %v7639_v21 = vadd.f32 %v7128_v2, %v6093_v33  ;;  %v3143_v2 = vld [vmem:[%s8357_s4 + $0x258] sm:$0xff] }
 0x253   : > { %5082 = vmatpush3.msra.mxu1 %v3435_v26  ;;  %5012 = vmatprep.subr.mxu0 %v3450_v54  ;;  %v2257_v26 = vadd.f32 %v7089_v44, %v6069_v55  ;;  %v2730_v44 = vmax.f32 %v2190_v7, 0.0 }
 0x254   : > { %5067 = vmatprep.subr.mxu1 %v3450_v54  ;;  %4094 = vmatprep.mubr.f32.mxu0 %v3095_v61  ;;  %v3446_v54 = vld [vmem:[%s6683_s24 + $0x7d0] sm:$0xff]  ;;  %v2247_v61 = vadd.f32 %v7039_v30, %v6035_v14 }
 0x255   : > { %4199 = vmatprep.mubr.f32.mxu1 %v3097_v37  ;;  %5013 = vmatpush3.msra.mxu0 %v3434_v23  ;;  %v3127_v37 = vld [vmem:[%s8357_s4 + $0x1d8] sm:$0xff]  ;;  %v3430_v30 = vld [vmem:[%s6683_s24 + $0x750] sm:$0xff] }
 0x256   : > { %5083 = vmatpush3.msra.mxu1 %v3434_v23  ;;  %4095 = vmatmul.mubr.f32.gmra.mxu0 %v3094_v8  ;;  %v3129_v23 = vld [vmem:[%s8357_s4 + $0x1e8] sm:$0xff]  ;;  %v2261_v8 = vadd.f32 %v7113_v51, %v6093_v33  ;;  %v2249_v51 = vadd.f32 %v7052_v62, %v6035_v14  ;;  %v2656_v27 = vmax.f32 %v2247_v61, 0.0 }
 0x257   : > { %4200 = vmatmul.mubr.f32.gmra.mxu1 %v3096_v49  ;;  %5014 = vmatprep.subr.mxu0 %v3449_v17  ;;  %v2882_v49 = vadd.f32 %v7086_v29, %v2680_v4  ;;  %v3445_v29 = vld [vmem:[%s6683_s24 + $0x7c8] sm:$0xff] }
 0x258   : > { %5068 = vmatprep.subr.mxu1 %v3449_v17  ;;  %3497 = vperm.xlu1 %5140, %v3459_v25   ;;  %v3126_v17 = vld [vmem:[%s8357_s4 + $0x1d0] sm:$0xff]  ;;  %v3128_v25 = vld [vmem:[%s8357_s4 + $0x1e0] sm:$0xff]  ;;  %v3429_v62 = vld [vmem:[%s6683_s24 + $0x748] sm:$0xff]  ;;  %v2855_v7 = vadd.f32 %v2854_v13, %v2656_v27  ;;  %v2657_v4 = vmax.f32 %v2249_v51, 0.0 }
 0x259   : > { %5015 = vmatpush3.msra.mxu0 %v3433_v53  ;;  %5084 = vmatpush3.msra.mxu1 %v3433_v53  ;;  %v2909_v53 = vadd.f32 %v7110_v18, %v2705_v36  ;;  %v2936_v18 = vadd.f32 %v7136_v39, %v2730_v44  ;;  %v7650_v39 = vadd.f32 %v7355_v0, %v6052_v40  ;;  %v2707_v36 = vmax.f32 %v2259_v56, 0.0  ;;  %v3428_v0 = vld [vmem:[%s6683_s24 + $0x740] sm:$0xff]  ;;  %v3443_v13 = vld [vmem:[%s6683_s24 + $0x7b8] sm:$0xff] }
 0x25a   : > { %5016 = vmatprep.subr.mxu0 %v3448_v32  ;;  %5069 = vmatprep.subr.mxu1 %v3448_v32  ;;  %v2706_v32 = vmax.f32 %v2257_v26, 0.0  ;;  %v7662_v26 = vadd.f32 %v7375_v34, %v6069_v55  ;;  %v3142_v34 = vld [vmem:[%s8357_s4 + $0x250] sm:$0xff]  ;;  %v3144_v44 = vld [vmem:[%s8357_s4 + $0x260] sm:$0xff] }
 0x25b   : > { %4099 = vmatprep.mubr.f32.mxu0 %v3111_v5  ;;  %4204 = vmatprep.mubr.f32.mxu1 %v3113_v50  ;;  %v2681_v5 = vmax.f32 %v2251_v31, 0.0  ;;  %v2253_v50 = vadd.f32 %v7074_v45, %v6052_v40  ;;  %v7669_v31 = vadd.f32 %v7139_v9, %v6112_v60  ;;  %v2683_v51 = vmax.f32 %v7650_v39, 0.0  ;;  %v3426_v39 = vld [vmem:[%s6683_s24 + $0x730] sm:$0xff] }
 0x25c   : > { %5017 = vmatpush3.msra.mxu0 %v3432_v35  ;;  %5085 = vmatpush3.msra.mxu1 %v3432_v35  ;;  %v2731_v35 = vmax.f32 %v2261_v8, 0.0  ;;  %v2708_v27 = vmax.f32 %v7662_v26, 0.0  ;;  %v3160_v26 = vld [vmem:[%s8357_s4 + $0x2e0] sm:$0xff] }
 0x25d   : > { %4100 = vmatmul.mubr.f32.gmra.mxu0 %v3110_v10  ;;  %4205 = vmatmul.mubr.f32.gmra.mxu1 %v3112_v63  ;;  %v7643_v10 = vadd.f32 %v7335_v20, %v6035_v14  ;;  %v3444_v63 = vld [vmem:[%s6683_s24 + $0x7c0] sm:$0xff]  ;;  %v3145_v20 = vld [vmem:[%s8357_s4 + $0x268] sm:$0xff]  ;;  %v2682_v61 = vmax.f32 %v2253_v50, 0.0 }
 0x25e   : > { %5018 = vmatprep.subr.mxu0 %v3447_v19  ;;  %5070 = vmatprep.subr.mxu1 %v3447_v19  ;;  %v2883_v19 = vadd.f32 %v2882_v49, %v2681_v5  ;;  %v2937_v8 = vadd.f32 %v2936_v18, %v2731_v35  ;;  %v7711_v5 = vadd.f32 %v7387_v43, %v6069_v55  ;;  %v3159_v43 = vld [vmem:[%s8357_s4 + $0x2d8] sm:$0xff] }
 0x25f   : > { %5019 = vmatpush3.msra.mxu0 %v3431_v6  ;;  %5086 = vmatpush3.msra.mxu1 %v3431_v6  ;;  %v2910_v6 = vadd.f32 %v2909_v53, %v2706_v32  ;;  %v7699_v53 = vadd.f32 %v7367_v48, %v6052_v40  ;;  %v3427_v32 = vld [vmem:[%s6683_s24 + $0x738] sm:$0xff]  ;;  %v3442_v48 = vld [vmem:[%s6683_s24 + $0x7b0] sm:$0xff] }
 0x260   : > { %5020 = vmatprep.subr.mxu0 %v3446_v54  ;;  %5071 = vmatprep.subr.mxu1 %v3446_v54 }
 0x261   : > { %4104 = vmatprep.mubr.f32.mxu0 %v3127_v37  ;;  %4209 = vmatprep.mubr.f32.mxu1 %v3129_v23  ;;  %v7629_v15 = vpop.f32.mrf.mxu0  ;;  %v7634_v1 = vpop.f32.mrf.mxu1  ;;  %v7673_v37 = vadd.f32 %v7153_v3, %v6112_v60  ;;  %v7677_v23 = vadd.f32 %v7399_v24, %v6093_v33  ;;  %v2732_v3 = vmax.f32 %v7639_v21, 0.0  ;;  %v7691_v24 = vadd.f32 %v7343_v42, %v6035_v14  ;;  %v3161_v21 = vld [vmem:[%s8357_s4 + $0x2e8] sm:$0xff] }
 0x262   : > { %5021 = vmatpush3.msra.mxu0 %v3430_v30  ;;  %5087 = vmatpush3.msra.mxu1 %v3430_v30  ;;  %v2658_v30 = vmax.f32 %v7643_v10, 0.0  ;;  %v2911_v42 = vadd.f32 %v2910_v6, %v2707_v36  ;;  %v7745_v6 = vadd.f32 %v7361_v47, %v6052_v40  ;;  %v3158_v36 = vld [vmem:[%s8357_s4 + $0x2d0] sm:$0xff]  ;;  %v2709_v47 = vmax.f32 %v7711_v5, 0.0  ;;  %v3175_v5 = vld [vmem:[%s8357_s4 + $0x358] sm:$0xff] }
 0x263   : > { %4105 = vmatmul.mubr.f32.gmra.mxu0 %v3126_v17  ;;  %4210 = vmatmul.mubr.f32.gmra.mxu1 %v3128_v25  ;;  %v7646_v45 = vpop.f32.mrf.mxu0  ;;  %v7658_v38 = vpop.f32.mrf.mxu1  ;;  %v2856_v17 = vadd.f32 %v2855_v7, %v2657_v4  ;;  %v2884_v25 = vadd.f32 %v2883_v19, %v2682_v61  ;;  %v2757_v18 = vmax.f32 %v7673_v37, 0.0  ;;  %v2733_v35 = vmax.f32 %v7677_v23, 0.0  ;;  %v3441_v23 = vld [vmem:[%s6683_s24 + $0x7a8] sm:$0xff]  ;;  %v3423_v37 = vld [vmem:[%s6683_s24 + $0x718] sm:$0xff] }
 0x264   : > { %5022 = vmatprep.subr.mxu0 %v3445_v29  ;;  %5072 = vmatprep.subr.mxu1 %v3445_v29  ;;  %v7706_v29 = vadd.f32 %v7164_v59, %v6130_v57  ;;  %v7721_v59 = vadd.f32 %v7409_v41, %v6093_v33  ;;  %v7733_v7 = vadd.f32 %v7179_v58, %v6130_v57  ;;  %v2659_v41 = vmax.f32 %v7691_v24, 0.0 }
 0x265   : > { %5023 = vmatpush3.msra.mxu0 %v3429_v62  ;;  %5088 = vmatpush3.msra.mxu1 %v3429_v62  ;;  %v7665_v54 = vpop.f32.mrf.mxu0  ;;  %v7685_v9 = vpop.f32.mrf.mxu1  ;;  %v2756_v62 = vmax.f32 %v7669_v31, 0.0  ;;  %v2857_v19 = vadd.f32 %v2856_v17, %v2658_v30  ;;  %v2885_v4 = vadd.f32 %v2884_v25, %v2683_v51  ;;  %v2684_v58 = vmax.f32 %v7699_v53, 0.0  ;;  %v8390_v51 = vld [vmem:[#allocation8_spill] sm:$0xff] }
 0x266   : > { %5024 = vmatprep.subr.mxu0 %v3444_v63  ;;  %5073 = vmatprep.subr.mxu1 %v3444_v63  ;;  %v2938_v63 = vadd.f32 %v2937_v8, %v2732_v3  ;;  %v2912_v61 = vadd.f32 %v2911_v42, %v2708_v27  ;;  %v7760_v31 = vadd.f32 %v7381_v11, %v6069_v55  ;;  %v2734_v8 = vmax.f32 %v7721_v59, 0.0  ;;  %v3425_v11 = vld [vmem:[%s6683_s24 + $0x728] sm:$0xff] }
 0x267   : > { %4109 = vmatprep.mubr.f32.mxu0 %v3143_v2  ;;  %4214 = vmatprep.mubr.f32.mxu1 %v3145_v20  ;;  %v7694_v49 = vpop.f32.mrf.mxu0  ;;  %v7702_v56 = vpop.f32.mrf.mxu1  ;;  %v7741_v20 = vadd.f32 %v7339_v16, %v6035_v14  ;;  %v7768_v3 = vadd.f32 %v7421_v12, %v6112_v60  ;;  %v7772_v30 = vadd.f32 %v7405_v28, %v6093_v33  ;;  %v2782_v17 = vmax.f32 %v7733_v7, 0.0  ;;  %v3440_v12 = vld [vmem:[%s6683_s24 + $0x7a0] sm:$0xff]  ;;  %v3190_v7 = vld [vmem:[%s8357_s4 + $0x3d0] sm:$0xff] }
 0x268   : > { %5025 = vmatpush3.msra.mxu0 %v3428_v0  ;;  %5089 = vmatpush3.msra.mxu1 %v3428_v0  ;;  %v2781_v0 = vmax.f32 %v7706_v29, 0.0  ;;  %v2858_v25 = vadd.f32 %v2857_v19, %v2659_v41  ;;  %v7781_v53 = vadd.f32 %v8390_v51, %v6035_v14  ;;  %v2685_v42 = vmax.f32 %v7745_v6, 0.0  ;;  %v3424_v41 = vld [vmem:[%s6683_s24 + $0x720] sm:$0xff] }
 0x269   : > { %4110 = vmatmul.mubr.f32.gmra.mxu0 %v3142_v34  ;;  %4215 = vmatmul.mubr.f32.gmra.mxu1 %v3144_v44  ;;  %v7714_v50 = vpop.f32.mrf.mxu0  ;;  %v7729_v10 = vpop.f32.mrf.mxu1  ;;  %v2939_v44 = vadd.f32 %v2938_v63, %v2733_v35  ;;  %v2660_v28 = vmax.f32 %v7741_v20, 0.0  ;;  %v2886_v29 = vadd.f32 %v2885_v4, %v2684_v58  ;;  %v2913_v35 = vadd.f32 %v2912_v61, %v2709_v47  ;;  %v8393_v63 = vld [vmem:[#allocation11_spill] sm:$0xff]  ;;  %v8394_v58 = vld [vmem:[#allocation13_spill] sm:$0xff] }
 0x26a   : > { %5026 = vmatprep.subr.mxu0 %v3443_v13  ;;  %5074 = vmatprep.subr.mxu1 %v3443_v13  ;;  %v2964_v13 = vadd.f32 %v7176_v46, %v2756_v62  ;;  %v8391_v46 = vld [vmem:[#allocation9_spill] sm:$0xff]  ;;  %v2710_v59 = vmax.f32 %v7760_v31, 0.0  ;;  %v7807_v19 = vadd.f32 %v8393_v63, %v6093_v33  ;;  %v2758_v4 = vmax.f32 %v7768_v3, 0.0 }
 0x26b   : > { %5027 = vmatpush3.msra.mxu0 %v3427_v32  ;;  %5090 = vmatpush3.msra.mxu1 %v3427_v32  ;;  %v7737_v2 = vpop.f32.mrf.mxu0  ;;  %v7754_v16 = vpop.f32.mrf.mxu1  ;;  %v7790_v27 = vadd.f32 %v8391_v46, %v6052_v40  ;;  %v2940_v20 = vadd.f32 %v2939_v44, %v2734_v8  ;;  %v2735_v6 = vmax.f32 %v7772_v30, 0.0  ;;  %v3176_v61 = vld [vmem:[%s8357_s4 + $0x360] sm:$0xff]  ;;  %v2661_v8 = vmax.f32 %v7781_v53, 0.0  ;;  %v3439_v30 = vld [vmem:[%s6683_s24 + $0x798] sm:$0xff]  ;;  %v3193_v63 = vld [vmem:[%s8357_s4 + $0x3e8] sm:$0xff] }
 0x26c   : > { %5028 = vmatprep.subr.mxu0 %v3442_v48  ;;  %5075 = vmatprep.subr.mxu1 %v3442_v48  ;;  %v3177_v48 = vld [vmem:[%s8357_s4 + $0x368] sm:$0xff]  ;;  %v2965_v31 = vadd.f32 %v2964_v13, %v2757_v18  ;;  %v2859_v3 = vadd.f32 %v2858_v25, %v2660_v28  ;;  %v8396_v46 = vld [vmem:[#allocation15_spill] sm:$0xff]  ;;  %v7841_v18 = vadd.f32 %v7629_v15, %v6035_v14  ;;  %v2736_v53 = vmax.f32 %v7807_v19, 0.0  ;;  %v8397_v28 = vld [vmem:[#allocation12_spill] sm:$0xff] }
 0x26d   : > { %4114 = vmatprep.mubr.f32.mxu0 %v3159_v43  ;;  %4219 = vmatprep.mubr.f32.mxu1 %v3161_v21  ;;  %v7763_v34 = vpop.f32.mrf.mxu0  ;;  %v7775_v24 = vpop.f32.mrf.mxu1  ;;  %v8392_v43 = vld [vmem:[#allocation10_spill] sm:$0xff]  ;;  %v2686_v51 = vmax.f32 %v7790_v27, 0.0  ;;  %v2914_v13 = vadd.f32 %v2913_v35, %v2710_v59  ;;  %v2941_v15 = vadd.f32 %v2940_v20, %v2735_v6  ;;  %v8399_v20 = vld [vmem:[#allocation16_spill] sm:$0xff] }
 0x26e   : > { %5029 = vmatpush3.msra.mxu0 %v3426_v39  ;;  %5091 = vmatpush3.msra.mxu1 %v3426_v39  ;;  %v7803_v21 = vadd.f32 %v8392_v43, %v6069_v55  ;;  %v7836_v43 = vadd.f32 %v8396_v46, %v6130_v57  ;;  %v8398_v35 = vld [vmem:[#allocation14_spill] sm:$0xff] }
 0x26f   : > { %4115 = vmatmul.mubr.f32.gmra.mxu0 %v3158_v36  ;;  %4220 = vmatmul.mubr.f32.gmra.mxu1 %v3160_v26  ;;  %v7784_v32 = vpop.f32.mrf.mxu0  ;;  %v7798_v62 = vpop.f32.mrf.mxu1  ;;  %v7816_v36 = vadd.f32 %v8394_v58, %v6112_v60  ;;  %v3174_v26 = vld [vmem:[%s8357_s4 + $0x350] sm:$0xff]  ;;  %v7857_v59 = vadd.f32 %v8398_v35, %v6112_v60 }
 0x270   : > { %5030 = vmatprep.subr.mxu0 %v3441_v23  ;;  %5076 = vmatprep.subr.mxu1 %v3441_v23  ;;  %v8395_v23 = vld [vmem:[#allocation7_spill] sm:$0xff]  ;;  %v2711_v25 = vmax.f32 %v7803_v21, 0.0 }
 0x271   : > { %5031 = vmatpush3.msra.mxu0 %v3425_v11  ;;  %5092 = vmatpush3.msra.mxu1 %v3425_v11  ;;  %v7810_v39 = vpop.f32.mrf.mxu0  ;;  %v2991_v44 = vadd.f32 %v8395_v23, %v2781_v0  ;;  %v3191_v21 = vld [vmem:[%s8357_s4 + $0x3d8] sm:$0xff]  ;;  %v3422_v6 = vld [vmem:[%s6683_s24 + $0x710] sm:$0xff] }
 0x272   : > { %5032 = vmatprep.subr.mxu0 %v3440_v12  ;;  %5077 = vmatprep.subr.mxu1 %v3440_v12  ;;  %v7824_v47 = vpop.f32.mrf.mxu1  ;;  %v2887_v12 = vadd.f32 %v2886_v29, %v2685_v42  ;;  %v7849_v42 = vadd.f32 %v8397_v28, %v6112_v60  ;;  %v3438_v29 = vld [vmem:[%s6683_s24 + $0x790] sm:$0xff] }
 0x273   : > { %4119 = vmatprep.mubr.f32.mxu0 %v3175_v5  ;;  %4224 = vmatprep.mubr.f32.mxu1 %v3177_v48  ;;  %v7831_v11 = vpop.f32.mrf.mxu0  ;;  %v2966_v5 = vadd.f32 %v2965_v31, %v2758_v4  ;;  %v2759_v48 = vmax.f32 %v7816_v36, 0.0  ;;  %v7871_v4 = vadd.f32 %v8399_v20, %v6130_v57  ;;  %v2860_v36 = vadd.f32 %v2859_v3, %v2661_v8  ;;  %v3437_v3 = vld [vmem:[%s6683_s24 + $0x788] sm:$0xff] }
 0x274   : > { %5033 = vmatpush3.msra.mxu0 %v3424_v41  ;;  %5093 = vmatpush3.msra.mxu1 %v3424_v41  ;;  %v7843_v0 = vpop.f32.mrf.mxu1  ;;  %v2992_v41 = vadd.f32 %v2991_v44, %v2782_v17  ;;  %v3192_v17 = vld [vmem:[%s8357_s4 + $0x3e0] sm:$0xff]  ;;  %v2662_v31 = vmax.f32 %v7841_v18, 0.0  ;;  %v7888_v44 = vadd.f32 %v2914_v13, %v2711_v25  ;;  %v2760_v8 = vmax.f32 %v7849_v42, 0.0  ;;  %v3421_v18 = vld [vmem:[%s6683_s24 + $0x708] sm:$0xff] }
 0x275   : > { %4120 = vmatmul.mubr.f32.gmra.mxu0 %v3174_v26  ;;  %4225 = vmatmul.mubr.f32.gmra.mxu1 %v3176_v61  ;;  %v7852_v27 = vpop.f32.mrf.mxu0  ;;  %v7876_v26 = vadd.f32 %v2887_v12, %v2686_v51  ;;  %v2783_v61 = vmax.f32 %v7836_v43, 0.0  ;;  %v7898_v51 = vadd.f32 %v7665_v54, %v6052_v40  ;;  %v2967_v46 = vadd.f32 %v2966_v5, %v2759_v48  ;;  %v8400_v13 = vld [vmem:[#allocation5_spill] sm:$0xff] }
 0x276   : > { %5034 = vmatprep.subr.mxu0 %v3439_v30  ;;  %5078 = vmatprep.subr.mxu1 %v3439_v30  ;;  %v7865_v19 = vpop.f32.mrf.mxu1  ;;  %v7894_v30 = vadd.f32 %v7646_v45, %v6035_v14  ;;  %v7900_v43 = vadd.f32 %v2941_v15, %v2736_v53  ;;  %v8401_v45 = vld [vmem:[#allocation17_spill] sm:$0xff] }
 0x277   : > { %5035 = vmatpush3.msra.mxu0 %v3423_v37  ;;  %5094 = vmatpush3.msra.mxu1 %v3423_v37  ;;  %v7874_v58 = vpop.f32.mrf.mxu0  ;;  %v7907_v42 = vadd.f32 %v8401_v45, %v6130_v57  ;;  %v3436_v53 = vld [vmem:[%s6683_s24 + $0x780] sm:$0xff]  ;;  %v7916_v35 = vadd.f32 %v2992_v41, %v2783_v61  ;;  %v2687_v61 = vmax.f32 %v7898_v51, 0.0 }
 0x278   : > { %5036 = vmatprep.subr.mxu0 %v3438_v29  ;;  %5079 = vmatprep.subr.mxu1 %v3438_v29  ;;  %v7886_v23 = vpop.f32.mrf.mxu1  ;;  %v8402_v29 = vld [vmem:[#allocation18_spill] sm:$0xff]  ;;  %v2663_v41 = vmax.f32 %v7894_v30, 0.0 }
 0x279   : > { %4124 = vmatprep.mubr.f32.mxu0 %v3191_v21  ;;  %4229 = vmatprep.mubr.f32.mxu1 %v3193_v63  ;;  %v2495_v12 = vpop.f32.mrf.mxu0  ;;  %v7912_v5 = vadd.f32 %v8402_v29, %v6130_v57  ;;  %v3420_v21 = vld [vmem:[%s6683_s24 + $0x700] sm:$0xff]  ;;  %v2861_v63 = vadd.f32 %v2860_v36, %v2662_v31  ;;  %v7930_v36 = vadd.f32 %v7694_v49, %v6052_v40  ;;  %v3146_v30 = vld [vmem:[%s8357_s4 + $0x270] sm:$0xff] }
 0x27a   : > { %5037 = vmatpush3.msra.mxu0 %v3422_v6  ;;  %5095 = vmatpush3.msra.mxu1 %v3422_v6  ;;  %v2496_v25 = vadd.f32 %v2495_v12, %v8400_v13  ;;  %v2568_v28 = vpop.f32.mrf.mxu1  ;;  %v8403_v49 = vld [vmem:[#allocation6_spill] sm:$0xff] }
 0x27b   : > { %4125 = vmatmul.mubr.f32.gmra.mxu0 %v3190_v7  ;;  %4230 = vmatmul.mubr.f32.gmra.mxu1 %v3192_v17  ;;  %v2569_v15 = vadd.f32 %v2568_v28, %v8400_v13  ;;  %v2497_v48 = vpop.f32.mrf.mxu0  ;;  %v3083_v7 = vld [vmem:[%s8357_s4 + $0x78] sm:$0xff] }
 0x27c   : > { %5038 = vmatprep.subr.mxu0 %v3437_v3  ;;  %5080 = vmatprep.subr.mxu1 %v3437_v3  ;;  %v2812_v20 = vmax.f32 %v2496_v25, 0.0  ;;  %v2498_v6 = vadd.f32 %v2497_v48, %v8400_v13  ;;  %v2570_v12 = vpop.f32.mrf.mxu1  ;;  %v3147_v17 = vld [vmem:[%s8357_s4 + $0x278] sm:$0xff]  ;;  %v3082_v25 = vld [vmem:[%s8357_s4 + $0x70] sm:$0xff]  ;;  %v2476_v48 = vadd.f32 %v7714_v50, %v6069_v55 }
 0x27d   : > { %5039 = vmatpush3.msra.mxu0 %v3421_v18  ;;  %5096 = vmatpush3.msra.mxu1 %v3421_v18  ;;  %v2571_v31 = vadd.f32 %v2570_v12, %v8400_v13  ;;  %v2499_v3 = vpop.f32.mrf.mxu0  ;;  %v7933_v18 = vadd.f32 %v2967_v46, %v2760_v8  ;;  %v3099_v8 = vld [vmem:[%s8357_s4 + $0xf8] sm:$0xff]  ;;  %v2688_v13 = vmax.f32 %v7930_v36, 0.0 }
 0x27e   : > { %5040 = vmatprep.subr.mxu0 %v3436_v53  ;;  %5081 = vmatprep.subr.mxu1 %v3436_v53  ;;  %v3024_v51 = vadd.f32 %v7513_v22, %v2812_v20  ;;  %v2813_v28 = vmax.f32 %v2498_v6, 0.0  ;;  %v2500_v45 = vadd.f32 %v2499_v3, %v8403_v49  ;;  %v2572_v29 = vpop.f32.mrf.mxu1  ;;  %v3163_v46 = vld [vmem:[%s8357_s4 + $0x2f8] sm:$0xff]  ;;  %v2539_v53 = vadd.f32 %v7634_v1, %v6035_v14 }
 0x27f   : > { %5041 = vmatpush3.msra.mxu0 %v3420_v21  ;;  %5097 = vmatpush3.msra.mxu1 %v3420_v21  ;;  %v7953_v22 = vadd.f32 %v7658_v38, %v6035_v14  ;;  %v2814_v20 = vmax.f32 %v2569_v15, 0.0  ;;  %v2501_v21 = vpop.f32.mrf.mxu0  ;;  %v2573_v3 = vadd.f32 %v2572_v29, %v8403_v49  ;;  %v2862_v1 = vadd.f32 %v2861_v63, %v2663_v41  ;;  %v3098_v15 = vld [vmem:[%s8357_s4 + $0xf0] sm:$0xff]  ;;  %v3179_v36 = vld [vmem:[%s8357_s4 + $0x378] sm:$0xff] }
 0x280   : > { %4299 = vmatprep.mubr.f32.mxu0 %v3083_v7  ;;  %4319 = vmatprep.mubr.f32.mxu1 %v3147_v17  ;;  %v3025_v6 = vadd.f32 %v3024_v51, %v2813_v28  ;;  %v2837_v12 = vmax.f32 %v2500_v45, 0.0  ;;  %v2502_v54 = vadd.f32 %v2501_v21, %v8403_v49  ;;  %v2574_v37 = vpop.f32.mrf.mxu1  ;;  %v2889_v38 = vadd.f32 %v7876_v26, %v2687_v61  ;;  %v3162_v7 = vld [vmem:[%s8357_s4 + $0x2f0] sm:$0xff]  ;;  %v3115_v61 = vld [vmem:[%s8357_s4 + $0x178] sm:$0xff] }
 0x281   : > { %4300 = vmatmul.mubr.f32.vlgmr.msra.gmra.mxu0 %v3082_v25  ;;  %4320 = vmatmul.mubr.f32.vlgmr.msra.gmra.mxu1 %v3146_v30  ;;  %v2815_v50 = vmax.f32 %v2571_v31, 0.0  ;;  %v2575_v63 = vadd.f32 %v2574_v37, %v8403_v49  ;;  %v2664_v31 = vmax.f32 %v2539_v53, 0.0  ;;  %v2543_v51 = vadd.f32 %v7685_v9, %v6052_v40 }
 0x282   : > { %4304 = vmatprep.mubr.f32.mxu0 %v3099_v8  ;;  %4324 = vmatprep.mubr.f32.mxu1 %v3163_v46  ;;  %v3026_v17 = vadd.f32 %v3025_v6, %v2814_v20  ;;  %v3051_v25 = vadd.f32 %v7531_v52, %v2837_v12  ;;  %v2838_v30 = vmax.f32 %v2502_v54, 0.0  ;;  %v4594_v26 = vpop.f32.mrf.mxu0  ;;  %v4650_v41 = vpop.f32.mrf.mxu1  ;;  %v2712_v28 = vmax.f32 %v2476_v48, 0.0 }
 0x283   : > { %v2478_v52 = vadd.f32 %v7737_v2, %v6069_v55  ;;  %v2480_v37 = vadd.f32 %v7763_v34, %v6093_v33  ;;  %v2839_v45 = vmax.f32 %v2573_v3, 0.0  ;;  %v2784_v20 = vmax.f32 %v7907_v42, 0.0  ;;  %v3114_v2 = vld [vmem:[%s8357_s4 + $0x170] sm:$0xff] }
 0x284   : > { %v7981_v54 = vadd.f32 %v3026_v17, %v2815_v50  ;;  %v3052_v29 = vadd.f32 %v3051_v25, %v2838_v30  ;;  %v4595_v8 = vpop.f32.mrf.mxu0  ;;  %v4651_v46 = vpop.f32.mrf.mxu1  ;;  %v2863_v53 = vadd.f32 %v2862_v1, %v2664_v31  ;;  %v3178_v34 = vld [vmem:[%s8357_s4 + $0x370] sm:$0xff]  ;;  %v2665_v48 = vmax.f32 %v7953_v22, 0.0  ;;  %v3131_v1 = vld [vmem:[%s8357_s4 + $0x1f8] sm:$0xff] }
 0x285   : > { %4305 = vmatmul.mubr.f32.gmra.mxu0 %v3098_v15  ;;  %4325 = vmatmul.mubr.f32.gmra.mxu1 %v3162_v7  ;;  %v4596_v21 = vadd.f32 %v4595_v8, %v4594_v26  ;;  %v7984_v9 = vadd.f32 %v4651_v46, %v4650_v41  ;;  %v2890_v6 = vadd.f32 %v2889_v38, %v2688_v13  ;;  %v2840_v42 = vmax.f32 %v2575_v63, 0.0  ;;  %v3195_v50 = vld [vmem:[%s8357_s4 + $0x3f8] sm:$0xff]  ;;  %v3194_v31 = vld [vmem:[%s8357_s4 + $0x3f0] sm:$0xff] }
 0x286   : > { %4309 = vmatprep.mubr.f32.mxu0 %v3115_v61  ;;  %4329 = vmatprep.mubr.f32.mxu1 %v3179_v36  ;;  %v3053_v12 = vadd.f32 %v3052_v29, %v2839_v45  ;;  %v4597_v3 = vpop.f32.mrf.mxu0  ;;  %v2689_v15 = vmax.f32 %v2543_v51, 0.0  ;;  %v2545_v7 = vadd.f32 %v7702_v56, %v6052_v40  ;;  %v2916_v17 = vadd.f32 %v7888_v44, %v2712_v28 }
 0x287   : > { %v2612_v22 = vadd.f32 %v4596_v21, %v6035_v14  ;;  %v4653_v13 = vpop.f32.mrf.mxu1  ;;  %v2713_v38 = vmax.f32 %v2478_v52, 0.0  ;;  %v2737_v25 = vmax.f32 %v2480_v37, 0.0  ;;  %v2482_v30 = vadd.f32 %v7784_v32, %v6093_v33  ;;  %v3130_v32 = vld [vmem:[%s8357_s4 + $0x1f0] sm:$0xff] }
 0x288   : > { %v8005_v63 = vadd.f32 %v3053_v12, %v2840_v42  ;;  %v4598_v26 = vpop.f32.mrf.mxu0  ;;  %v2864_v41 = vadd.f32 %v2863_v53, %v2665_v48  ;;  %v2549_v61 = vadd.f32 %v7729_v10, %v6069_v55  ;;  %v2786_v14 = vmax.f32 %v7912_v5, 0.0 }
 0x289   : > { %4310 = vmatmul.mubr.f32.gmra.mxu0 %v3114_v2  ;;  %4330 = vmatmul.mubr.f32.gmra.mxu1 %v3178_v34  ;;  %v2666_v56 = vmax.f32 %v2612_v22, 0.0  ;;  %v4599_v36 = vadd.f32 %v4598_v26, %v4597_v3  ;;  %v4654_v44 = vpop.f32.mrf.mxu1  ;;  %v2891_v51 = vadd.f32 %v2890_v6, %v2689_v15  ;;  %v2486_v28 = vadd.f32 %v7810_v39, %v6112_v60 }
 0x28a   : > { %4314 = vmatprep.mubr.f32.mxu0 %v3131_v1  ;;  %4334 = vmatprep.mubr.f32.mxu1 %v3195_v50  ;;  %v8018_v10 = vadd.f32 %v4654_v44, %v4653_v13  ;;  %v2994_v52 = vadd.f32 %v7916_v35, %v2784_v20  ;;  %v2690_v37 = vmax.f32 %v2545_v7, 0.0  ;;  %v2917_v29 = vadd.f32 %v2916_v17, %v2713_v38 }
 0x28b   : > { %v2615_v5 = vadd.f32 %v4599_v36, %v6052_v40  ;;  %v2866_v45 = vsel %vm2865_vm0, %v2666_v56, 0.0  ;;  %v2943_v8 = vadd.f32 %v7900_v43, %v2737_v25  ;;  %v2738_v46 = vmax.f32 %v2482_v30, 0.0 }
 0x28c   : > { %v4600_v53 = vpop.f32.mrf.mxu0  ;;  %v2867_v21 = vadd.f32 %v2866_v45, %v2864_v41  ;;  %v8404_v2 = vmax.f32 %v7857_v59, 0.0  ;;  %v2714_v39 = vmax.f32 %v2549_v61, 0.0  ;;  %v2551_v35 = vadd.f32 %v7754_v16, %v6069_v55 }
 0x28d   : > { %4315 = vmatmul.mubr.f32.gmra.mxu0 %v3130_v32  ;;  %4335 = vmatmul.mubr.f32.gmra.mxu1 %v3194_v31  ;;  %v2691_v20 = vmax.f32 %v2615_v5, 0.0  ;;  %v4656_v40 = vpop.f32.mrf.mxu1  ;;  %v2892_v48 = vadd.f32 %v2891_v51, %v2690_v37  ;;  %v2553_v6 = vadd.f32 %v7775_v24, %v6093_v33  ;;  %v2762_v43 = vmax.f32 %v2486_v28, 0.0 }
 0x28e   : > { %v2969_v34 = vadd.f32 %v7933_v18, %v8404_v2  ;;  %v2488_v42 = vadd.f32 %v7831_v11, %v6112_v60  ;;  %v4601_v12 = vpop.f32.mrf.mxu0  ;;  %2868 = vadd.xlane.f32.xlu0 %v2867_v21  ;;  %v8405_v59 = vmax.f32 %v7871_v4, 0.0  ;;  %v2490_v3 = vadd.f32 %v7852_v27, %v6130_v57 }
 0x28f   : > { %v4602_v1 = vadd.f32 %v4601_v12, %v4600_v53  ;;  %v4657_v16 = vpop.f32.mrf.mxu1  ;;  %v2893_v50 = vsel %vm2865_vm0, %v2691_v20, 0.0  ;;  %v2918_v15 = vadd.f32 %v2917_v29, %v2714_v39  ;;  %v2944_v7 = vadd.f32 %v2943_v8, %v2738_v46 }
 0x290   : > { %v2995_v18 = vadd.f32 %v2994_v52, %v8405_v59  ;;  %v8038_v17 = vadd.f32 %v4657_v16, %v4656_v40  ;;  %v4603_v24 = vpop.f32.mrf.mxu0  ;;  %v2894_v22 = vadd.f32 %v2893_v50, %v2892_v48  ;;  %v2715_v13 = vmax.f32 %v2551_v35, 0.0 }
 0x291   : > { %v2620_v11 = vadd.f32 %v4602_v1, %v6069_v55  ;;  %v2739_v38 = vmax.f32 %v2553_v6, 0.0  ;;  %v2555_v4 = vadd.f32 %v7798_v62, %v6093_v33  ;;  %v2970_v25 = vadd.f32 %v2969_v34, %v2762_v43 }
 0x292   : > { %v2763_v30 = vmax.f32 %v2488_v42, 0.0  ;;  %v4659_v27 = vpop.f32.mrf.mxu1  ;;  %v4604_v26 = vpop.f32.mrf.mxu0  ;;  %2895 = vadd.xlane.f32.xlu1 %v2894_v22  ;;  %v2787_v41 = vmax.f32 %v2490_v3, 0.0  ;;  %v2492_v61 = vadd.f32 %v7874_v58, %v6130_v57  ;;  %v2996_v44 = vadd.f32 %v2995_v18, %v2786_v14 }
 0x293   : > { %v2716_v56 = vmax.f32 %v2620_v11, 0.0  ;;  %v4605_v36 = vadd.f32 %v4604_v26, %v4603_v24  ;;  %v2919_v32 = vadd.f32 %v2918_v15, %v2715_v13  ;;  %v2945_v31 = vadd.f32 %v2944_v7, %v2739_v38 }
 0x294   : > { %v4660_v51 = vpop.f32.mrf.mxu1  ;;  %v2559_v55 = vadd.f32 %v7824_v47, %v6112_v60  ;;  %v2740_v37 = vmax.f32 %v2555_v4, 0.0  ;;  %v2971_v45 = vadd.f32 %v2970_v25, %v2763_v30  ;;  %v2997_v29 = vadd.f32 %v2996_v44, %v2787_v41 }
 0x295   : > { %v2623_v62 = vadd.f32 %v4605_v36, %v6093_v33  ;;  %v8048_v28 = vadd.f32 %v4660_v51, %v4659_v27  ;;  %v2920_v52 = vsel %vm2865_vm0, %v2716_v56, 0.0  ;;  %v2788_v58 = vmax.f32 %v2492_v61, 0.0  ;;  %v8406_v56 = vld [vmem:[#allocation5_spill] sm:$0xff] }
 0x296   : > { %v2921_v5 = vadd.f32 %v2920_v52, %v2919_v32  ;;  %v2946_v14 = vadd.f32 %v2945_v31, %v2740_v37  ;;  %v2764_v21 = vmax.f32 %v2559_v55, 0.0  ;;  %v2561_v47 = vadd.f32 %v7843_v0, %v6112_v60 }
 0x297   : > { %v2741_v8 = vmax.f32 %v2623_v62, 0.0  ;;  %v4606_v46 = vpop.f32.mrf.mxu0  ;;  %v2563_v33 = vadd.f32 %v7865_v19, %v6130_v57  ;;  %v2998_v48 = vadd.f32 %v2997_v29, %v2788_v58  ;;  %v2565_v0 = vadd.f32 %v7886_v23, %v6130_v57 }
 0x298   : > { %v4662_v53 = vpop.f32.mrf.mxu1  ;;  %2922 = vadd.xlane.f32.xlu0 %v2921_v5  ;;  %v2972_v40 = vadd.f32 %v2971_v45, %v2764_v21  ;;  %v2765_v12 = vmax.f32 %v2561_v47, 0.0  ;;  %v3463_v45 = vpop.permute.xlu0 %3462 }
 0x299   : > { %v4607_v2 = vpop.f32.mrf.mxu0  ;;  %v2947_v34 = vsel %vm2865_vm0, %v2741_v8, 0.0  ;;  %v2789_v59 = vmax.f32 %v2563_v33, 0.0 }
 0x29a   : > { %v4608_v39 = vadd.f32 %v4607_v2, %v4606_v46  ;;  %v4663_v35 = vpop.f32.mrf.mxu1  ;;  %v2948_v20 = vadd.f32 %v2947_v34, %v2946_v14  ;;  %v2973_v16 = vadd.f32 %v2972_v40, %v2765_v12 }
 0x29b   : > { %v8056_v6 = vadd.f32 %v4663_v35, %v4662_v53  ;;  %v4609_v43 = vpop.f32.mrf.mxu0  ;;  %v2999_v50 = vadd.f32 %v2998_v48, %v2789_v59  ;;  %v3567_v53 = vadd.f32 %v7984_v9, %v3463_v45 }
 0x29c   : > { %v2628_v42 = vadd.f32 %v4608_v39, %v6112_v60  ;;  %2949 = vadd.xlane.f32.xlu0 %v2948_v20  ;;  %v2790_v60 = vmax.f32 %v2565_v0, 0.0 }
 0x29d   : > { %v4665_v19 = vpop.f32.mrf.mxu1  ;;  %v4610_v18 = vpop.f32.mrf.mxu0 }
 0x29e   : > { %v2766_v3 = vmax.f32 %v2628_v42, 0.0  ;;  %v4611_v1 = vadd.f32 %v4610_v18, %v4609_v43  ;;  %v3000_v4 = vadd.f32 %v2999_v50, %v2790_v60 }
 0x29f   : > { %v4666_v15 = vpop.f32.mrf.mxu1 }
 0x2a0   : > { %v2631_v7 = vadd.f32 %v4611_v1, %v6130_v57  ;;  %v8062_v24 = vadd.f32 %v4666_v15, %v4665_v19  ;;  %v2974_v22 = vsel %vm2865_vm0, %v2766_v3, 0.0 }
 0x2a1   : > { %v2975_v13 = vadd.f32 %v2974_v22, %v2973_v16 }
 0x2a2   : > { %v2791_v11 = vmax.f32 %v2631_v7, 0.0  ;;  %v4612_v38 = vpop.f32.mrf.mxu0 }
 0x2a3   : > { %v4668_v25 = vpop.f32.mrf.mxu1  ;;  %2976 = vadd.xlane.f32.xlu0 %v2975_v13 }
 0x2a4   : > { %v4613_v23 = vpop.f32.mrf.mxu0  ;;  %v3001_v30 = vsel %vm2865_vm0, %v2791_v11, 0.0 }
 0x2a5   : > { %v4614_v27 = vadd.f32 %v4613_v23, %v4612_v38  ;;  %v4669_v26 = vpop.f32.mrf.mxu1  ;;  %v3002_v41 = vadd.f32 %v3001_v30, %v3000_v4 }
 0x2a6   : > { %v8066_v61 = vadd.f32 %v4669_v26, %v4668_v25  ;;  %v4615_v57 = vpop.f32.mrf.mxu0 }
 0x2a7   : > { %v2636_v36 = vadd.f32 %v4614_v27, %v8406_v56  ;;  %3003 = vadd.xlane.f32.xlu0 %v3002_v41 }
 0x2a8   : > { %v4671_v44 = vpop.f32.mrf.mxu1  ;;  %v4616_v32 = vpop.f32.mrf.mxu0 }
 0x2a9   : > { %v2816_v31 = vmax.f32 %v2636_v36, 0.0  ;;  %v4617_v51 = vadd.f32 %v4616_v32, %v4615_v57 }
 0x2aa   : > { %v4672_v55 = vpop.f32.mrf.mxu1 }
 0x2ab   : > { %v2639_v62 = vadd.f32 %v4617_v51, %v8403_v49  ;;  %v8070_v52 = vadd.f32 %v4672_v55, %v4671_v44  ;;  %v3028_v37 = vsel %vm2865_vm0, %v2816_v31, 0.0 }
 0x2ac   : > { %v8074_v5 = vadd.f32 %v3028_v37, %v7981_v54  ;;  %v3468_v34 = vpop.permute.xlu1 %3467 }
 0x2ad   : > { %v2841_v29 = vmax.f32 %v2639_v62, 0.0  ;;  %v4706_v58 = vpop.f32.mrf.mxu0  ;;  %v3572_v40 = vadd.f32 %v8018_v10, %v3468_v34 }
 0x2ae   : > { %8407 = vst [vmem:[#allocation8_spill] sm:$0xff] %v8074_v5  ;;  %v4762_v8 = vpop.f32.mrf.mxu1 }
 0x2af   : > { %v4707_v46 = vpop.f32.mrf.mxu0  ;;  %v3055_v14 = vsel %vm2865_vm0, %v2841_v29, 0.0 }
 0x2b0   : > { %v4708_v21 = vadd.f32 %v4707_v46, %v4706_v58  ;;  %v4763_v47 = vpop.f32.mrf.mxu1  ;;  %v8079_v49 = vadd.f32 %v3055_v14, %v8005_v63 }
 0x2b1   : > { %v4764_v33 = vadd.f32 %v4763_v47, %v4762_v8 }
 0x2b2   : > { %8408 = vst [vmem:[#allocation9_spill] sm:$0xff] %v8079_v49  ;;  %v3672_v2 = vadd.f32 %v4708_v21, %v3567_v53 }
 0x2b3   : > { %v4709_v39 = vpop.f32.mrf.mxu0  ;;  %v3473_v9 = vpop.permute.xlu0 %3472 }
 0x2b4   : > { %v8081_v54 = vadd.f32 %v4764_v33, %v3672_v2  ;;  %v4765_v35 = vpop.f32.mrf.mxu1  ;;  %v3577_v18 = vadd.f32 %v8038_v17, %v3473_v9 }
 0x2b5   : > { %v4710_v20 = vpop.f32.mrf.mxu0 }
 0x2b6   : > { %v4711_v48 = vadd.f32 %v4710_v20, %v4709_v39  ;;  %v4766_v43 = vpop.f32.mrf.mxu1 }
 0x2b7   : > { %v4767_v42 = vadd.f32 %v4766_v43, %v4765_v35 }
 0x2b8   : > { %v3677_v12 = vadd.f32 %v4711_v48, %v3572_v40 }
 0x2b9   : > { %v4712_v59 = vpop.f32.mrf.mxu0  ;;  %v3478_v15 = vpop.permute.xlu1 %3477 }
 0x2ba   : > { %v8084_v0 = vadd.f32 %v4767_v42, %v3677_v12  ;;  %v4768_v63 = vpop.f32.mrf.mxu1  ;;  %v3582_v13 = vadd.f32 %v8048_v28, %v3478_v15 }
 0x2bb   : > { %v4713_v19 = vpop.f32.mrf.mxu0 }
 0x2bc   : > { %v4714_v3 = vadd.f32 %v4713_v19, %v4712_v59  ;;  %v4769_v1 = vpop.f32.mrf.mxu1 }
 0x2bd   : > { %v4770_v16 = vadd.f32 %v4769_v1, %v4768_v63 }
 0x2be   : > { %v3682_v50 = vadd.f32 %v4714_v3, %v3577_v18 }
 0x2bf   : > { %v4715_v7 = vpop.f32.mrf.mxu0 }
 0x2c0   : > { %v8087_v22 = vadd.f32 %v4770_v16, %v3682_v50  ;;  %v4771_v10 = vpop.f32.mrf.mxu1  ;;  %v3483_v23 = vpop.permute.xlu0 %3482 }
 0x2c1   : > { %v4716_v60 = vpop.f32.mrf.mxu0  ;;  %v3587_v41 = vadd.f32 %v8056_v6, %v3483_v23 }
 0x2c2   : > { %v4717_v11 = vadd.f32 %v4716_v60, %v4715_v7  ;;  %v4772_v38 = vpop.f32.mrf.mxu1 }
 0x2c3   : > { %v4773_v4 = vadd.f32 %v4772_v38, %v4771_v10 }
 0x2c4   : > { %v3687_v25 = vadd.f32 %v4717_v11, %v3582_v13 }
 0x2c5   : > { %v4718_v30 = vpop.f32.mrf.mxu0 }
 0x2c6   : > { %v8090_v27 = vadd.f32 %v4773_v4, %v3687_v25  ;;  %v4774_v17 = vpop.f32.mrf.mxu1  ;;  %v3488_v32 = vpop.permute.xlu1 %3487 }
 0x2c7   : > { %v4719_v26 = vpop.f32.mrf.mxu0  ;;  %v3592_v62 = vadd.f32 %v8062_v24, %v3488_v32 }
 0x2c8   : > { %v4720_v57 = vadd.f32 %v4719_v26, %v4718_v30  ;;  %v4775_v56 = vpop.f32.mrf.mxu1 }
 0x2c9   : > { %v4776_v36 = vadd.f32 %v4775_v56, %v4774_v17 }
 0x2ca   : > { %v3692_v44 = vadd.f32 %v4720_v57, %v3587_v41 }
 0x2cb   : > { %v4721_v31 = vpop.f32.mrf.mxu0 }
 0x2cc   : > { %v8093_v51 = vadd.f32 %v4776_v36, %v3692_v44  ;;  %v4777_v28 = vpop.f32.mrf.mxu1 }
 0x2cd   : > { %v4722_v55 = vpop.f32.mrf.mxu0  ;;  %v3493_v8 = vpop.permute.xlu0 %3492 }
 0x2ce   : > { %v4723_v37 = vadd.f32 %v4722_v55, %v4721_v31  ;;  %v4778_v45 = vpop.f32.mrf.mxu1  ;;  %v3597_v21 = vadd.f32 %v8066_v61, %v3493_v8 }
 0x2cf   : > { %v4779_v29 = vadd.f32 %v4778_v45, %v4777_v28 }
 0x2d0   : > { %v3697_v58 = vadd.f32 %v4723_v37, %v3592_v62 }
 0x2d1   : > { %v4724_v46 = vpop.f32.mrf.mxu0 }
 0x2d2   : > { %v8096_v14 = vadd.f32 %v4779_v29, %v3697_v58  ;;  %v4780_v6 = vpop.f32.mrf.mxu1 }
 0x2d3   : > { %v4725_v53 = vpop.f32.mrf.mxu0  ;;  %v3498_v39 = vpop.permute.xlu1 %3497 }
 0x2d4   : > { %v4726_v47 = vadd.f32 %v4725_v53, %v4724_v46  ;;  %v4781_v33 = vpop.f32.mrf.mxu1  ;;  %v3602_v48 = vadd.f32 %v8070_v52, %v3498_v39 }
 0x2d5   : > { %v4782_v2 = vadd.f32 %v4781_v33, %v4780_v6 }
 0x2d6   : > { %v3702_v34 = vadd.f32 %v4726_v47, %v3597_v21 }
 0x2d7   : > { %v4727_v35 = vpop.f32.mrf.mxu0 }
 0x2d8   : > { %v8099_v20 = vadd.f32 %v4782_v2, %v3702_v34  ;;  %v4783_v24 = vpop.f32.mrf.mxu1 }
 0x2d9   : > { %v4728_v40 = vpop.f32.mrf.mxu0 }
 0x2da   : > { %v4729_v43 = vadd.f32 %v4728_v40, %v4727_v35  ;;  %v4784_v42 = vpop.f32.mrf.mxu1 }
 0x2db   : > { %v4785_v12 = vadd.f32 %v4784_v42, %v4783_v24 }
 0x2dc   : > { %v3707_v9 = vadd.f32 %v4729_v43, %v3602_v48 }
 0x2dd   : > { %v4818_v59 = vpop.f32.mrf.mxu0 }
 0x2de   : > { %v8102_v63 = vadd.f32 %v4785_v12, %v3707_v9  ;;  %v8104_v61 = vpop.f32.mrf.mxu1 }
 0x2df   : > { %v4819_v19 = vpop.f32.mrf.mxu0 }
 0x2e0   : > { %8409 = vst [vmem:[#allocation10_spill] sm:$0xff] %v8102_v63  ;;  %v8106_v18 = vpop.f32.mrf.mxu1 }
 0x2e3   : > { %v4821_v3 = vpop.f32.mrf.mxu0 }
 0x2e4   : > { %v8108_v1 = vpop.f32.mrf.mxu1 }
 0x2e5   : > { %v4822_v16 = vpop.f32.mrf.mxu0 }
 0x2e6   : > { %v8110_v50 = vpop.f32.mrf.mxu1 }
 0x2e9   : > { %v4824_v15 = vpop.f32.mrf.mxu0 }
 0x2ea   : > { %v8112_v52 = vpop.f32.mrf.mxu1 }
 0x2eb   : > { %v4825_v7 = vpop.f32.mrf.mxu0 }
 0x2ec   : > { %v8114_v10 = vpop.f32.mrf.mxu1 }
 0x2ef   : > { %v8116_v60 = vpop.f32.mrf.mxu0 }
 0x2f0   : > { %v8118_v13 = vpop.f32.mrf.mxu1 }
 0x2f1   : > { %v8120_v11 = vpop.f32.mrf.mxu0 }
 0x2f2   : > { %v8122_v38 = vpop.f32.mrf.mxu1 }
 0x2f6   : > { %v4830_v4 = vpop.f32.mrf.mxu0  ;;  %v4886_v25 = vpop.f32.mrf.mxu1 }
 0x2f8   : > { %v4831_v23 = vpop.f32.mrf.mxu0  ;;  %v4887_v30 = vpop.f32.mrf.mxu1 }
 0x2fc   : > { %v8124_v17 = vpop.f32.mrf.mxu0 }
 0x2fd   : > { %v8126_v26 = vpop.f32.mrf.mxu1 }
 0x2fe   : > { %v8128_v41 = vpop.f32.mrf.mxu0 }
 0x2ff   : > { %v8130_v57 = vpop.f32.mrf.mxu1 }
 0x303   : > { %v8132_v56 = vpop.f32.mrf.mxu0  ;;  %v8134_v36 = vpop.f32.mrf.mxu1 }
 0x305   : > { %v4837_v44 = vpop.f32.mrf.mxu0  ;;  %v8136_v32 = vpop.f32.mrf.mxu1 }
 0x309   : > { %v8138_v31 = vpop.f32.mrf.mxu0 }
 0x30a   : > { %v8140_v28 = vpop.f32.mrf.mxu1 }
 0x30b   : > { %8410 = vst [vmem:[#allocation11_spill] sm:$0xff] %v8140_v28  ;;  %v4840_v55 = vpop.f32.mrf.mxu0  ;;  %v4826_v28 = vadd.f32 %v4825_v7, %v4824_v15  ;;  %v4882_v15 = vadd.f32 %v8114_v10, %v8112_v52 }
 0x30c   : > { %v8142_v62 = vpop.f32.mrf.mxu1 }
 0x30d   : > { %8411 = vst [vmem:[#allocation13_spill] sm:$0xff] %v8142_v62  ;;  %v4823_v62 = vadd.f32 %v4822_v16, %v4821_v3 }
 0x310   : > { %v4930_v37 = vpop.f32.mrf.mxu0  ;;  %v4986_v45 = vpop.f32.mrf.mxu1 }
 0x312   : > { %v4931_v29 = vpop.f32.mrf.mxu0  ;;  %v4987_v58 = vpop.f32.mrf.mxu1 }
 0x313   : > { %v4988_v52 = vadd.f32 %v4987_v58, %v4986_v45  ;;  %v8425_v58 = vld [vmem:[#allocation11_spill] sm:$0xff] }
 0x316   : > { %v4933_v8 = vpop.f32.mrf.mxu0 }
 0x317   : > { %v8144_v46 = vpop.f32.mrf.mxu1 }
 0x318   : > { %v4934_v6 = vpop.f32.mrf.mxu0 }
 0x319   : > { %v8146_v53 = vpop.f32.mrf.mxu1 }
 0x31d   : > { %v4936_v21 = vpop.f32.mrf.mxu0  ;;  %v8148_v47 = vpop.f32.mrf.mxu1 }
 0x31e   : > { %8412 = vst [vmem:[#allocation7_spill] sm:$0xff] %v8148_v47 }
 0x31f   : > { %v4937_v33 = vpop.f32.mrf.mxu0  ;;  %v8150_v2 = vpop.f32.mrf.mxu1 }
 0x320   : > { %8413 = vst [vmem:[#allocation15_spill] sm:$0xff] %v8150_v2 }
 0x323   : > { %v8152_v34 = vpop.f32.mrf.mxu0  ;;  %v8154_v39 = vpop.f32.mrf.mxu1 }
 0x324   : > { %8414 = vst [vmem:[#allocation12_spill] sm:$0xff] %v8152_v34  ;;  %8415 = vst [vmem:[#allocation14_spill] sm:$0xff] %v8154_v39  ;;  %v4820_v39 = vadd.f32 %v4819_v19, %v4818_v59  ;;  %v3887_v19 = vadd.f32 %v4823_v62, %v8084_v0 }
 0x325   : > { %v8156_v35 = vpop.f32.mrf.mxu0  ;;  %v8158_v24 = vpop.f32.mrf.mxu1 }
 0x326   : > { %8416 = vst [vmem:[#allocation16_spill] sm:$0xff] %v8156_v35  ;;  %8417 = vst [vmem:[#allocation17_spill] sm:$0xff] %v8158_v24  ;;  %v4832_v35 = vadd.f32 %v4831_v23, %v4830_v4  ;;  %v3892_v4 = vadd.f32 %v4826_v28, %v8087_v22  ;;  %v4835_v22 = vadd.f32 %v8128_v41, %v8124_v17 }
 0x329   : > { %v4942_v40 = vpop.f32.mrf.mxu0  ;;  %v4998_v48 = vpop.f32.mrf.mxu1 }
 0x32b   : > { %v4943_v43 = vpop.f32.mrf.mxu0  ;;  %v4999_v42 = vpop.f32.mrf.mxu1 }
 0x32c   : > { %v4944_v59 = vadd.f32 %v4943_v43, %v4942_v40  ;;  %v5000_v10 = vadd.f32 %v4999_v42, %v4998_v48 }
 0x32d   : > { %v8428_v40 = vld [vmem:[#allocation16_spill] sm:$0xff] }
 0x32f   : > { %v8160_v12 = vpop.f32.mrf.mxu0  ;;  %v8162_v9 = vpop.f32.mrf.mxu1 }
 0x330   : > { %8418 = vst [vmem:[#allocation18_spill] sm:$0xff] %v8160_v12  ;;  %8419 = vst [vmem:[#allocation6_spill] sm:$0xff] %v8162_v9  ;;  %v3882_v12 = vadd.f32 %v4820_v39, %v8081_v54  ;;  %v3902_v9 = vadd.f32 %v4832_v35, %v8093_v51  ;;  %v4879_v51 = vadd.f32 %v8110_v50, %v8108_v1 }
 0x331   : > { %v8164_v49 = vpop.f32.mrf.mxu0  ;;  %v8166_v5 = vpop.f32.mrf.mxu1  ;;  %v4885_v1 = vadd.f32 %v8122_v38, %v8118_v13  ;;  %v4841_v50 = vadd.f32 %v4840_v55, %v8138_v31  ;;  %v3907_v13 = vadd.f32 %v4835_v22, %v8096_v14  ;;  %v4894_v31 = vadd.f32 %v8136_v32, %v8134_v36  ;;  %v8427_v14 = vld [vmem:[#allocation12_spill] sm:$0xff] }
 0x332   : > { %8420 = vst [vmem:[#allocation5_spill] sm:$0xff] %v8164_v49  ;;  %8421 = vst [vmem:[#allocation19_spill] sm:$0xff] %v8166_v5  ;;  %v4876_v5 = vadd.f32 %v8106_v18, %v8104_v61  ;;  %v4829_v61 = vadd.f32 %v8120_v11, %v8116_v60  ;;  %v4935_v18 = vadd.f32 %v4934_v6, %v4933_v8 }
 0x333   : > { %v3992_v0 = vadd.f32 %v4879_v51, %v3887_v19  ;;  %v4891_v11 = vadd.f32 %v8130_v57, %v8126_v26  ;;  %v8424_v57 = vld [vmem:[#allocation10_spill] sm:$0xff]  ;;  %v8432_v51 = vld [vmem:[#allocation15_spill] sm:$0xff] }
 0x334   : > { %v3987_v16 = vadd.f32 %v4876_v5, %v3882_v12  ;;  %v4838_v5 = vadd.f32 %v4837_v44, %v8132_v56  ;;  %v3897_v60 = vadd.f32 %v4829_v61, %v8090_v27  ;;  %v4991_v27 = vadd.f32 %v8146_v53, %v8144_v46  ;;  %v8217_v46 = vld [vmem:[%s8359_s6] ss:$0 sm:$0xff] }
 0x335   : > { %v8168_v2 = vpop.f32.mrf.mxu0  ;;  %v8170_v47 = vpop.f32.mrf.mxu1  ;;  %v3917_v45 = vadd.f32 %v4841_v50, %v8424_v57  ;;  %v8434_v50 = vld [vmem:[#allocation14_spill] sm:$0xff] }
 0x336   : > { %8422 = vst [vmem:[#allocation20_spill] sm:$0xff] %v8168_v2  ;;  %8423 = vst [vmem:[#allocation21_spill] sm:$0xff] %v8170_v47  ;;  %v4888_v2 = vadd.f32 %v4887_v30, %v4886_v25  ;;  %v4932_v47 = vadd.f32 %v4931_v29, %v4930_v37  ;;  %v3997_v30 = vadd.f32 %v4882_v15, %v3892_v4 }
 0x337   : > { %v8172_v34 = vpop.f32.mrf.mxu0  ;;  %v8174_v24 = vpop.f32.mrf.mxu1  ;;  %v4097_v37 = vadd.f32 %v4935_v18, %v3992_v0  ;;  %v4938_v29 = vadd.f32 %v4937_v33, %v4936_v21  ;;  %v3912_v38 = vadd.f32 %v4838_v5, %v8099_v20  ;;  %v8426_v21 = vld [vmem:[#allocation13_spill] sm:$0xff]  ;;  %v4941_v20 = vadd.f32 %v8428_v40, %v8427_v14  ;;  %v8429_v48 = vld [vmem:[#allocation18_spill] sm:$0xff] }
 0x338   : > { %v4007_v54 = vadd.f32 %v4888_v2, %v3902_v9  ;;  %v4092_v7 = vadd.f32 %v4932_v47, %v3987_v16  ;;  %v4897_v47 = vadd.f32 %v8426_v21, %v8425_v58  ;;  %v4002_v19 = vadd.f32 %v4885_v1, %v3897_v60 }
 0x339   : > { %v4202_v39 = vadd.f32 %v4991_v27, %v4097_v37  ;;  %v4102_v35 = vadd.f32 %v4938_v29, %v3997_v30  ;;  %v8430_v43 = vld [vmem:[#allocation5_spill] sm:$0xff]  ;;  %v4012_v4 = vadd.f32 %v4891_v11, %v3907_v13  ;;  %v4017_v16 = vadd.f32 %v4894_v31, %v3912_v38  ;;  %v8436_v29 = vld [vmem:[#allocation6_spill] sm:$0xff] }
 0x33a   : > { %v4112_v25 = vadd.f32 %v4944_v59, %v4007_v54  ;;  %v4197_v56 = vadd.f32 %v4988_v52, %v4092_v7  ;;  %v4947_v36 = vadd.f32 %v8430_v43, %v8429_v48  ;;  %v8431_v54 = vld [vmem:[#allocation7_spill] sm:$0xff]  ;;  %v4022_v7 = vadd.f32 %v4897_v47, %v3917_v45  ;;  %v8435_v52 = vld [vmem:[#allocation17_spill] sm:$0xff] }
 0x33b   : > { %v4951_v63 = vpop.f32.mrf.mxu0  ;;  %v8178_v49 = vpop.f32.mrf.mxu1  ;;  %v4994_v15 = vadd.f32 %v8432_v51, %v8431_v54  ;;  %v4107_v5 = vadd.f32 %v4941_v20, %v4002_v19  ;;  %v8439_v20 = vld [vmem:[#allocation8_spill] sm:$0xff] }
 0x33c   : > { %v4217_v44 = vadd.f32 %v5000_v10, %v4112_v25  ;;  %v4997_v10 = vadd.f32 %v8435_v52, %v8434_v50  ;;  %v4397_v52 = vld [vmem:[%s8360_s7 + $0x8] sm:$0xff] }
 0x33d   : > { %v4952_v23 = vpop.f32.mrf.mxu0  ;;  %v8184_v3 = vpop.f32.mrf.mxu1  ;;  %v4207_v22 = vadd.f32 %v4994_v15, %v4102_v35 }
 0x33e   : > { %v4953_v53 = vadd.f32 %v4952_v23, %v4951_v63  ;;  %v4117_v63 = vadd.f32 %v4947_v36, %v4012_v4  ;;  %v8433_v23 = vld [vmem:[#allocation20_spill] sm:$0xff]  ;;  %v4212_v27 = vadd.f32 %v4997_v10, %v4107_v5  ;;  %v4437_v10 = vld [vmem:[%s8362_s9 + $0x8] sm:$0xff] }
 0x340   : > { %v4127_v60 = vadd.f32 %v4953_v53, %v4022_v7 }
 0x341   : > { %v5042_v28 = vpop.f32.mrf.mxu0  ;;  %v5054_v62 = vpop.f32.mrf.mxu1 }
 0x343   : > { %v5043_v17 = vpop.f32.mrf.mxu0  ;;  %v5055_v41 = vpop.f32.mrf.mxu1 }
 0x344   : > { %v5044_v8 = vadd.f32 %v5043_v17, %v5042_v28  ;;  %v5056_v6 = vadd.f32 %v5055_v41, %v5054_v62  ;;  %v4950_v28 = vadd.f32 %v8172_v34, %v8433_v23  ;;  %v8437_v17 = vld [vmem:[#allocation19_spill] sm:$0xff]  ;;  %v5009_v34 = vadd.f32 %v8184_v3, %v8178_v49 }
 0x345   : > { %v5045_v55 = vpop.f32.mrf.mxu0  ;;  %v5057_v26 = vpop.f32.mrf.mxu1  ;;  %v5003_v41 = vadd.f32 %v8437_v17, %v8436_v29 }
 0x346   : > { %v4302_v33 = vadd.f32 %v5044_v8, %v4197_v56  ;;  %v4322_v2 = vadd.f32 %v5056_v6, %v4217_v44  ;;  %v4122_v57 = vadd.f32 %v4950_v28, %v4017_v16 }
 0x347   : > { %v5046_v32 = vpop.f32.mrf.mxu0  ;;  %v5058_v42 = vpop.f32.mrf.mxu1 }
 0x348   : > { %v4340_v12 = vmax.f32 %v4302_v33, 0.0  ;;  %v4344_v9 = vmax.f32 %v4322_v2, 0.0  ;;  %v5047_v59 = vadd.f32 %v5046_v32, %v5045_v55  ;;  %v5059_v56 = vadd.f32 %v5058_v42, %v5057_v26  ;;  %v8438_v2 = vld [vmem:[#allocation21_spill] sm:$0xff] }
 0x349   : > { %v5048_v61 = vpop.f32.mrf.mxu0  ;;  %v5060_v18 = vpop.f32.mrf.mxu1  ;;  %v4222_v55 = vadd.f32 %v5003_v41, %v4117_v63  ;;  %v4232_v26 = vadd.f32 %v5009_v34, %v4127_v60  ;;  %v4436_v60 = vld [vmem:[%s8362_s9] sm:$0xff] }
 0x34a   : > { %v4307_v25 = vadd.f32 %v5047_v59, %v4202_v39  ;;  %v4359_v0 = vmul.f32 %v8217_v46, %v4344_v9  ;;  %v4355_v30 = vmul.f32 %v8217_v46, %v4340_v12  ;;  %v5006_v39 = vadd.f32 %v8174_v24, %v8438_v2  ;;  %v8440_v24 = vld [vmem:[#allocation9_spill] sm:$0xff]  ;;  %v4439_v2 = vld [vmem:[%s8362_s9 + $0x18] sm:$0xff] }
 0x34b   : > { %v5049_v62 = vpop.f32.mrf.mxu0  ;;  %v5061_v1 = vpop.f32.mrf.mxu1  ;;  %v4327_v35 = vadd.f32 %v5059_v56, %v4222_v55  ;;  %v4400_v55 = vld [vmem:[%s8360_s7 + $0x20] sm:$0xff] }
 0x34c   : > { %v4341_v11 = vmax.f32 %v4307_v25, 0.0  ;;  %v5050_v37 = vadd.f32 %v5049_v62, %v5048_v61  ;;  %v4376_v6 = vsel %vm4363_vm1, %v4359_v0, 0.0  ;;  %v4364_v13 = vsel %vm4363_vm1, %v4355_v30, 0.0  ;;  %v2896_v30 = vpop.xlane.xlu1 %2895 }
 0x34d   : > { %v5051_v44 = vpop.f32.mrf.mxu0  ;;  %v5063_v8 = vpop.f32.mrf.mxu1  ;;  %4377 = vadd.xlane.f32.xlu1 %v4376_v6  ;;  %4365 = vadd.xlane.f32.xlu0 %v4364_v13  ;;  %v5062_v14 = vadd.f32 %v5061_v1, %v5060_v18  ;;  %v4227_v43 = vadd.f32 %v5006_v39, %v4122_v57  ;;  %v4345_v53 = vmax.f32 %v4327_v35, 0.0  ;;  %v3061_v28 = vmul.f32 0.00031887754, %v2896_v30 }
 0x34e   : > { %v4312_v38 = vadd.f32 %v5050_v37, %v4207_v22  ;;  %v4356_v31 = vmul.f32 %v8217_v46, %v4341_v11  ;;  %v2869_v18 = vpop.xlane.xlu0 %2868 }
 0x34f   : > { %v5052_v45 = vpop.f32.mrf.mxu0  ;;  %v5064_v58 = vpop.f32.mrf.mxu1  ;;  %v4332_v12 = vadd.f32 %v5062_v14, %v4227_v43  ;;  %v4360_v54 = vmul.f32 %v8217_v46, %v4345_v53  ;;  %v3060_v23 = vmul.f32 0.00031887754, %v2869_v18 }
 0x350   : > { %v4342_v21 = vmax.f32 %v4312_v38, 0.0  ;;  %v5053_v47 = vadd.f32 %v5052_v45, %v5051_v44  ;;  %v5065_v33 = vadd.f32 %v5064_v58, %v5063_v8  ;;  %v4367_v49 = vsel %vm4363_vm1, %v4356_v31, 0.0  ;;  %v4398_v44 = vld [vmem:[%s8360_s7 + $0x10] sm:$0xff] }
 0x351   : > { %4368 = vadd.xlane.f32.xlu1 %v4367_v49  ;;  %3030 = vadd.xlane.f32.xlu0 %v8439_v20  ;;  %v4346_v16 = vmax.f32 %v4332_v12, 0.0  ;;  %v4379_v51 = vsel %vm4363_vm1, %v4360_v54, 0.0  ;;  %v4438_v8 = vld [vmem:[%s8362_s9 + $0x10] sm:$0xff]  ;;  %v4441_v54 = vld [vmem:[%s8362_s9 + $0x28] sm:$0xff] }
 0x352   : > { %v4317_v3 = vadd.f32 %v5053_v47, %v4212_v27  ;;  %v4337_v40 = vadd.f32 %v5065_v33, %v4232_v26  ;;  %v4357_v48 = vmul.f32 %v8217_v46, %v4342_v21  ;;  %v2923_v7 = vpop.xlane.xlu0 %2922  ;;  %v4440_v21 = vld [vmem:[%s8362_s9 + $0x20] sm:$0xff]  ;;  %v4399_v33 = vld [vmem:[%s8360_s7 + $0x18] sm:$0xff] }
 0x353   : > { %v4361_v15 = vmul.f32 %v8217_v46, %v4346_v16  ;;  %v3062_v37 = vmul.f32 0.00031887754, %v2923_v7  ;;  %v4401_v16 = vld [vmem:[%s8360_s7 + $0x28] sm:$0xff] }
 0x354   : > { %v4343_v36 = vmax.f32 %v4317_v3, 0.0  ;;  %v4347_v32 = vmax.f32 %v4337_v40, 0.0  ;;  %v4370_v42 = vsel %vm4363_vm1, %v4357_v48, 0.0 }
 0x355   : > { %4371 = vadd.xlane.f32.xlu1 %v4370_v42  ;;  %3057 = vadd.xlane.f32.xlu0 %v8440_v24  ;;  %v4382_v61 = vsel %vm4363_vm1, %v4361_v15, 0.0 }
 0x356   : > { %v4358_v9 = vmul.f32 %v8217_v46, %v4343_v36  ;;  %v4362_v59 = vmul.f32 %v8217_v46, %v4347_v32  ;;  %v2950_v25 = vpop.xlane.xlu0 %2949  ;;  %v4396_v46 = vld [vmem:[%s8360_s7] sm:$0xff] }
 0x357   : > { %v3063_v38 = vmul.f32 0.00031887754, %v2950_v25 }
 0x358   : > { %v4373_v19 = vsel %vm4363_vm1, %v4358_v9, 0.0  ;;  %v4385_v4 = vsel %vm4363_vm1, %v4362_v59, 0.0 }
 0x359   : > { %4374 = vadd.xlane.f32.xlu1 %v4373_v19  ;;  %4386 = vadd.xlane.f32.xlu0 %v4385_v4 }
 0x35a   : > { %v2977_v0 = vpop.xlane.xlu0 %2976 }
 0x35b   : > { %v3064_v29 = vmul.f32 0.00031887754, %v2977_v0  ;;  %v4403_v0 = vld [vmem:[%s8360_s7 + $0x38] sm:$0xff] }
 0x35d   : > { %4380 = vadd.xlane.f32.xlu1 %v4379_v51 }
 0x35e   : > { %v3004_v22 = vpop.xlane.xlu0 %3003 }
 0x35f   : > { %v3065_v42 = vmul.f32 0.00031887754, %v3004_v22  ;;  %v4443_v22 = vld [vmem:[%s8362_s9 + $0x38] sm:$0xff] }
 0x361   : > { %4383 = vadd.xlane.f32.xlu1 %v4382_v61 }
 0x3d6   : > { %v4378_v5 = vpop.xlane.xlu1 %4377  ;;  %v4366_v63 = vpop.xlane.xlu0 %4365 }
 0x3d7   : > { %v4388_v62 = vadd.f32 %v4366_v63, %v3060_v23  ;;  %v4392_v31 = vadd.f32 %v4378_v5, %v3064_v29 }
 0x3d9   : > { %v4404_v17 = vmul.f32 %v4396_v46, %v4388_v62  ;;  %v4444_v13 = vmul.f32 %v4436_v60, %v4388_v62  ;;  %v4408_v48 = vmul.f32 %v4400_v55, %v4392_v31  ;;  %v4448_v43 = vmul.f32 %v4440_v21, %v4392_v31  ;;  %v4402_v62 = vld [vmem:[%s8360_s7 + $0x30] sm:$0xff] }
 0x3da   : > { %v4369_v1 = vpop.xlane.xlu1 %4368  ;;  %v3031_v50 = vpop.xlane.xlu0 %3030 }
 0x3db   : > { %v4389_v11 = vadd.f32 %v4369_v1, %v3061_v28  ;;  %v4413_v47 = vsel %vm4412_vm2, %v4404_v17, 0.0  ;;  %v4452_v35 = vsel %vm4412_vm2, %v4444_v13, 0.0  ;;  %v4420_v18 = vsel %vm4412_vm2, %v4408_v48, 0.0  ;;  %v4442_v1 = vld [vmem:[%s8362_s9 + $0x30] sm:$0xff] }
 0x3dc   : > { %v4459_v7 = vsel %vm4412_vm2, %v4448_v43, 0.0  ;;  %v3066_v25 = vmul.f32 0.00031887754, %v3031_v50 }
 0x3dd   : > { %v4405_v41 = vmul.f32 %v4397_v52, %v4389_v11  ;;  %v4445_v56 = vmul.f32 %v4437_v10, %v4389_v11 }
 0x3de   : > { %v4372_v6 = vpop.xlane.xlu1 %4371  ;;  %v3058_v27 = vpop.xlane.xlu0 %3057 }
 0x3df   : > { %v4390_v34 = vadd.f32 %v4372_v6, %v3062_v37  ;;  %v4414_v57 = vsel %vm4412_vm2, %v4405_v41, 0.0  ;;  %v4453_v45 = vsel %vm4412_vm2, %v4445_v56, 0.0  ;;  %v3067_v59 = vmul.f32 0.00031887754, %v3058_v27 }
 0x3e0   : > { %v4415_v40 = vadd.f32 %v4414_v57, %v4413_v47  ;;  %v4454_v20 = vadd.f32 %v4453_v45, %v4452_v35 }
 0x3e1   : > { %v4406_v58 = vmul.f32 %v4398_v44, %v4390_v34  ;;  %v4446_v26 = vmul.f32 %v4438_v8, %v4390_v34 }
 0x3e2   : > { %v4375_v39 = vpop.xlane.xlu1 %4374  ;;  %v4387_v24 = vpop.xlane.xlu0 %4386 }
 0x3e3   : > { %v4416_v14 = vsel %vm4412_vm2, %v4406_v58, 0.0  ;;  %v4455_v49 = vsel %vm4412_vm2, %v4446_v26, 0.0  ;;  %v4391_v3 = vadd.f32 %v4375_v39, %v3063_v38  ;;  %v4395_v30 = vadd.f32 %v4387_v24, %v3067_v59  ;;  %v4434_v39 = vld [vmem:[%s8361_s8] sm:$0x1] }
 0x3e4   : > { %v4417_v53 = vadd.f32 %v4416_v14, %v4415_v40  ;;  %v4456_v12 = vadd.f32 %v4455_v49, %v4454_v20 }
 0x3e5   : > { %v4407_v36 = vmul.f32 %v4399_v33, %v4391_v3  ;;  %v4447_v32 = vmul.f32 %v4439_v2, %v4391_v3  ;;  %v4411_v60 = vmul.f32 %v4403_v0, %v4395_v30  ;;  %v4451_v11 = vmul.f32 %v4443_v22, %v4395_v30  ;;  %v4474_v3 = vld [vmem:[%s8363_s10] sm:$0x1] }
 0x3e6   : > { %v4381_v9 = vpop.xlane.xlu1 %4380 }
 0x3e7   : > { %v4418_v19 = vsel %vm4412_vm2, %v4407_v36, 0.0  ;;  %v4457_v4 = vsel %vm4412_vm2, %v4447_v32, 0.0  ;;  %v4393_v61 = vadd.f32 %v4381_v9, %v3065_v42  ;;  %v4426_v13 = vsel %vm4412_vm2, %v4411_v60, 0.0 }
 0x3e8   : > { %v4419_v51 = vadd.f32 %v4418_v19, %v4417_v53  ;;  %v4458_v15 = vadd.f32 %v4457_v4, %v4456_v12  ;;  %v4465_v34 = vsel %vm4412_vm2, %v4451_v11, 0.0 }
 0x3e9   : > { %v4409_v5 = vmul.f32 %v4401_v16, %v4393_v61  ;;  %v4449_v23 = vmul.f32 %v4441_v54, %v4393_v61 }
 0x3ea   : > { %v4421_v63 = vadd.f32 %v4420_v18, %v4419_v51  ;;  %v4460_v28 = vadd.f32 %v4459_v7, %v4458_v15  ;;  %v4384_v50 = vpop.xlane.xlu1 %4383 }
 0x3eb   : > { %v4394_v46 = vadd.f32 %v4384_v50, %v3066_v25  ;;  %v4422_v52 = vsel %vm4412_vm2, %v4409_v5, 0.0  ;;  %v4461_v10 = vsel %vm4412_vm2, %v4449_v23, 0.0 }
 0x3ec   : > { %v4423_v17 = vadd.f32 %v4422_v52, %v4421_v63  ;;  %v4462_v41 = vadd.f32 %v4461_v10, %v4460_v28 }
 0x3ed   : > { %v4410_v37 = vmul.f32 %v4402_v62, %v4394_v46  ;;  %v4450_v29 = vmul.f32 %v4442_v1, %v4394_v46 }
 0x3ef   : > { %v4424_v56 = vsel %vm4412_vm2, %v4410_v37, 0.0  ;;  %v4463_v44 = vsel %vm4412_vm2, %v4450_v29, 0.0 }
 0x3f0   : > { %v4425_v8 = vadd.f32 %v4424_v56, %v4423_v17  ;;  %v4464_v6 = vadd.f32 %v4463_v44, %v4462_v41 }
 0x3f2   : > { %v4427_v38 = vadd.f32 %v4426_v13, %v4425_v8  ;;  %v4466_v31 = vadd.f32 %v4465_v34, %v4464_v6 }
 0x3f4   : > { %v4428_v27 = vrot.slane %v4427_v38, 4  ;;  %v4467_v55 = vrot.slane %v4466_v31, 4 }
 0x3f6   : > { %v4429_v57 = vadd.f32 %v4428_v27, %v4427_v38  ;;  %v4468_v45 = vadd.f32 %v4467_v55, %v4466_v31 }
 0x3f8   : > { %v4430_v58 = vrot.slane %v4429_v57, 2  ;;  %v4469_v26 = vrot.slane %v4468_v45, 2 }
 0x3fa   : > { %v4431_v21 = vadd.f32 %v4430_v58, %v4429_v57  ;;  %v4470_v47 = vadd.f32 %v4469_v26, %v4468_v45 }
 0x3fc   : > { %v4432_v33 = vrot.slane %v4431_v21, 1  ;;  %v4471_v2 = vrot.slane %v4470_v47, 1 }
 0x3fe   : > { %v4433_v35 = vadd.f32 %v4432_v33, %v4431_v21  ;;  %v4472_v49 = vadd.f32 %v4471_v2, %v4470_v47 }
 0x400   : > { %v4435_v14 = vadd.f32 %v4434_v39, %v4433_v35 }
 0x402   : > { %v4473_v40 = vmul.f32 %v4472_v49, %v4435_v14 }
 0x404   : > { %v4475_v20 = vadd.f32 %v4474_v3, %v4473_v40 }
 0x406   : > { %4477 = vst.msk [vmem:[%s393_s14] sm:$0x1] %vm4476_vm3, %v4475_v20 }
 0x407   : > { %5190 = shalt.err (!%p5187_p3)
}
 0x408   : > { %s5191_s1 = scalar_lea.hbm %s4489_s0, 16  ;;  %s5195_s14 = scalar_lea.hbm %s8364_s11, 32 }
 0x409   : > { %p5192_p4 = scmp.ne.s32.totalorder %s4489_s0, %s5191_s1  ;;  %p5196_p9 = scmp.lt.s32.totalorder %s4489_s0, %s8364_s11 }
 0x40a   : > { %p5197_p10 = scmp.lt.s32.totalorder %s5195_s14, %s5191_s1 }
 0x40b   : > { %p5193_p7 = pnand %p5192_p4, %p5339_p5 }
 0x40c   : > { %p5198_p11 = por %p5197_p10, %p5196_p9 }
 0x40d   : > { %p5194_p8 = pneg %p5193_p7 }
 0x40f   : > { %p5199_p12 = pnand %p5198_p11, %p5194_p8 }
 0x411   : > { %5202 = shalt.err (!%p5199_p12)
}
 0x412   : > { %5099 = dma.vmem_to_hbm [thread:$0]  (%p5339_p5), %s4492_s15, 16, %s4489_s0, %s4479_s16  }
 0x413 PF: > { %p5105_p13 = scmp.ge.s32.totalorder %s5237_s20, 2  ;;  %s4503_s25 = sand.u32 1, %s5225_s17  }
 0x414   : > { %s4504_s29 = scalar_lea.sflag [#allocation3], %s4503_s25 }
 0x415   : > { %p5102_p0 = pnand %p5105_p13, %p5343_p6 }
 0x417   : > { %p5103_p1 = pneg %p5102_p0 }
 0x419   : > { %5220 = dma.done.wait (%p5103_p1), %s4504_s29, 16  }
 0x41a   : > { %5222 = vsyncadd (%p5103_p1), %s4504_s29, 4294967280  ;;  %p21_p2 = scmp.ge.s32.totalorder %s5326_s23, 4   ;;  %s8441_s17 = smov %s5229_s18 }
 0x41b   : > { %s8442_s18 = smov %s5233_s19  ;;  %s8443_s19 = smov %s5337_s26 }
 0x41c   : > { %s8444_s20 = smov %s5326_s23  ;;  %23 = sbr.rel (!%p21_p2) target bundleno = 6 (0x6), region = 102 }
 0x421   :  { %4508 = vsyncpa [#allocation3], 1 }
 0x422   :  { %4510 = vsyncpa [#allocation3 + $0x1], 1 }

</bundles_post_ra>
